<compile_context>
chip_gen: v7x
topology: tpu7x:2x2x1
jax: 0.10.0
libtpu: 0.0.40
codegen_flags: <defaults>
</compile_context>

<pallas_src>
import numpy as np
import jax
import jax.numpy as jnp
from jax.experimental import pallas as pl
from jax.experimental.pallas import tpu as pltpu

N0 = 5        # rows of x0 (module requires a multiple of 5)
N1 = 3        # rows of x1 (N0*N1 must be a multiple of 15)
NP = N0 * N1  # 15 pairwise differences
L = 128       # stand-in for the hardcoded 2866 (multiple of 128 -> unmasked stores)
C1 = 32       # conv1 out channels
C2 = 64       # conv2 out channels
EPS = 1e-5    # nn.BatchNorm1d default


def _vmem_limit_bytes():
    # Budget for the fused single-block kernel (dominated by branch 2):
    # d_flat + h1 + h2 live, both outputs, inputs, params; 2x headroom.
    live = 4 * ((1 + C1 + C2) * NP * L        # d_flat, h1, h2 (f32)
                + C2 * (N0 + NP) * L          # both outputs
                + (N0 + N1) * L               # inputs
                + C1 * 4 + C2 * C1 + C2 * 4)  # packed params
    # Clamp: never below the smallest per-chip scoped default (16 MiB, v5e),
    # never above what v7x's 64 MiB physical VMEM can take with headroom.
    # TODO(synk): at the real L=2866, pad the lane axis to 2944 and (on v7x)
    # tile the lane axis / two-phase BN if this budget is exceeded.
    return int(min(max(2 * live, 16 * 2 ** 20), 60 * 2 ** 20))


def encoder_kernel(xb0_ref, xb1_ref, p1_ref, w2_ref, p2_ref, ox_ref, od_ref):
    # Packed per-channel parameters:
    #   p1 = [w1 | b1 | g1 | bt1]   (C1, 4)
    #   p2 = [b2 | g2 | bt2 | 0 ]   (C2, 4)
    p1 = p1_ref[...]
    w1, b1, g1, bt1 = p1[:, 0:1], p1[:, 1:2], p1[:, 2:3], p1[:, 3:4]
    p2 = p2_ref[...]
    b2, g2, bt2 = p2[:, 0:1], p2[:, 1:2], p2[:, 2:3]
    w2 = w2_ref[...]                                  # (C2, C1)

    x0f = xb0_ref[...]                                # (1, N0*L) lane-fused
    x1f = xb1_ref[...]                                # (1, N1*L) lane-fused

    def stack(x_flat, m, out_ref):
        # x_flat: (1, m*L) — channels on sublanes, fused (batch*length) lanes.
        inv_n = 1.0 / (m * L)
        # conv1 (1x1, in_ch=1): per-channel affine broadcast on the VPU.
        h1 = w1 * x_flat + b1                         # (C1, m*L)
        # bn1 (training stats, biased var) + relu — single-pass statistics,
        # affine folded into one scale/shift per channel.
        mu1 = jnp.sum(h1, axis=1, keepdims=True) * inv_n
        q1 = jnp.sum(h1 * h1, axis=1, keepdims=True) * inv_n
        a1 = g1 * jax.lax.rsqrt(q1 - mu1 * mu1 + EPS)
        h1 = jnp.maximum(h1 * a1 + (bt1 - mu1 * a1), 0.0)
        # conv2 (1x1, 32 -> 64): MXU matmul over channels, f32 accumulation.
        # (At the real L=2866, cast w2/h1 to bf16 here — keep f32 accumulate —
        #  for the native MXU path on v6e/v7x; kept f32 to match reference.)
        h2 = jnp.dot(w2, h1, preferred_element_type=jnp.float32) + b2  # (C2, m*L)
        # bn2 statistics in a single pass over the lane axis (per branch).
        mu2 = jnp.sum(h2, axis=1, keepdims=True) * inv_n
        q2 = jnp.sum(h2 * h2, axis=1, keepdims=True) * inv_n
        a2 = g2 * jax.lax.rsqrt(q2 - mu2 * mu2 + EPS)
        sh2 = bt2 - mu2 * a2
        # Normalize + ReLU fused into the per-sample output stores: result is
        # written directly in (m, C2, L) layout with full-width unmasked
        # (C2, L) stores (lane slices of h2 are 128-aligned).
        for i in range(m):
            out_ref[i, :, :] = jnp.maximum(
                h2[:, i * L:(i + 1) * L] * a2 + sh2, 0.0)

    # ---- branch 1: x0 through the conv/BN stack -> (N0, C2, L) ----
    stack(x0f, N0, ox_ref)

    # ---- branch 2: all 15 pairwise differences, built lane-fused in-kernel
    # (row r = i*N1 + j  ->  x1[j] - x0[i], matching torch broadcasting). ----
    d_parts = []
    for i in range(N0):
        x0i = x0f[:, i * L:(i + 1) * L]
        for j in range(N1):
            d_parts.append(x1f[:, j * L:(j + 1) * L] - x0i)
    d_flat = jnp.concatenate(d_parts, axis=1)         # (1, NP*L)
    stack(d_flat, NP, od_ref)


def _vmem_specs(n):
    return [pl.BlockSpec(memory_space=pltpu.MemorySpace.VMEM) for _ in range(n)]


def _encoder_pallas(xb0, xb1, p1, w2, p2):
    return pl.pallas_call(
        encoder_kernel,
        out_shape=(jax.ShapeDtypeStruct((N0, C2, L), jnp.float32),
                   jax.ShapeDtypeStruct((NP, C2, L), jnp.float32)),
        in_specs=_vmem_specs(5),
        out_specs=tuple(_vmem_specs(2)),
        compiler_params=pltpu.CompilerParams(
            vmem_limit_bytes=_vmem_limit_bytes()),
    )(xb0, xb1, p1, w2, p2)


def init_params(key):
    ks = jax.random.split(key, 8)
    w1 = 0.5 * jax.random.normal(ks[0], (C1, 1), jnp.float32)        # conv1.weight (32,1,1)
    b1 = 0.1 * jax.random.normal(ks[1], (C1, 1), jnp.float32)        # conv1.bias
    g1 = 1.0 + 0.1 * jax.random.normal(ks[2], (C1, 1), jnp.float32)  # bn1.weight
    bt1 = 0.1 * jax.random.normal(ks[3], (C1, 1), jnp.float32)       # bn1.bias
    w2 = 0.2 * jax.random.normal(ks[4], (C2, C1), jnp.float32)       # conv2.weight (64,32,1)
    b2 = 0.1 * jax.random.normal(ks[5], (C2, 1), jnp.float32)        # conv2.bias
    g2 = 1.0 + 0.1 * jax.random.normal(ks[6], (C2, 1), jnp.float32)  # bn2.weight
    bt2 = 0.1 * jax.random.normal(ks[7], (C2, 1), jnp.float32)       # bn2.bias
    # Pack per-channel vectors so the fused call takes 3 parameter tensors.
    p1 = jnp.concatenate([w1, b1, g1, bt1], axis=1)                  # (C1, 4)
    p2 = jnp.concatenate([b2, g2, bt2, jnp.zeros_like(b2)], axis=1)  # (C2, 4)
    return p1, w2, p2


@jax.jit
def encoder_forward(x0, x1, p1, w2, p2):
    # x0: (N0, 1, L), x1: (N1, 1, L) — PyTorch NCL layout at the boundary.
    # Contiguous reshapes (no transpose) to the kernel's lane-fused layout.
    xb0 = x0.reshape(1, N0 * L)
    xb1 = x1.reshape(1, N1 * L)
    x_out, x1_out = _encoder_pallas(xb0, xb1, p1, w2, p2)
    # v / res_v are means over a size-1 leading reshape group (only because
    # N0 == 5 and N0*N1 == 15 exactly) -> identity, alias the kernel outputs.
    assert N0 == 5 and NP == 15, "group means are only identities for 5 / 15"
    v, res_v = x_out, x1_out
    # TODO(synk): BatchNorm running-stat buffer updates (training-mode module
    # state side effect) are not replicated; returned tensors are unaffected.
    return x_out, x1_out, v, res_v


def _reference(x0, x1, p1, w2, p2):
    # Pure-JAX translation of the PyTorch forward (training-mode BN).
    w1, b1, g1, bt1 = p1[:, 0], p1[:, 1], p1[:, 2], p1[:, 3]
    b2, g2, bt2 = p2[:, 0], p2[:, 1], p2[:, 2]

    def bn_relu(h, g, b):                      # h: (N, C, L); stats over (N, L)
        mu = jnp.mean(h, axis=(0, 2), keepdims=True)
        var = jnp.mean((h - mu) ** 2, axis=(0, 2), keepdims=True)
        y = (h - mu) / jnp.sqrt(var + EPS) * g[None, :, None] + b[None, :, None]
        return jnp.maximum(y, 0.0)

    def stack(x):                              # x: (N, 1, L)
        h1 = x * w1[None, :, None] + b1[None, :, None]
        h1 = bn_relu(h1, g1, bt1)
        h2 = jnp.einsum('oc,ncl->nol', w2, h1,
                        precision=jax.lax.Precision.HIGHEST)
        h2 = h2 + b2[None, :, None]
        return bn_relu(h2, g2, bt2)

    x = stack(x0)
    d = (x1[None, :, :, :] - x0[:, None, :, :]).reshape(-1, 1, L)
    xd = stack(d)
    v = jnp.mean(x.reshape(-1, 5, C2, L), axis=0)
    res_v = jnp.mean(xd.reshape(-1, 5, 3, C2, L), axis=0).reshape(15, C2, L)
    return x, xd, v, res_v


if __name__ == "__main__":
    key = jax.random.PRNGKey(0)
    k0, k1, kp = jax.random.split(key, 3)
    x0 = jax.random.normal(k0, (N0, 1, L), jnp.float32)
    x1 = jax.random.normal(k1, (N1, 1, L), jnp.float32)
    p1, w2, p2 = init_params(kp)

    outs = jax.block_until_ready(encoder_forward(x0, x1, p1, w2, p2))
    x, x1_out, v, res_v = outs
    assert x.shape == (N0, C2, L)
    assert x1_out.shape == (NP, C2, L)
    assert v.shape == (5, C2, L)
    assert res_v.shape == (15, C2, L)

    refs = jax.jit(_reference)(x0, x1, p1, w2, p2)
    for got, want in zip(outs, refs):
        np.testing.assert_allclose(np.asarray(got), np.asarray(want),
                                   rtol=2e-3, atol=2e-3)
    print("KERNEL_OK")
</pallas_src>

<mosaic_0001>
module attributes {stable_mosaic.version = 11 : i64} {
  func.func @encoder_kernel(%arg0: memref<1x640xf32, #tpu.memory_space<vmem>>, %arg1: memref<1x384xf32, #tpu.memory_space<vmem>>, %arg2: memref<32x4xf32, #tpu.memory_space<vmem>>, %arg3: memref<64x32xf32, #tpu.memory_space<vmem>>, %arg4: memref<64x4xf32, #tpu.memory_space<vmem>>, %arg5: memref<5x64x128xf32, #tpu.memory_space<vmem>>, %arg6: memref<15x64x128xf32, #tpu.memory_space<vmem>>) attributes {dimension_semantics = [], scalar_prefetch = 0 : i64, scratch_operands = 0 : i64, tpu.core_type = #tpu.core_type<tc>} {
    %c0 = arith.constant 0 : index
    %c0_0 = arith.constant 0 : index
    %0 = vector.load %arg2[%c0, %c0_0] : memref<32x4xf32, #tpu.memory_space<vmem>>, vector<32x4xf32>
    %1 = vector.extract_strided_slice %0 {offsets = [0, 0], sizes = [32, 1], strides = [1, 1]} : vector<32x4xf32> to vector<32x1xf32>
    %2 = vector.extract_strided_slice %0 {offsets = [0, 1], sizes = [32, 1], strides = [1, 1]} : vector<32x4xf32> to vector<32x1xf32>
    %3 = vector.extract_strided_slice %0 {offsets = [0, 2], sizes = [32, 1], strides = [1, 1]} : vector<32x4xf32> to vector<32x1xf32>
    %4 = vector.extract_strided_slice %0 {offsets = [0, 3], sizes = [32, 1], strides = [1, 1]} : vector<32x4xf32> to vector<32x1xf32>
    %c0_1 = arith.constant 0 : index
    %c0_2 = arith.constant 0 : index
    %5 = vector.load %arg4[%c0_1, %c0_2] : memref<64x4xf32, #tpu.memory_space<vmem>>, vector<64x4xf32>
    %6 = vector.extract_strided_slice %5 {offsets = [0, 0], sizes = [64, 1], strides = [1, 1]} : vector<64x4xf32> to vector<64x1xf32>
    %7 = vector.extract_strided_slice %5 {offsets = [0, 1], sizes = [64, 1], strides = [1, 1]} : vector<64x4xf32> to vector<64x1xf32>
    %8 = vector.extract_strided_slice %5 {offsets = [0, 2], sizes = [64, 1], strides = [1, 1]} : vector<64x4xf32> to vector<64x1xf32>
    %c0_3 = arith.constant 0 : index
    %c0_4 = arith.constant 0 : index
    %9 = vector.load %arg3[%c0_3, %c0_4] : memref<64x32xf32, #tpu.memory_space<vmem>>, vector<64x32xf32>
    %c0_5 = arith.constant 0 : index
    %c0_6 = arith.constant 0 : index
    %10 = vector.load %arg0[%c0_5, %c0_6] : memref<1x640xf32, #tpu.memory_space<vmem>>, vector<1x640xf32>
    %c0_7 = arith.constant 0 : index
    %c0_8 = arith.constant 0 : index
    %11 = vector.load %arg1[%c0_7, %c0_8] : memref<1x384xf32, #tpu.memory_space<vmem>>, vector<1x384xf32>
    %12 = vector.broadcast %1 : vector<32x1xf32> to vector<32x640xf32>
    %13 = vector.broadcast %10 : vector<1x640xf32> to vector<32x640xf32>
    %14 = arith.mulf %12, %13 : vector<32x640xf32>
    %15 = vector.broadcast %2 : vector<32x1xf32> to vector<32x640xf32>
    %16 = arith.addf %14, %15 : vector<32x640xf32>
    %cst = arith.constant dense<0.000000e+00> : vector<32xf32>
    %17 = vector.multi_reduction <add>, %16, %cst [1] : vector<32x640xf32> to vector<32xf32>
    %18 = vector.shape_cast %17 : vector<32xf32> to vector<32x1xf32>
    %cst_9 = arith.constant 1.562500e-03 : f32
    %19 = vector.broadcast %cst_9 : f32 to vector<32x1xf32>
    %20 = arith.mulf %18, %19 : vector<32x1xf32>
    %21 = arith.mulf %16, %16 : vector<32x640xf32>
    %cst_10 = arith.constant dense<0.000000e+00> : vector<32xf32>
    %22 = vector.multi_reduction <add>, %21, %cst_10 [1] : vector<32x640xf32> to vector<32xf32>
    %23 = vector.shape_cast %22 : vector<32xf32> to vector<32x1xf32>
    %cst_11 = arith.constant 1.562500e-03 : f32
    %24 = vector.broadcast %cst_11 : f32 to vector<32x1xf32>
    %25 = arith.mulf %23, %24 : vector<32x1xf32>
    %26 = arith.mulf %20, %20 : vector<32x1xf32>
    %27 = arith.subf %25, %26 : vector<32x1xf32>
    %cst_12 = arith.constant 9.99999974E-6 : f32
    %28 = vector.broadcast %cst_12 : f32 to vector<32x1xf32>
    %29 = arith.addf %27, %28 : vector<32x1xf32>
    %30 = math.rsqrt %29 : vector<32x1xf32>
    %31 = arith.mulf %3, %30 : vector<32x1xf32>
    %32 = vector.broadcast %31 : vector<32x1xf32> to vector<32x640xf32>
    %33 = arith.mulf %16, %32 : vector<32x640xf32>
    %34 = arith.mulf %20, %31 : vector<32x1xf32>
    %35 = arith.subf %4, %34 : vector<32x1xf32>
    %36 = vector.broadcast %35 : vector<32x1xf32> to vector<32x640xf32>
    %37 = arith.addf %33, %36 : vector<32x640xf32>
    %cst_13 = arith.constant 0.000000e+00 : f32
    %38 = vector.broadcast %cst_13 : f32 to vector<32x640xf32>
    %39 = arith.maximumf %37, %38 : vector<32x640xf32>
    %cst_14 = arith.constant dense<0.000000e+00> : vector<64x640xf32>
    %40 = tpu.matmul %9, %39, %cst_14 {dimension_numbers = #tpu.dot_dimension_numbers<[1], [0], [0], [1], [0, 0, 1, 1], [], []>} : vector<64x32xf32>, vector<32x640xf32>, vector<64x640xf32> -> vector<64x640xf32>
    %41 = vector.broadcast %6 : vector<64x1xf32> to vector<64x640xf32>
    %42 = arith.addf %40, %41 : vector<64x640xf32>
    %cst_15 = arith.constant dense<0.000000e+00> : vector<64xf32>
    %43 = vector.multi_reduction <add>, %42, %cst_15 [1] : vector<64x640xf32> to vector<64xf32>
    %44 = vector.shape_cast %43 : vector<64xf32> to vector<64x1xf32>
    %cst_16 = arith.constant 1.562500e-03 : f32
    %45 = vector.broadcast %cst_16 : f32 to vector<64x1xf32>
    %46 = arith.mulf %44, %45 : vector<64x1xf32>
    %47 = arith.mulf %42, %42 : vector<64x640xf32>
    %cst_17 = arith.constant dense<0.000000e+00> : vector<64xf32>
    %48 = vector.multi_reduction <add>, %47, %cst_17 [1] : vector<64x640xf32> to vector<64xf32>
    %49 = vector.shape_cast %48 : vector<64xf32> to vector<64x1xf32>
    %cst_18 = arith.constant 1.562500e-03 : f32
    %50 = vector.broadcast %cst_18 : f32 to vector<64x1xf32>
    %51 = arith.mulf %49, %50 : vector<64x1xf32>
    %52 = arith.mulf %46, %46 : vector<64x1xf32>
    %53 = arith.subf %51, %52 : vector<64x1xf32>
    %cst_19 = arith.constant 9.99999974E-6 : f32
    %54 = vector.broadcast %cst_19 : f32 to vector<64x1xf32>
    %55 = arith.addf %53, %54 : vector<64x1xf32>
    %56 = math.rsqrt %55 : vector<64x1xf32>
    %57 = arith.mulf %7, %56 : vector<64x1xf32>
    %58 = arith.mulf %46, %57 : vector<64x1xf32>
    %59 = arith.subf %8, %58 : vector<64x1xf32>
    %60 = vector.extract_strided_slice %42 {offsets = [0, 0], sizes = [64, 128], strides = [1, 1]} : vector<64x640xf32> to vector<64x128xf32>
    %61 = vector.broadcast %57 : vector<64x1xf32> to vector<64x128xf32>
    %62 = arith.mulf %60, %61 : vector<64x128xf32>
    %63 = vector.broadcast %59 : vector<64x1xf32> to vector<64x128xf32>
    %64 = arith.addf %62, %63 : vector<64x128xf32>
    %cst_20 = arith.constant 0.000000e+00 : f32
    %65 = vector.broadcast %cst_20 : f32 to vector<64x128xf32>
    %66 = arith.maximumf %64, %65 : vector<64x128xf32>
    %c0_21 = arith.constant 0 : index
    %c0_22 = arith.constant 0 : index
    %c0_23 = arith.constant 0 : index
    %67 = vector.load %arg5[%c0_21, %c0_22, %c0_23] : memref<5x64x128xf32, #tpu.memory_space<vmem>>, vector<1x64x128xf32>
    %68 = vector.shape_cast %67 : vector<1x64x128xf32> to vector<64x128xf32>
    %69 = vector.shape_cast %66 : vector<64x128xf32> to vector<1x64x128xf32>
    tpu.vector_store %arg5[%c0_21, %c0_22, %c0_23], %69 {strides = array<i32>} : memref<5x64x128xf32, #tpu.memory_space<vmem>>, vector<1x64x128xf32>,
    %70 = vector.extract_strided_slice %42 {offsets = [0, 128], sizes = [64, 128], strides = [1, 1]} : vector<64x640xf32> to vector<64x128xf32>
    %71 = vector.broadcast %57 : vector<64x1xf32> to vector<64x128xf32>
    %72 = arith.mulf %70, %71 : vector<64x128xf32>
    %73 = vector.broadcast %59 : vector<64x1xf32> to vector<64x128xf32>
    %74 = arith.addf %72, %73 : vector<64x128xf32>
    %cst_24 = arith.constant 0.000000e+00 : f32
    %75 = vector.broadcast %cst_24 : f32 to vector<64x128xf32>
    %76 = arith.maximumf %74, %75 : vector<64x128xf32>
    %c1 = arith.constant 1 : index
    %c0_25 = arith.constant 0 : index
    %c0_26 = arith.constant 0 : index
    %77 = vector.load %arg5[%c1, %c0_25, %c0_26] : memref<5x64x128xf32, #tpu.memory_space<vmem>>, vector<1x64x128xf32>
    %78 = vector.shape_cast %77 : vector<1x64x128xf32> to vector<64x128xf32>
    %79 = vector.shape_cast %76 : vector<64x128xf32> to vector<1x64x128xf32>
    tpu.vector_store %arg5[%c1, %c0_25, %c0_26], %79 {strides = array<i32>} : memref<5x64x128xf32, #tpu.memory_space<vmem>>, vector<1x64x128xf32>,
    %80 = vector.extract_strided_slice %42 {offsets = [0, 256], sizes = [64, 128], strides = [1, 1]} : vector<64x640xf32> to vector<64x128xf32>
    %81 = vector.broadcast %57 : vector<64x1xf32> to vector<64x128xf32>
    %82 = arith.mulf %80, %81 : vector<64x128xf32>
    %83 = vector.broadcast %59 : vector<64x1xf32> to vector<64x128xf32>
    %84 = arith.addf %82, %83 : vector<64x128xf32>
    %cst_27 = arith.constant 0.000000e+00 : f32
    %85 = vector.broadcast %cst_27 : f32 to vector<64x128xf32>
    %86 = arith.maximumf %84, %85 : vector<64x128xf32>
    %c2 = arith.constant 2 : index
    %c0_28 = arith.constant 0 : index
    %c0_29 = arith.constant 0 : index
    %87 = vector.load %arg5[%c2, %c0_28, %c0_29] : memref<5x64x128xf32, #tpu.memory_space<vmem>>, vector<1x64x128xf32>
    %88 = vector.shape_cast %87 : vector<1x64x128xf32> to vector<64x128xf32>
    %89 = vector.shape_cast %86 : vector<64x128xf32> to vector<1x64x128xf32>
    tpu.vector_store %arg5[%c2, %c0_28, %c0_29], %89 {strides = array<i32>} : memref<5x64x128xf32, #tpu.memory_space<vmem>>, vector<1x64x128xf32>,
    %90 = vector.extract_strided_slice %42 {offsets = [0, 384], sizes = [64, 128], strides = [1, 1]} : vector<64x640xf32> to vector<64x128xf32>
    %91 = vector.broadcast %57 : vector<64x1xf32> to vector<64x128xf32>
    %92 = arith.mulf %90, %91 : vector<64x128xf32>
    %93 = vector.broadcast %59 : vector<64x1xf32> to vector<64x128xf32>
    %94 = arith.addf %92, %93 : vector<64x128xf32>
    %cst_30 = arith.constant 0.000000e+00 : f32
    %95 = vector.broadcast %cst_30 : f32 to vector<64x128xf32>
    %96 = arith.maximumf %94, %95 : vector<64x128xf32>
    %c3 = arith.constant 3 : index
    %c0_31 = arith.constant 0 : index
    %c0_32 = arith.constant 0 : index
    %97 = vector.load %arg5[%c3, %c0_31, %c0_32] : memref<5x64x128xf32, #tpu.memory_space<vmem>>, vector<1x64x128xf32>
    %98 = vector.shape_cast %97 : vector<1x64x128xf32> to vector<64x128xf32>
    %99 = vector.shape_cast %96 : vector<64x128xf32> to vector<1x64x128xf32>
    tpu.vector_store %arg5[%c3, %c0_31, %c0_32], %99 {strides = array<i32>} : memref<5x64x128xf32, #tpu.memory_space<vmem>>, vector<1x64x128xf32>,
    %100 = vector.extract_strided_slice %42 {offsets = [0, 512], sizes = [64, 128], strides = [1, 1]} : vector<64x640xf32> to vector<64x128xf32>
    %101 = vector.broadcast %57 : vector<64x1xf32> to vector<64x128xf32>
    %102 = arith.mulf %100, %101 : vector<64x128xf32>
    %103 = vector.broadcast %59 : vector<64x1xf32> to vector<64x128xf32>
    %104 = arith.addf %102, %103 : vector<64x128xf32>
    %cst_33 = arith.constant 0.000000e+00 : f32
    %105 = vector.broadcast %cst_33 : f32 to vector<64x128xf32>
    %106 = arith.maximumf %104, %105 : vector<64x128xf32>
    %c4 = arith.constant 4 : index
    %c0_34 = arith.constant 0 : index
    %c0_35 = arith.constant 0 : index
    %107 = vector.load %arg5[%c4, %c0_34, %c0_35] : memref<5x64x128xf32, #tpu.memory_space<vmem>>, vector<1x64x128xf32>
    %108 = vector.shape_cast %107 : vector<1x64x128xf32> to vector<64x128xf32>
    %109 = vector.shape_cast %106 : vector<64x128xf32> to vector<1x64x128xf32>
    tpu.vector_store %arg5[%c4, %c0_34, %c0_35], %109 {strides = array<i32>} : memref<5x64x128xf32, #tpu.memory_space<vmem>>, vector<1x64x128xf32>,
    %110 = vector.extract_strided_slice %10 {offsets = [0, 0], sizes = [1, 128], strides = [1, 1]} : vector<1x640xf32> to vector<1x128xf32>
    %111 = vector.extract_strided_slice %11 {offsets = [0, 0], sizes = [1, 128], strides = [1, 1]} : vector<1x384xf32> to vector<1x128xf32>
    %112 = arith.subf %111, %110 : vector<1x128xf32>
    %113 = vector.extract_strided_slice %11 {offsets = [0, 128], sizes = [1, 128], strides = [1, 1]} : vector<1x384xf32> to vector<1x128xf32>
    %114 = arith.subf %113, %110 : vector<1x128xf32>
    %115 = vector.extract_strided_slice %11 {offsets = [0, 256], sizes = [1, 128], strides = [1, 1]} : vector<1x384xf32> to vector<1x128xf32>
    %116 = arith.subf %115, %110 : vector<1x128xf32>
    %117 = vector.extract_strided_slice %10 {offsets = [0, 128], sizes = [1, 128], strides = [1, 1]} : vector<1x640xf32> to vector<1x128xf32>
    %118 = vector.extract_strided_slice %11 {offsets = [0, 0], sizes = [1, 128], strides = [1, 1]} : vector<1x384xf32> to vector<1x128xf32>
    %119 = arith.subf %118, %117 : vector<1x128xf32>
    %120 = vector.extract_strided_slice %11 {offsets = [0, 128], sizes = [1, 128], strides = [1, 1]} : vector<1x384xf32> to vector<1x128xf32>
    %121 = arith.subf %120, %117 : vector<1x128xf32>
    %122 = vector.extract_strided_slice %11 {offsets = [0, 256], sizes = [1, 128], strides = [1, 1]} : vector<1x384xf32> to vector<1x128xf32>
    %123 = arith.subf %122, %117 : vector<1x128xf32>
    %124 = vector.extract_strided_slice %10 {offsets = [0, 256], sizes = [1, 128], strides = [1, 1]} : vector<1x640xf32> to vector<1x128xf32>
    %125 = vector.extract_strided_slice %11 {offsets = [0, 0], sizes = [1, 128], strides = [1, 1]} : vector<1x384xf32> to vector<1x128xf32>
    %126 = arith.subf %125, %124 : vector<1x128xf32>
    %127 = vector.extract_strided_slice %11 {offsets = [0, 128], sizes = [1, 128], strides = [1, 1]} : vector<1x384xf32> to vector<1x128xf32>
    %128 = arith.subf %127, %124 : vector<1x128xf32>
    %129 = vector.extract_strided_slice %11 {offsets = [0, 256], sizes = [1, 128], strides = [1, 1]} : vector<1x384xf32> to vector<1x128xf32>
    %130 = arith.subf %129, %124 : vector<1x128xf32>
    %131 = vector.extract_strided_slice %10 {offsets = [0, 384], sizes = [1, 128], strides = [1, 1]} : vector<1x640xf32> to vector<1x128xf32>
    %132 = vector.extract_strided_slice %11 {offsets = [0, 0], sizes = [1, 128], strides = [1, 1]} : vector<1x384xf32> to vector<1x128xf32>
    %133 = arith.subf %132, %131 : vector<1x128xf32>
    %134 = vector.extract_strided_slice %11 {offsets = [0, 128], sizes = [1, 128], strides = [1, 1]} : vector<1x384xf32> to vector<1x128xf32>
    %135 = arith.subf %134, %131 : vector<1x128xf32>
    %136 = vector.extract_strided_slice %11 {offsets = [0, 256], sizes = [1, 128], strides = [1, 1]} : vector<1x384xf32> to vector<1x128xf32>
    %137 = arith.subf %136, %131 : vector<1x128xf32>
    %138 = vector.extract_strided_slice %10 {offsets = [0, 512], sizes = [1, 128], strides = [1, 1]} : vector<1x640xf32> to vector<1x128xf32>
    %139 = vector.extract_strided_slice %11 {offsets = [0, 0], sizes = [1, 128], strides = [1, 1]} : vector<1x384xf32> to vector<1x128xf32>
    %140 = arith.subf %139, %138 : vector<1x128xf32>
    %141 = vector.extract_strided_slice %11 {offsets = [0, 128], sizes = [1, 128], strides = [1, 1]} : vector<1x384xf32> to vector<1x128xf32>
    %142 = arith.subf %141, %138 : vector<1x128xf32>
    %143 = vector.extract_strided_slice %11 {offsets = [0, 256], sizes = [1, 128], strides = [1, 1]} : vector<1x384xf32> to vector<1x128xf32>
    %144 = arith.subf %143, %138 : vector<1x128xf32>
    %145 = tpu.concatenate %112, %114, %116, %119, %121, %123, %126, %128, %130, %133, %135, %137, %140, %142, %144 in 1 : vector<1x128xf32>, vector<1x128xf32>, vector<1x128xf32>, vector<1x128xf32>, vector<1x128xf32>, vector<1x128xf32>, vector<1x128xf32>, vector<1x128xf32>, vector<1x128xf32>, vector<1x128xf32>, vector<1x128xf32>, vector<1x128xf32>, vector<1x128xf32>, vector<1x128xf32>, vector<1x128xf32> -> vector<1x1920xf32>
    %146 = vector.broadcast %1 : vector<32x1xf32> to vector<32x1920xf32>
    %147 = vector.broadcast %145 : vector<1x1920xf32> to vector<32x1920xf32>
    %148 = arith.mulf %146, %147 : vector<32x1920xf32>
    %149 = vector.broadcast %2 : vector<32x1xf32> to vector<32x1920xf32>
    %150 = arith.addf %148, %149 : vector<32x1920xf32>
    %cst_36 = arith.constant dense<0.000000e+00> : vector<32xf32>
    %151 = vector.multi_reduction <add>, %150, %cst_36 [1] : vector<32x1920xf32> to vector<32xf32>
    %152 = vector.shape_cast %151 : vector<32xf32> to vector<32x1xf32>
    %cst_37 = arith.constant 5.2083336E-4 : f32
    %153 = vector.broadcast %cst_37 : f32 to vector<32x1xf32>
    %154 = arith.mulf %152, %153 : vector<32x1xf32>
    %155 = arith.mulf %150, %150 : vector<32x1920xf32>
    %cst_38 = arith.constant dense<0.000000e+00> : vector<32xf32>
    %156 = vector.multi_reduction <add>, %155, %cst_38 [1] : vector<32x1920xf32> to vector<32xf32>
    %157 = vector.shape_cast %156 : vector<32xf32> to vector<32x1xf32>
    %cst_39 = arith.constant 5.2083336E-4 : f32
    %158 = vector.broadcast %cst_39 : f32 to vector<32x1xf32>
    %159 = arith.mulf %157, %158 : vector<32x1xf32>
    %160 = arith.mulf %154, %154 : vector<32x1xf32>
    %161 = arith.subf %159, %160 : vector<32x1xf32>
    %cst_40 = arith.constant 9.99999974E-6 : f32
    %162 = vector.broadcast %cst_40 : f32 to vector<32x1xf32>
    %163 = arith.addf %161, %162 : vector<32x1xf32>
    %164 = math.rsqrt %163 : vector<32x1xf32>
    %165 = arith.mulf %3, %164 : vector<32x1xf32>
    %166 = vector.broadcast %165 : vector<32x1xf32> to vector<32x1920xf32>
    %167 = arith.mulf %150, %166 : vector<32x1920xf32>
    %168 = arith.mulf %154, %165 : vector<32x1xf32>
    %169 = arith.subf %4, %168 : vector<32x1xf32>
    %170 = vector.broadcast %169 : vector<32x1xf32> to vector<32x1920xf32>
    %171 = arith.addf %167, %170 : vector<32x1920xf32>
    %cst_41 = arith.constant 0.000000e+00 : f32
    %172 = vector.broadcast %cst_41 : f32 to vector<32x1920xf32>
    %173 = arith.maximumf %171, %172 : vector<32x1920xf32>
    %cst_42 = arith.constant dense<0.000000e+00> : vector<64x1920xf32>
    %174 = tpu.matmul %9, %173, %cst_42 {dimension_numbers = #tpu.dot_dimension_numbers<[1], [0], [0], [1], [0, 0, 1, 1], [], []>} : vector<64x32xf32>, vector<32x1920xf32>, vector<64x1920xf32> -> vector<64x1920xf32>
    %175 = vector.broadcast %6 : vector<64x1xf32> to vector<64x1920xf32>
    %176 = arith.addf %174, %175 : vector<64x1920xf32>
    %cst_43 = arith.constant dense<0.000000e+00> : vector<64xf32>
    %177 = vector.multi_reduction <add>, %176, %cst_43 [1] : vector<64x1920xf32> to vector<64xf32>
    %178 = vector.shape_cast %177 : vector<64xf32> to vector<64x1xf32>
    %cst_44 = arith.constant 5.2083336E-4 : f32
    %179 = vector.broadcast %cst_44 : f32 to vector<64x1xf32>
    %180 = arith.mulf %178, %179 : vector<64x1xf32>
    %181 = arith.mulf %176, %176 : vector<64x1920xf32>
    %cst_45 = arith.constant dense<0.000000e+00> : vector<64xf32>
    %182 = vector.multi_reduction <add>, %181, %cst_45 [1] : vector<64x1920xf32> to vector<64xf32>
    %183 = vector.shape_cast %182 : vector<64xf32> to vector<64x1xf32>
    %cst_46 = arith.constant 5.2083336E-4 : f32
    %184 = vector.broadcast %cst_46 : f32 to vector<64x1xf32>
    %185 = arith.mulf %183, %184 : vector<64x1xf32>
    %186 = arith.mulf %180, %180 : vector<64x1xf32>
    %187 = arith.subf %185, %186 : vector<64x1xf32>
    %cst_47 = arith.constant 9.99999974E-6 : f32
    %188 = vector.broadcast %cst_47 : f32 to vector<64x1xf32>
    %189 = arith.addf %187, %188 : vector<64x1xf32>
    %190 = math.rsqrt %189 : vector<64x1xf32>
    %191 = arith.mulf %7, %190 : vector<64x1xf32>
    %192 = arith.mulf %180, %191 : vector<64x1xf32>
    %193 = arith.subf %8, %192 : vector<64x1xf32>
    %194 = vector.extract_strided_slice %176 {offsets = [0, 0], sizes = [64, 128], strides = [1, 1]} : vector<64x1920xf32> to vector<64x128xf32>
    %195 = vector.broadcast %191 : vector<64x1xf32> to vector<64x128xf32>
    %196 = arith.mulf %194, %195 : vector<64x128xf32>
    %197 = vector.broadcast %193 : vector<64x1xf32> to vector<64x128xf32>
    %198 = arith.addf %196, %197 : vector<64x128xf32>
    %cst_48 = arith.constant 0.000000e+00 : f32
    %199 = vector.broadcast %cst_48 : f32 to vector<64x128xf32>
    %200 = arith.maximumf %198, %199 : vector<64x128xf32>
    %c0_49 = arith.constant 0 : index
    %c0_50 = arith.constant 0 : index
    %c0_51 = arith.constant 0 : index
    %201 = vector.load %arg6[%c0_49, %c0_50, %c0_51] : memref<15x64x128xf32, #tpu.memory_space<vmem>>, vector<1x64x128xf32>
    %202 = vector.shape_cast %201 : vector<1x64x128xf32> to vector<64x128xf32>
    %203 = vector.shape_cast %200 : vector<64x128xf32> to vector<1x64x128xf32>
    tpu.vector_store %arg6[%c0_49, %c0_50, %c0_51], %203 {strides = array<i32>} : memref<15x64x128xf32, #tpu.memory_space<vmem>>, vector<1x64x128xf32>,
    %204 = vector.extract_strided_slice %176 {offsets = [0, 128], sizes = [64, 128], strides = [1, 1]} : vector<64x1920xf32> to vector<64x128xf32>
    %205 = vector.broadcast %191 : vector<64x1xf32> to vector<64x128xf32>
    %206 = arith.mulf %204, %205 : vector<64x128xf32>
    %207 = vector.broadcast %193 : vector<64x1xf32> to vector<64x128xf32>
    %208 = arith.addf %206, %207 : vector<64x128xf32>
    %cst_52 = arith.constant 0.000000e+00 : f32
    %209 = vector.broadcast %cst_52 : f32 to vector<64x128xf32>
    %210 = arith.maximumf %208, %209 : vector<64x128xf32>
    %c1_53 = arith.constant 1 : index
    %c0_54 = arith.constant 0 : index
    %c0_55 = arith.constant 0 : index
    %211 = vector.load %arg6[%c1_53, %c0_54, %c0_55] : memref<15x64x128xf32, #tpu.memory_space<vmem>>, vector<1x64x128xf32>
    %212 = vector.shape_cast %211 : vector<1x64x128xf32> to vector<64x128xf32>
    %213 = vector.shape_cast %210 : vector<64x128xf32> to vector<1x64x128xf32>
    tpu.vector_store %arg6[%c1_53, %c0_54, %c0_55], %213 {strides = array<i32>} : memref<15x64x128xf32, #tpu.memory_space<vmem>>, vector<1x64x128xf32>,
    %214 = vector.extract_strided_slice %176 {offsets = [0, 256], sizes = [64, 128], strides = [1, 1]} : vector<64x1920xf32> to vector<64x128xf32>
    %215 = vector.broadcast %191 : vector<64x1xf32> to vector<64x128xf32>
    %216 = arith.mulf %214, %215 : vector<64x128xf32>
    %217 = vector.broadcast %193 : vector<64x1xf32> to vector<64x128xf32>
    %218 = arith.addf %216, %217 : vector<64x128xf32>
    %cst_56 = arith.constant 0.000000e+00 : f32
    %219 = vector.broadcast %cst_56 : f32 to vector<64x128xf32>
    %220 = arith.maximumf %218, %219 : vector<64x128xf32>
    %c2_57 = arith.constant 2 : index
    %c0_58 = arith.constant 0 : index
    %c0_59 = arith.constant 0 : index
    %221 = vector.load %arg6[%c2_57, %c0_58, %c0_59] : memref<15x64x128xf32, #tpu.memory_space<vmem>>, vector<1x64x128xf32>
    %222 = vector.shape_cast %221 : vector<1x64x128xf32> to vector<64x128xf32>
    %223 = vector.shape_cast %220 : vector<64x128xf32> to vector<1x64x128xf32>
    tpu.vector_store %arg6[%c2_57, %c0_58, %c0_59], %223 {strides = array<i32>} : memref<15x64x128xf32, #tpu.memory_space<vmem>>, vector<1x64x128xf32>,
    %224 = vector.extract_strided_slice %176 {offsets = [0, 384], sizes = [64, 128], strides = [1, 1]} : vector<64x1920xf32> to vector<64x128xf32>
    %225 = vector.broadcast %191 : vector<64x1xf32> to vector<64x128xf32>
    %226 = arith.mulf %224, %225 : vector<64x128xf32>
    %227 = vector.broadcast %193 : vector<64x1xf32> to vector<64x128xf32>
    %228 = arith.addf %226, %227 : vector<64x128xf32>
    %cst_60 = arith.constant 0.000000e+00 : f32
    %229 = vector.broadcast %cst_60 : f32 to vector<64x128xf32>
    %230 = arith.maximumf %228, %229 : vector<64x128xf32>
    %c3_61 = arith.constant 3 : index
    %c0_62 = arith.constant 0 : index
    %c0_63 = arith.constant 0 : index
    %231 = vector.load %arg6[%c3_61, %c0_62, %c0_63] : memref<15x64x128xf32, #tpu.memory_space<vmem>>, vector<1x64x128xf32>
    %232 = vector.shape_cast %231 : vector<1x64x128xf32> to vector<64x128xf32>
    %233 = vector.shape_cast %230 : vector<64x128xf32> to vector<1x64x128xf32>
    tpu.vector_store %arg6[%c3_61, %c0_62, %c0_63], %233 {strides = array<i32>} : memref<15x64x128xf32, #tpu.memory_space<vmem>>, vector<1x64x128xf32>,
    %234 = vector.extract_strided_slice %176 {offsets = [0, 512], sizes = [64, 128], strides = [1, 1]} : vector<64x1920xf32> to vector<64x128xf32>
    %235 = vector.broadcast %191 : vector<64x1xf32> to vector<64x128xf32>
    %236 = arith.mulf %234, %235 : vector<64x128xf32>
    %237 = vector.broadcast %193 : vector<64x1xf32> to vector<64x128xf32>
    %238 = arith.addf %236, %237 : vector<64x128xf32>
    %cst_64 = arith.constant 0.000000e+00 : f32
    %239 = vector.broadcast %cst_64 : f32 to vector<64x128xf32>
    %240 = arith.maximumf %238, %239 : vector<64x128xf32>
    %c4_65 = arith.constant 4 : index
    %c0_66 = arith.constant 0 : index
    %c0_67 = arith.constant 0 : index
    %241 = vector.load %arg6[%c4_65, %c0_66, %c0_67] : memref<15x64x128xf32, #tpu.memory_space<vmem>>, vector<1x64x128xf32>
    %242 = vector.shape_cast %241 : vector<1x64x128xf32> to vector<64x128xf32>
    %243 = vector.shape_cast %240 : vector<64x128xf32> to vector<1x64x128xf32>
    tpu.vector_store %arg6[%c4_65, %c0_66, %c0_67], %243 {strides = array<i32>} : memref<15x64x128xf32, #tpu.memory_space<vmem>>, vector<1x64x128xf32>,
    %244 = vector.extract_strided_slice %176 {offsets = [0, 640], sizes = [64, 128], strides = [1, 1]} : vector<64x1920xf32> to vector<64x128xf32>
    %245 = vector.broadcast %191 : vector<64x1xf32> to vector<64x128xf32>
    %246 = arith.mulf %244, %245 : vector<64x128xf32>
    %247 = vector.broadcast %193 : vector<64x1xf32> to vector<64x128xf32>
    %248 = arith.addf %246, %247 : vector<64x128xf32>
    %cst_68 = arith.constant 0.000000e+00 : f32
    %249 = vector.broadcast %cst_68 : f32 to vector<64x128xf32>
    %250 = arith.maximumf %248, %249 : vector<64x128xf32>
    %c5 = arith.constant 5 : index
    %c0_69 = arith.constant 0 : index
    %c0_70 = arith.constant 0 : index
    %251 = vector.load %arg6[%c5, %c0_69, %c0_70] : memref<15x64x128xf32, #tpu.memory_space<vmem>>, vector<1x64x128xf32>
    %252 = vector.shape_cast %251 : vector<1x64x128xf32> to vector<64x128xf32>
    %253 = vector.shape_cast %250 : vector<64x128xf32> to vector<1x64x128xf32>
    tpu.vector_store %arg6[%c5, %c0_69, %c0_70], %253 {strides = array<i32>} : memref<15x64x128xf32, #tpu.memory_space<vmem>>, vector<1x64x128xf32>,
    %254 = vector.extract_strided_slice %176 {offsets = [0, 768], sizes = [64, 128], strides = [1, 1]} : vector<64x1920xf32> to vector<64x128xf32>
    %255 = vector.broadcast %191 : vector<64x1xf32> to vector<64x128xf32>
    %256 = arith.mulf %254, %255 : vector<64x128xf32>
    %257 = vector.broadcast %193 : vector<64x1xf32> to vector<64x128xf32>
    %258 = arith.addf %256, %257 : vector<64x128xf32>
    %cst_71 = arith.constant 0.000000e+00 : f32
    %259 = vector.broadcast %cst_71 : f32 to vector<64x128xf32>
    %260 = arith.maximumf %258, %259 : vector<64x128xf32>
    %c6 = arith.constant 6 : index
    %c0_72 = arith.constant 0 : index
    %c0_73 = arith.constant 0 : index
    %261 = vector.load %arg6[%c6, %c0_72, %c0_73] : memref<15x64x128xf32, #tpu.memory_space<vmem>>, vector<1x64x128xf32>
    %262 = vector.shape_cast %261 : vector<1x64x128xf32> to vector<64x128xf32>
    %263 = vector.shape_cast %260 : vector<64x128xf32> to vector<1x64x128xf32>
    tpu.vector_store %arg6[%c6, %c0_72, %c0_73], %263 {strides = array<i32>} : memref<15x64x128xf32, #tpu.memory_space<vmem>>, vector<1x64x128xf32>,
    %264 = vector.extract_strided_slice %176 {offsets = [0, 896], sizes = [64, 128], strides = [1, 1]} : vector<64x1920xf32> to vector<64x128xf32>
    %265 = vector.broadcast %191 : vector<64x1xf32> to vector<64x128xf32>
    %266 = arith.mulf %264, %265 : vector<64x128xf32>
    %267 = vector.broadcast %193 : vector<64x1xf32> to vector<64x128xf32>
    %268 = arith.addf %266, %267 : vector<64x128xf32>
    %cst_74 = arith.constant 0.000000e+00 : f32
    %269 = vector.broadcast %cst_74 : f32 to vector<64x128xf32>
    %270 = arith.maximumf %268, %269 : vector<64x128xf32>
    %c7 = arith.constant 7 : index
    %c0_75 = arith.constant 0 : index
    %c0_76 = arith.constant 0 : index
    %271 = vector.load %arg6[%c7, %c0_75, %c0_76] : memref<15x64x128xf32, #tpu.memory_space<vmem>>, vector<1x64x128xf32>
    %272 = vector.shape_cast %271 : vector<1x64x128xf32> to vector<64x128xf32>
    %273 = vector.shape_cast %270 : vector<64x128xf32> to vector<1x64x128xf32>
    tpu.vector_store %arg6[%c7, %c0_75, %c0_76], %273 {strides = array<i32>} : memref<15x64x128xf32, #tpu.memory_space<vmem>>, vector<1x64x128xf32>,
    %274 = vector.extract_strided_slice %176 {offsets = [0, 1024], sizes = [64, 128], strides = [1, 1]} : vector<64x1920xf32> to vector<64x128xf32>
    %275 = vector.broadcast %191 : vector<64x1xf32> to vector<64x128xf32>
    %276 = arith.mulf %274, %275 : vector<64x128xf32>
    %277 = vector.broadcast %193 : vector<64x1xf32> to vector<64x128xf32>
    %278 = arith.addf %276, %277 : vector<64x128xf32>
    %cst_77 = arith.constant 0.000000e+00 : f32
    %279 = vector.broadcast %cst_77 : f32 to vector<64x128xf32>
    %280 = arith.maximumf %278, %279 : vector<64x128xf32>
    %c8 = arith.constant 8 : index
    %c0_78 = arith.constant 0 : index
    %c0_79 = arith.constant 0 : index
    %281 = vector.load %arg6[%c8, %c0_78, %c0_79] : memref<15x64x128xf32, #tpu.memory_space<vmem>>, vector<1x64x128xf32>
    %282 = vector.shape_cast %281 : vector<1x64x128xf32> to vector<64x128xf32>
    %283 = vector.shape_cast %280 : vector<64x128xf32> to vector<1x64x128xf32>
    tpu.vector_store %arg6[%c8, %c0_78, %c0_79], %283 {strides = array<i32>} : memref<15x64x128xf32, #tpu.memory_space<vmem>>, vector<1x64x128xf32>,
    %284 = vector.extract_strided_slice %176 {offsets = [0, 1152], sizes = [64, 128], strides = [1, 1]} : vector<64x1920xf32> to vector<64x128xf32>
    %285 = vector.broadcast %191 : vector<64x1xf32> to vector<64x128xf32>
    %286 = arith.mulf %284, %285 : vector<64x128xf32>
    %287 = vector.broadcast %193 : vector<64x1xf32> to vector<64x128xf32>
    %288 = arith.addf %286, %287 : vector<64x128xf32>
    %cst_80 = arith.constant 0.000000e+00 : f32
    %289 = vector.broadcast %cst_80 : f32 to vector<64x128xf32>
    %290 = arith.maximumf %288, %289 : vector<64x128xf32>
    %c9 = arith.constant 9 : index
    %c0_81 = arith.constant 0 : index
    %c0_82 = arith.constant 0 : index
    %291 = vector.load %arg6[%c9, %c0_81, %c0_82] : memref<15x64x128xf32, #tpu.memory_space<vmem>>, vector<1x64x128xf32>
    %292 = vector.shape_cast %291 : vector<1x64x128xf32> to vector<64x128xf32>
    %293 = vector.shape_cast %290 : vector<64x128xf32> to vector<1x64x128xf32>
    tpu.vector_store %arg6[%c9, %c0_81, %c0_82], %293 {strides = array<i32>} : memref<15x64x128xf32, #tpu.memory_space<vmem>>, vector<1x64x128xf32>,
    %294 = vector.extract_strided_slice %176 {offsets = [0, 1280], sizes = [64, 128], strides = [1, 1]} : vector<64x1920xf32> to vector<64x128xf32>
    %295 = vector.broadcast %191 : vector<64x1xf32> to vector<64x128xf32>
    %296 = arith.mulf %294, %295 : vector<64x128xf32>
    %297 = vector.broadcast %193 : vector<64x1xf32> to vector<64x128xf32>
    %298 = arith.addf %296, %297 : vector<64x128xf32>
    %cst_83 = arith.constant 0.000000e+00 : f32
    %299 = vector.broadcast %cst_83 : f32 to vector<64x128xf32>
    %300 = arith.maximumf %298, %299 : vector<64x128xf32>
    %c10 = arith.constant 10 : index
    %c0_84 = arith.constant 0 : index
    %c0_85 = arith.constant 0 : index
    %301 = vector.load %arg6[%c10, %c0_84, %c0_85] : memref<15x64x128xf32, #tpu.memory_space<vmem>>, vector<1x64x128xf32>
    %302 = vector.shape_cast %301 : vector<1x64x128xf32> to vector<64x128xf32>
    %303 = vector.shape_cast %300 : vector<64x128xf32> to vector<1x64x128xf32>
    tpu.vector_store %arg6[%c10, %c0_84, %c0_85], %303 {strides = array<i32>} : memref<15x64x128xf32, #tpu.memory_space<vmem>>, vector<1x64x128xf32>,
    %304 = vector.extract_strided_slice %176 {offsets = [0, 1408], sizes = [64, 128], strides = [1, 1]} : vector<64x1920xf32> to vector<64x128xf32>
    %305 = vector.broadcast %191 : vector<64x1xf32> to vector<64x128xf32>
    %306 = arith.mulf %304, %305 : vector<64x128xf32>
    %307 = vector.broadcast %193 : vector<64x1xf32> to vector<64x128xf32>
    %308 = arith.addf %306, %307 : vector<64x128xf32>
    %cst_86 = arith.constant 0.000000e+00 : f32
    %309 = vector.broadcast %cst_86 : f32 to vector<64x128xf32>
    %310 = arith.maximumf %308, %309 : vector<64x128xf32>
    %c11 = arith.constant 11 : index
    %c0_87 = arith.constant 0 : index
    %c0_88 = arith.constant 0 : index
    %311 = vector.load %arg6[%c11, %c0_87, %c0_88] : memref<15x64x128xf32, #tpu.memory_space<vmem>>, vector<1x64x128xf32>
    %312 = vector.shape_cast %311 : vector<1x64x128xf32> to vector<64x128xf32>
    %313 = vector.shape_cast %310 : vector<64x128xf32> to vector<1x64x128xf32>
    tpu.vector_store %arg6[%c11, %c0_87, %c0_88], %313 {strides = array<i32>} : memref<15x64x128xf32, #tpu.memory_space<vmem>>, vector<1x64x128xf32>,
    %314 = vector.extract_strided_slice %176 {offsets = [0, 1536], sizes = [64, 128], strides = [1, 1]} : vector<64x1920xf32> to vector<64x128xf32>
    %315 = vector.broadcast %191 : vector<64x1xf32> to vector<64x128xf32>
    %316 = arith.mulf %314, %315 : vector<64x128xf32>
    %317 = vector.broadcast %193 : vector<64x1xf32> to vector<64x128xf32>
    %318 = arith.addf %316, %317 : vector<64x128xf32>
    %cst_89 = arith.constant 0.000000e+00 : f32
    %319 = vector.broadcast %cst_89 : f32 to vector<64x128xf32>
    %320 = arith.maximumf %318, %319 : vector<64x128xf32>
    %c12 = arith.constant 12 : index
    %c0_90 = arith.constant 0 : index
    %c0_91 = arith.constant 0 : index
    %321 = vector.load %arg6[%c12, %c0_90, %c0_91] : memref<15x64x128xf32, #tpu.memory_space<vmem>>, vector<1x64x128xf32>
    %322 = vector.shape_cast %321 : vector<1x64x128xf32> to vector<64x128xf32>
    %323 = vector.shape_cast %320 : vector<64x128xf32> to vector<1x64x128xf32>
    tpu.vector_store %arg6[%c12, %c0_90, %c0_91], %323 {strides = array<i32>} : memref<15x64x128xf32, #tpu.memory_space<vmem>>, vector<1x64x128xf32>,
    %324 = vector.extract_strided_slice %176 {offsets = [0, 1664], sizes = [64, 128], strides = [1, 1]} : vector<64x1920xf32> to vector<64x128xf32>
    %325 = vector.broadcast %191 : vector<64x1xf32> to vector<64x128xf32>
    %326 = arith.mulf %324, %325 : vector<64x128xf32>
    %327 = vector.broadcast %193 : vector<64x1xf32> to vector<64x128xf32>
    %328 = arith.addf %326, %327 : vector<64x128xf32>
    %cst_92 = arith.constant 0.000000e+00 : f32
    %329 = vector.broadcast %cst_92 : f32 to vector<64x128xf32>
    %330 = arith.maximumf %328, %329 : vector<64x128xf32>
    %c13 = arith.constant 13 : index
    %c0_93 = arith.constant 0 : index
    %c0_94 = arith.constant 0 : index
    %331 = vector.load %arg6[%c13, %c0_93, %c0_94] : memref<15x64x128xf32, #tpu.memory_space<vmem>>, vector<1x64x128xf32>
    %332 = vector.shape_cast %331 : vector<1x64x128xf32> to vector<64x128xf32>
    %333 = vector.shape_cast %330 : vector<64x128xf32> to vector<1x64x128xf32>
    tpu.vector_store %arg6[%c13, %c0_93, %c0_94], %333 {strides = array<i32>} : memref<15x64x128xf32, #tpu.memory_space<vmem>>, vector<1x64x128xf32>,
    %334 = vector.extract_strided_slice %176 {offsets = [0, 1792], sizes = [64, 128], strides = [1, 1]} : vector<64x1920xf32> to vector<64x128xf32>
    %335 = vector.broadcast %191 : vector<64x1xf32> to vector<64x128xf32>
    %336 = arith.mulf %334, %335 : vector<64x128xf32>
    %337 = vector.broadcast %193 : vector<64x1xf32> to vector<64x128xf32>
    %338 = arith.addf %336, %337 : vector<64x128xf32>
    %cst_95 = arith.constant 0.000000e+00 : f32
    %339 = vector.broadcast %cst_95 : f32 to vector<64x128xf32>
    %340 = arith.maximumf %338, %339 : vector<64x128xf32>
    %c14 = arith.constant 14 : index
    %c0_96 = arith.constant 0 : index
    %c0_97 = arith.constant 0 : index
    %341 = vector.load %arg6[%c14, %c0_96, %c0_97] : memref<15x64x128xf32, #tpu.memory_space<vmem>>, vector<1x64x128xf32>
    %342 = vector.shape_cast %341 : vector<1x64x128xf32> to vector<64x128xf32>
    %343 = vector.shape_cast %340 : vector<64x128xf32> to vector<1x64x128xf32>
    tpu.vector_store %arg6[%c14, %c0_96, %c0_97], %343 {strides = array<i32>} : memref<15x64x128xf32, #tpu.memory_space<vmem>>, vector<1x64x128xf32>,
    return
  }
}

</mosaic_0001>

<bundles_post_ra>
// kernel: encoder_forward.1
= control target key start
LH: loop header
LB: loop body
LE: loop exit
PB: predicated region body
PF: predicated region fallthrough
CT: control target
= control target key end

     0   :  { %v8350_v0 = vmov 1   ;;  %v8352_v1 = vmov 0   ;;  %v65_v6 = vlaneseq  ;;  %s4346_s9 = smov 1   ;;  %vm406_vm0 = vcmask 261120   ;;  %s8343_s2 = inlined_call_operand.vmem [shape: f32[32,4], index: 2, kind: input, shape index: {}]   ;;  %s8344_s0 = inlined_call_operand.vmem [shape: f32[1,640], index: 0, kind: input, shape index: {}]   ;;  %s8345_s1 = inlined_call_operand.vmem [shape: f32[1,384], index: 1, kind: input, shape index: {}]   ;;  %s8346_s3 = inlined_call_operand.vmem [shape: f32[64,32], index: 3, kind: input, shape index: {}]   ;;  %s8347_s4 = inlined_call_operand.vmem [shape: f32[64,4], index: 4, kind: input, shape index: {}]   ;;  %s8348_s5 = inlined_call_operand.vmem [shape: f32[5,64,128], index: 5, kind: output, shape index: {0}]   ;;  %s8349_s6 = inlined_call_operand.vmem [shape: f32[15,64,128], index: 6, kind: output, shape index: {1}]  }
   0x1   :  { %4263 = vset.pattern.permute.xlu1 %v8350_v0  ;;  %4262 = vset.pattern.permute.xlu0 %v8352_v1  ;;  %v22_v2 = vld [vmem:[%s8343_s2] sm:$0xff]  ;;  %v4392_v3 = vld [vmem:[%s8343_s2 + $0x8] sm:$0xff]  ;;  %v24_v4 = vld [vmem:[%s8343_s2 + $0x10] sm:$0xff] }
   0x2   :  { %111 = vperm.xlu1 %4263, %v22_v2   ;;  %46 = vperm.xlu0 %4262, %v22_v2   ;;  %8567 = vst [vmem:[#allocation2_spill] sm:$0xff] %v4392_v3  ;;  %v25_v5 = vld [vmem:[%s8343_s2 + $0x18] sm:$0xff]  ;;  %v66_v7 = vshrl.u32 %v65_v6, 7  ;;  %v42_v8 = vld [vmem:[%s8344_s0] sm:$0x1f] }
   0x3   :  { %v4413_v12 = vld [vmem:[%s8345_s1] sm:$0x7]  ;;  %v4421_v17 = vrot.slane %v42_v8, 1  ;;  %v4428_v22 = vrot.slane %v42_v8, 2  ;;  %v4463_v41 = vrot.slane %v42_v8, 3  ;;  %v4465_v42 = vrot.slane %v42_v8, 4 }
   0x4   :  { %v4408_v9 = vsub.s32 0, %v66_v7  ;;  %v71_v10 = vsub.s32 1, %v66_v7  ;;  %v75_v11 = vsub.s32 2, %v66_v7  ;;  %v79_v13 = vsub.s32 3, %v66_v7 }
   0x5   :  { %v83_v14 = vsub.s32 4, %v66_v7  ;;  %v4416_v15 = vrot.slane %v4413_v12, 1  ;;  %v4419_v16 = vrot.slane %v4413_v12, 2  ;;  %v1246_v24 = vsub.f32 %v4413_v12, %v42_v8 }
   0x6   :  { %115 = vperm.xlu1 %4263, %v4392_v3   ;;  %51 = vperm.xlu0 %4262, %v4392_v3   ;;  %v68_v18 = vrot.slane %v42_v8, %v4408_v9  ;;  %v72_v19 = vrot.slane %v42_v8, %v71_v10  ;;  %v4424_v20 = vrot.slane %v42_v8, %v75_v11 }
   0x7   :  { %v4426_v21 = vrot.slane %v42_v8, %v79_v13  ;;  %v4430_v23 = vrot.slane %v42_v8, %v83_v14  ;;  %v1250_v27 = vsub.f32 %v4416_v15, %v42_v8  ;;  %v1253_v28 = vsub.f32 %v4419_v16, %v42_v8 }
   0x8   :  { %v1256_v29 = vsub.f32 %v4413_v12, %v4421_v17  ;;  %v1257_v30 = vsub.f32 %v4416_v15, %v4421_v17  ;;  %v1258_v34 = vsub.f32 %v4419_v16, %v4421_v17  ;;  %v4475_v46 = vrot.slane %v1246_v24, %v4408_v9 }
   0x9   :  { %v4478_v47 = vrot.slane %v1250_v27, %v4408_v9  ;;  %v4496_v56 = vrot.slane %v1253_v28, %v4408_v9 }
   0xa   :  { %4264 = vset.pattern.permute.xlu1 %v8352_v1  ;;  %56 = vperm.xlu0 %4262, %v24_v4  }
   0xb   :  { %61 = vperm.xlu1 %4264, %v25_v5  }
   0xe   :  { %4265 = vset.pattern.permute.xlu0 %v8350_v0 }
   0xf   :  { %4266 = vset.pattern.permute.xlu1 %v8350_v0  ;;  %119 = vperm.xlu0 %4265, %v24_v4  }
  0x10   :  { %123 = vperm.xlu1 %4266, %v25_v5  }
  0x81   :  { %v4433_v25 = vpop.permute.xlu1 %111  ;;  %v4435_v26 = vpop.permute.xlu0 %46 }
  0x82   :  { %v90_v31 = vmul.f32 %v68_v18, %v4435_v26  ;;  %v91_v32 = vmul.f32 %v72_v19, %v4435_v26  ;;  %v92_v33 = vmul.f32 %v4424_v20, %v4435_v26  ;;  %v93_v35 = vmul.f32 %v4426_v21, %v4435_v26 }
  0x83   :  { %v94_v44 = vmul.f32 %v4430_v23, %v4435_v26  ;;  %v4518_v4 = vmul.f32 %v4475_v46, %v4435_v26 }
  0x84   :  { %v4458_v39 = vadd.f32 %v4433_v25, %v90_v31  ;;  %v4461_v40 = vadd.f32 %v4433_v25, %v91_v32  ;;  %v4472_v45 = vadd.f32 %v4433_v25, %v92_v33  ;;  %v4489_v53 = vadd.f32 %v4433_v25, %v93_v35 }
  0x85   :  { %v4467_v43 = vpop.permute.xlu0 %51  ;;  %v4480_v48 = vpop.permute.xlu1 %115  ;;  %v4510_v62 = vadd.f32 %v4433_v25, %v94_v44 }
  0x86   :  { %8568 = vst [vmem:[#allocation3_spill] sm:$0xff] %v4458_v39  ;;  %8569 = vst [vmem:[#allocation4_spill] sm:$0xff] %v4461_v40  ;;  %v146_v49 = vadd.f32 %v4461_v40, %v4458_v39  ;;  %v95_v50 = vmul.f32 %v68_v18, %v4467_v43  ;;  %v96_v51 = vmul.f32 %v72_v19, %v4467_v43 }
  0x87   :  { %8570 = vst [vmem:[#allocation5_spill] sm:$0xff] %v4472_v45  ;;  %v97_v52 = vmul.f32 %v4424_v20, %v4467_v43  ;;  %8571 = vst [vmem:[#allocation6_spill] sm:$0xff] %v4489_v53  ;;  %v98_v54 = vmul.f32 %v4426_v21, %v4467_v43  ;;  %v99_v55 = vmul.f32 %v4430_v23, %v4467_v43 }
  0x88   :  { %v147_v57 = vadd.f32 %v146_v49, %v4472_v45  ;;  %v4500_v58 = vadd.f32 %v4480_v48, %v95_v50  ;;  %v4503_v59 = vadd.f32 %v4480_v48, %v96_v51  ;;  %8574 = vst [vmem:[#allocation9_spill] sm:$0xff] %v4510_v62  ;;  %v174_v63 = vmul.f32 %v4458_v39, %v4458_v39 }
  0x89   :  { %v4507_v61 = vpop.permute.xlu0 %56  ;;  %v4524_v7 = vadd.f32 %v4480_v48, %v97_v52  ;;  %v175_v10 = vmul.f32 %v4461_v40, %v4461_v40  ;;  %v4531_v11 = vadd.f32 %v4480_v48, %v98_v54  ;;  %v4534_v13 = vadd.f32 %v4480_v48, %v99_v55 }
  0x8a   :  { %8572 = vst [vmem:[#allocation7_spill] sm:$0xff] %v4500_v58  ;;  %8573 = vst [vmem:[#allocation8_spill] sm:$0xff] %v4503_v59  ;;  %v4520_v5 = vpop.permute.xlu1 %61  ;;  %v148_v6 = vadd.f32 %v147_v57, %v4489_v53  ;;  %v152_v8 = vadd.f32 %v4503_v59, %v4500_v58  ;;  %v176_v14 = vmul.f32 %v4472_v45, %v4472_v45 }
  0x8b   :  { %8575 = vst [vmem:[#allocation10_spill] sm:$0xff] %v4524_v7  ;;  %8576 = vst [vmem:[#allocation11_spill] sm:$0xff] %v4531_v11  ;;  %v177_v24 = vmul.f32 %v4489_v53, %v4489_v53  ;;  %v105_v31 = vmul.f32 %v68_v18, %v4520_v5  ;;  %v106_v32 = vmul.f32 %v72_v19, %v4520_v5 }
  0x8c   :  { %8577 = vst [vmem:[#allocation12_spill] sm:$0xff] %v4534_v13  ;;  %v149_v27 = vadd.f32 %v148_v6, %v4510_v62  ;;  %v153_v28 = vadd.f32 %v152_v8, %v4524_v7  ;;  %v100_v33 = vmul.f32 %v68_v18, %v4507_v61  ;;  %v101_v35 = vmul.f32 %v72_v19, %v4507_v61 }
  0x8d   :  { %v102_v44 = vmul.f32 %v4424_v20, %v4507_v61  ;;  %v103_v49 = vmul.f32 %v4426_v21, %v4507_v61  ;;  %v107_v52 = vmul.f32 %v4424_v20, %v4520_v5  ;;  %v108_v54 = vmul.f32 %v4426_v21, %v4520_v5 }
  0x8e   :  { %v4550_v50 = vpop.permute.xlu0 %119  ;;  %150 = vadd.xlane.f32.xlu1 %v149_v27  ;;  %v154_v51 = vadd.f32 %v153_v28, %v4531_v11  ;;  %v194_v18 = vadd.f32 %v175_v10, %v174_v63  ;;  %v179_v6 = vmul.f32 %v4500_v58, %v4500_v58  ;;  %v180_v8 = vmul.f32 %v4503_v59, %v4503_v59 }
  0x8f   :  { %v4557_v55 = vpop.permute.xlu1 %123  ;;  %v4560_v19 = vadd.f32 %v4550_v50, %v100_v33  ;;  %v4563_v57 = vadd.f32 %v4550_v50, %v101_v35  ;;  %v109_v21 = vmul.f32 %v4430_v23, %v4520_v5  ;;  %v104_v27 = vmul.f32 %v4430_v23, %v4507_v61 }
  0x90   :  { %v155_v20 = vadd.f32 %v154_v51, %v4534_v13  ;;  %v4573_v63 = vadd.f32 %v4557_v55, %v105_v31  ;;  %v4576_v10 = vadd.f32 %v4557_v55, %v106_v32  ;;  %v4581_v28 = vadd.f32 %v4550_v50, %v102_v44 }
  0x91   :  { %8578 = vst [vmem:[#allocation13_spill] sm:$0xff] %v4560_v19  ;;  %8579 = vst [vmem:[#allocation14_spill] sm:$0xff] %v4563_v57  ;;  %v158_v33 = vadd.f32 %v4563_v57, %v4560_v19  ;;  %v181_v35 = vmul.f32 %v4524_v7, %v4524_v7  ;;  %v4588_v51 = vadd.f32 %v4550_v50, %v103_v49 }
  0x92   :  { %8580 = vst [vmem:[#allocation15_spill] sm:$0xff] %v4573_v63  ;;  %8581 = vst [vmem:[#allocation16_spill] sm:$0xff] %v4576_v10  ;;  %156 = vadd.xlane.f32.xlu0 %v155_v20  ;;  %v4591_v31 = vadd.f32 %v4557_v55, %v107_v52  ;;  %v164_v32 = vadd.f32 %v4576_v10, %v4573_v63  ;;  %v195_v23 = vadd.f32 %v194_v18, %v176_v14 }
  0x93   :  { %8582 = vst [vmem:[#allocation17_spill] sm:$0xff] %v4581_v28  ;;  %8583 = vst [vmem:[#allocation18_spill] sm:$0xff] %v4588_v51  ;;  %v159_v44 = vadd.f32 %v158_v33, %v4581_v28  ;;  %v200_v0 = vadd.f32 %v180_v8, %v179_v6  ;;  %v184_v1 = vmul.f32 %v4560_v19, %v4560_v19 }
  0x94   :  { %8584 = vst [vmem:[#allocation19_spill] sm:$0xff] %v4591_v31  ;;  %v185_v2 = vmul.f32 %v4563_v57, %v4563_v57  ;;  %v4601_v20 = vadd.f32 %v4550_v50, %v104_v27  ;;  %v4604_v49 = vadd.f32 %v4557_v55, %v108_v54  ;;  %v4607_v52 = vadd.f32 %v4557_v55, %v109_v21 }
  0x95   :  { %v165_v14 = vadd.f32 %v164_v32, %v4591_v31  ;;  %v160_v18 = vadd.f32 %v159_v44, %v4588_v51  ;;  %v201_v6 = vadd.f32 %v200_v0, %v181_v35  ;;  %v186_v8 = vmul.f32 %v4581_v28, %v4581_v28 }
  0x96   :  { %8585 = vst [vmem:[#allocation20_spill] sm:$0xff] %v4601_v20  ;;  %8586 = vst [vmem:[#allocation21_spill] sm:$0xff] %v4604_v49  ;;  %v206_v33 = vadd.f32 %v185_v2, %v184_v1  ;;  %v182_v27 = vmul.f32 %v4531_v11, %v4531_v11  ;;  %v189_v54 = vmul.f32 %v4573_v63, %v4573_v63 }
  0x97   :  { %8587 = vst [vmem:[#allocation22_spill] sm:$0xff] %v4607_v52  ;;  %v166_v60 = vadd.f32 %v165_v14, %v4604_v49  ;;  %v190_v21 = vmul.f32 %v4576_v10, %v4576_v10  ;;  %v161_v32 = vadd.f32 %v160_v18, %v4601_v20  ;;  %v196_v38 = vadd.f32 %v195_v23, %v177_v24 }
  0x98   :  { %v207_v44 = vadd.f32 %v206_v33, %v186_v8  ;;  %v1335_v0 = vmul.f32 %v4478_v47, %v4435_v26  ;;  %v202_v2 = vadd.f32 %v201_v6, %v182_v27  ;;  %v191_v35 = vmul.f32 %v4591_v31, %v4591_v31 }
  0x99   :  { %v167_v1 = vadd.f32 %v166_v60, %v4607_v52  ;;  %v212_v14 = vadd.f32 %v190_v21, %v189_v54  ;;  %162 = vadd.xlane.f32.xlu0 %v161_v32  ;;  %v178_v37 = vmul.f32 %v4510_v62, %v4510_v62  ;;  %v187_v36 = vmul.f32 %v4588_v51, %v4588_v51 }
  0x9a   :  { %v1268_v24 = vsub.f32 %v4419_v16, %v4463_v41  ;;  %v4636_v60 = vrot.slane %v1256_v29, %v4408_v9  ;;  %v183_v23 = vmul.f32 %v4534_v13, %v4534_v13  ;;  %v192_v18 = vmul.f32 %v4604_v49, %v4604_v49 }
  0x9b   :  { %168 = vadd.xlane.f32.xlu1 %v167_v1  ;;  %v213_v6 = vadd.f32 %v212_v14, %v191_v35  ;;  %v1271_v8 = vsub.f32 %v4413_v12, %v4465_v42  ;;  %v197_v33 = vadd.f32 %v196_v38, %v178_v37  ;;  %v208_v27 = vadd.f32 %v207_v44, %v187_v36 }
  0x9c   :  { %v4648_v54 = vrot.slane %v1257_v30, %v4408_v9  ;;  %v1336_v29 = vmul.f32 %v4496_v56, %v4435_v26  ;;  %v203_v21 = vadd.f32 %v202_v2, %v183_v23  ;;  %v4654_v1 = vadd.f32 %v4518_v4, %v4433_v25 }
  0x9d   :  { %v214_v32 = vadd.f32 %v213_v6, %v192_v18  ;;  %v4657_v35 = vadd.f32 %v1335_v0, %v4433_v25  ;;  %198 = vadd.xlane.f32.xlu0 %v197_v33  ;;  %v188_v36 = vmul.f32 %v4601_v20, %v4601_v20  ;;  %v1272_v30 = vsub.f32 %v4416_v15, %v4465_v42 }
  0x9e   :  { %8588 = vst [vmem:[#allocation23_spill] sm:$0xff] %v4654_v1  ;;  %v1273_v37 = vsub.f32 %v4419_v16, %v4465_v42  ;;  %v4669_v38 = vrot.slane %v1258_v34, %v4408_v9  ;;  %v193_v4 = vmul.f32 %v4607_v52, %v4607_v52  ;;  %v8590_v44 = vsub.f32 %v4413_v12, %v4428_v22 }
  0x9f   :  { %8589 = vst [vmem:[#allocation24_spill] sm:$0xff] %v4657_v35  ;;  %204 = vadd.xlane.f32.xlu1 %v203_v21  ;;  %v8591_v42 = vsub.f32 %v4416_v15, %v4428_v22  ;;  %v1337_v17 = vmul.f32 %v4636_v60, %v4435_v26  ;;  %v209_v34 = vadd.f32 %v208_v27, %v188_v36 }
  0xa0   :  { %v4677_v0 = vrot.slane %v8590_v44, %v4408_v9  ;;  %v8592_v14 = vsub.f32 %v4419_v16, %v4428_v22  ;;  %v8593_v18 = vsub.f32 %v4413_v12, %v4463_v41  ;;  %v8594_v33 = vsub.f32 %v4416_v15, %v4463_v41 }
  0xa1   :  { %v4683_v2 = vrot.slane %v8591_v42, %v4408_v9  ;;  %v215_v44 = vadd.f32 %v214_v32, %v193_v4  ;;  %v1338_v27 = vmul.f32 %v4648_v54, %v4435_v26  ;;  %v4708_v16 = vadd.f32 %v1336_v29, %v4433_v25  ;;  %210 = vadd.xlane.f32.xlu0 %v209_v34 }
  0xa2   :  { %v4691_v23 = vrot.slane %v8592_v14, %v4408_v9  ;;  %v4697_v6 = vrot.slane %v8593_v18, %v4408_v9  ;;  %v4703_v21 = vrot.slane %v8594_v33, %v4408_v9  ;;  %v1454_v22 = vadd.f32 %v4657_v35, %v4654_v1 }
  0xa3   :  { %8595 = vst [vmem:[#allocation25_spill] sm:$0xff] %v4708_v16  ;;  %v4713_v12 = vrot.slane %v1268_v24, %v4408_v9  ;;  %v4716_v36 = vrot.slane %v1271_v8, %v4408_v9  ;;  %v1349_v15 = vmul.f32 %v4475_v46, %v4467_v43  ;;  %v1350_v41 = vmul.f32 %v4478_v47, %v4467_v43 }
  0xa4   :  { %216 = vadd.xlane.f32.xlu1 %v215_v44  ;;  %v4723_v29 = vrot.slane %v1272_v30, %v4408_v9  ;;  %v1339_v32 = vmul.f32 %v4669_v38, %v4435_v26  ;;  %v4728_v4 = vadd.f32 %v1337_v17, %v4433_v25  ;;  %v1455_v24 = vadd.f32 %v1454_v22, %v4708_v16 }
  0xa5   :  { %v4732_v8 = vrot.slane %v1273_v37, %v4408_v9  ;;  %v1340_v42 = vmul.f32 %v4677_v0, %v4435_v26  ;;  %v1341_v34 = vmul.f32 %v4683_v2, %v4435_v26  ;;  %v1342_v30 = vmul.f32 %v4691_v23, %v4435_v26 }
  0xa6   :  { %v1343_v14 = vmul.f32 %v4697_v6, %v4435_v26  ;;  %v1344_v17 = vmul.f32 %v4703_v21, %v4435_v26  ;;  %v4745_v18 = vadd.f32 %v1338_v27, %v4433_v25  ;;  %v1456_v9 = vadd.f32 %v1455_v24, %v4728_v4 }
  0xa7   :  { %v1345_v37 = vmul.f32 %v4713_v12, %v4435_v26  ;;  %v1351_v33 = vmul.f32 %v4496_v56, %v4467_v43  ;;  %v4753_v44 = vadd.f32 %v1349_v15, %v4480_v48  ;;  %v4756_v22 = vadd.f32 %v1350_v41, %v4480_v48 }
  0xa8   :  { %v1346_v20 = vmul.f32 %v4716_v36, %v4435_v26  ;;  %v1347_v27 = vmul.f32 %v4723_v29, %v4435_v26  ;;  %v4763_v24 = vadd.f32 %v1339_v32, %v4433_v25  ;;  %v1457_v28 = vadd.f32 %v1456_v9, %v4745_v18 }
  0xa9   :  { %8596 = vst [vmem:[#allocation26_spill] sm:$0xff] %v4753_v44  ;;  %v1348_v19 = vmul.f32 %v4732_v8, %v4435_v26  ;;  %v4769_v15 = vadd.f32 %v1340_v42, %v4433_v25  ;;  %v1352_v41 = vmul.f32 %v4636_v60, %v4467_v43  ;;  %v4774_v51 = vadd.f32 %v1341_v34, %v4433_v25 }
  0xaa   :  { %v4777_v57 = vadd.f32 %v1342_v30, %v4433_v25  ;;  %v4780_v32 = vadd.f32 %v1343_v14, %v4433_v25  ;;  %v1458_v9 = vadd.f32 %v1457_v28, %v4763_v24  ;;  %v4784_v13 = vadd.f32 %v1344_v17, %v4433_v25 }
  0xab   :  { %8597 = vst [vmem:[#allocation27_spill] sm:$0xff] %v4769_v15  ;;  %8598 = vst [vmem:[#allocation28_spill] sm:$0xff] %v4774_v51  ;;  %v1353_v26 = vmul.f32 %v4648_v54, %v4467_v43  ;;  %v4789_v42 = vadd.f32 %v1351_v33, %v4480_v48  ;;  %v1470_v34 = vadd.f32 %v4756_v22, %v4753_v44 }
  0xac   :  { %8599 = vst [vmem:[#allocation29_spill] sm:$0xff] %v4777_v57  ;;  %8600 = vst [vmem:[#allocation30_spill] sm:$0xff] %v4780_v32  ;;  %v4794_v30 = vadd.f32 %v1345_v37, %v4433_v25  ;;  %v4797_v14 = vadd.f32 %v1346_v20, %v4433_v25  ;;  %v4800_v28 = vadd.f32 %v1347_v27, %v4433_v25 }
  0xad   :  { %8601 = vst [vmem:[#allocation31_spill] sm:$0xff] %v4784_v13  ;;  %v1459_v17 = vadd.f32 %v1458_v9, %v4769_v15  ;;  %v4804_v7 = vadd.f32 %v1348_v19, %v4433_v25  ;;  %v1354_v33 = vmul.f32 %v4669_v38, %v4467_v43  ;;  %v4809_v58 = vadd.f32 %v1352_v41, %v4480_v48 }
  0xae   :  { %8602 = vst [vmem:[#allocation32_spill] sm:$0xff] %v4794_v30  ;;  %8603 = vst [vmem:[#allocation33_spill] sm:$0xff] %v4797_v14  ;;  %v1471_v37 = vadd.f32 %v1470_v34, %v4789_v42  ;;  %v1355_v20 = vmul.f32 %v4677_v0, %v4467_v43  ;;  %v1356_v27 = vmul.f32 %v4683_v2, %v4467_v43 }
  0xaf   :  { %8604 = vst [vmem:[#allocation34_spill] sm:$0xff] %v4800_v28  ;;  %8605 = vst [vmem:[#allocation35_spill] sm:$0xff] %v4804_v7  ;;  %v1460_v11 = vadd.f32 %v1459_v17, %v4774_v51  ;;  %v1357_v25 = vmul.f32 %v4691_v23, %v4467_v43  ;;  %v4820_v19 = vadd.f32 %v1353_v26, %v4480_v48 }
  0xb0   :  { %v1472_v9 = vadd.f32 %v1471_v37, %v4809_v58  ;;  %v1364_v41 = vmul.f32 %v4475_v46, %v4507_v61  ;;  %v1365_v34 = vmul.f32 %v4478_v47, %v4507_v61  ;;  %v1358_v52 = vmul.f32 %v4697_v6, %v4467_v43 }
  0xb1   :  { %v1461_v17 = vadd.f32 %v1460_v11, %v4777_v57  ;;  %v1359_v31 = vmul.f32 %v4703_v21, %v4467_v43  ;;  %v1360_v26 = vmul.f32 %v4713_v12, %v4467_v43  ;;  %v4835_v63 = vadd.f32 %v1354_v33, %v4480_v48 }
  0xb2   :  { %v1473_v37 = vadd.f32 %v1472_v9, %v4820_v19  ;;  %v4839_v59 = vadd.f32 %v1364_v41, %v4550_v50  ;;  %v4842_v62 = vadd.f32 %v1365_v34, %v4550_v50  ;;  %v1361_v49 = vmul.f32 %v4716_v36, %v4467_v43 }
  0xb3   :  { %v1462_v11 = vadd.f32 %v1461_v17, %v4780_v32  ;;  %v1362_v10 = vmul.f32 %v4723_v29, %v4467_v43  ;;  %v1363_v33 = vmul.f32 %v4732_v8, %v4467_v43  ;;  %v4852_v45 = vadd.f32 %v1355_v20, %v4480_v48 }
  0xb4   :  { %v4855_v9 = vadd.f32 %v1356_v27, %v4480_v48  ;;  %v1474_v41 = vadd.f32 %v1473_v37, %v4835_v63  ;;  %v1366_v34 = vmul.f32 %v4496_v56, %v4507_v61  ;;  %v4862_v39 = vadd.f32 %v1357_v25, %v4480_v48 }
  0xb5   :  { %8606 = vst [vmem:[#allocation36_spill] sm:$0xff] %v4852_v45  ;;  %v1463_v17 = vadd.f32 %v1462_v11, %v4784_v13  ;;  %v4865_v53 = vadd.f32 %v1358_v52, %v4480_v48  ;;  %v4868_v43 = vadd.f32 %v1359_v31, %v4480_v48  ;;  %v1367_v27 = vmul.f32 %v4636_v60, %v4507_v61 }
  0xb6   :  { %8607 = vst [vmem:[#allocation37_spill] sm:$0xff] %v4855_v9  ;;  %8608 = vst [vmem:[#allocation38_spill] sm:$0xff] %v4862_v39  ;;  %v1475_v20 = vadd.f32 %v1474_v41, %v4852_v45  ;;  %v4874_v37 = vadd.f32 %v1366_v34, %v4550_v50  ;;  %v1486_v11 = vadd.f32 %v4842_v62, %v4839_v59 }
  0xb7   :  { %8609 = vst [vmem:[#allocation39_spill] sm:$0xff] %v4865_v53  ;;  %8610 = vst [vmem:[#allocation40_spill] sm:$0xff] %v4868_v43  ;;  %v1464_v25 = vadd.f32 %v1463_v17, %v4794_v30  ;;  %v4880_v40 = vadd.f32 %v1360_v26, %v4480_v48  ;;  %v4883_v52 = vadd.f32 %v1361_v49, %v4480_v48 }
  0xb8   :  { %8611 = vst [vmem:[#allocation41_spill] sm:$0xff] %v4874_v37  ;;  %v4886_v31 = vadd.f32 %v1362_v10, %v4480_v48  ;;  %v1476_v41 = vadd.f32 %v1475_v20, %v4855_v9  ;;  %v1368_v34 = vmul.f32 %v4648_v54, %v4507_v61  ;;  %v4892_v3 = vadd.f32 %v1367_v27, %v4550_v50 }
  0xb9   :  { %8612 = vst [vmem:[#allocation42_spill] sm:$0xff] %v4880_v40  ;;  %8613 = vst [vmem:[#allocation43_spill] sm:$0xff] %v4883_v52  ;;  %v1487_v45 = vadd.f32 %v1486_v11, %v4874_v37  ;;  %v1465_v17 = vadd.f32 %v1464_v25, %v4797_v14  ;;  %v4897_v26 = vadd.f32 %v1363_v33, %v4480_v48 }
  0xba   :  { %8614 = vst [vmem:[#allocation44_spill] sm:$0xff] %v4886_v31  ;;  %v1379_v49 = vmul.f32 %v4475_v46, %v4520_v5  ;;  %v1380_v10 = vmul.f32 %v4478_v47, %v4520_v5  ;;  %v1477_v20 = vadd.f32 %v1476_v41, %v4862_v39  ;;  %v1369_v30 = vmul.f32 %v4669_v38, %v4507_v61 }
  0xbb   :  { %8615 = vst [vmem:[#allocation45_spill] sm:$0xff] %v4897_v26  ;;  %v4907_v27 = vadd.f32 %v1368_v34, %v4550_v50  ;;  %v1488_v11 = vadd.f32 %v1487_v45, %v4892_v3  ;;  %v1466_v25 = vadd.f32 %v1465_v17, %v4800_v28  ;;  %v1370_v48 = vmul.f32 %v4677_v0, %v4507_v61 }
  0xbc   :  { %v1371_v46 = vmul.f32 %v4683_v2, %v4507_v61  ;;  %v1372_v47 = vmul.f32 %v4691_v23, %v4507_v61  ;;  %v1478_v33 = vadd.f32 %v1477_v20, %v4865_v53  ;;  %v1373_v41 = vmul.f32 %v4697_v6, %v4507_v61 }
  0xbd   :  { %8616 = vst [vmem:[#allocation46_spill] sm:$0xff] %v4907_v27  ;;  %v4921_v34 = vadd.f32 %v1369_v30, %v4550_v50  ;;  %v1489_v45 = vadd.f32 %v1488_v11, %v4907_v27  ;;  %v1467_v17 = vadd.f32 %v1466_v25, %v4804_v7  ;;  %v1381_v28 = vmul.f32 %v4496_v56, %v4520_v5 }
  0xbe   :  { %v4928_v39 = vadd.f32 %v1379_v49, %v4557_v55  ;;  %v4931_v14 = vadd.f32 %v1380_v10, %v4557_v55  ;;  %v1479_v20 = vadd.f32 %v1478_v33, %v4868_v43  ;;  %v1374_v53 = vmul.f32 %v4703_v21, %v4507_v61 }
  0xbf   :  { %8617 = vst [vmem:[#allocation47_spill] sm:$0xff] %v4921_v34  ;;  %v4937_v30 = vadd.f32 %v1370_v48, %v4550_v50  ;;  %v1490_v11 = vadd.f32 %v1489_v45, %v4921_v34  ;;  %1468 = vadd.xlane.f32.xlu0 %v1467_v17  ;;  %v1375_v56 = vmul.f32 %v4713_v12, %v4507_v61 }
  0xc0   :  { %v1376_v49 = vmul.f32 %v4716_v36, %v4507_v61  ;;  %v1377_v10 = vmul.f32 %v4723_v29, %v4507_v61  ;;  %v1382_v25 = vmul.f32 %v4636_v60, %v4520_v5  ;;  %v1480_v33 = vadd.f32 %v1479_v20, %v4880_v40 }
  0xc1   :  { %v1378_v48 = vmul.f32 %v4732_v8, %v4507_v61  ;;  %v4952_v45 = vadd.f32 %v1371_v46, %v4550_v50  ;;  %v1491_v17 = vadd.f32 %v1490_v11, %v4937_v30  ;;  %v4956_v7 = vadd.f32 %v1372_v47, %v4550_v50 }
  0xc2   :  { %v1383_v43 = vmul.f32 %v4648_v54, %v4520_v5  ;;  %v4961_v34 = vadd.f32 %v1381_v28, %v4557_v55  ;;  %v1502_v60 = vadd.f32 %v4931_v14, %v4928_v39  ;;  %v1481_v20 = vadd.f32 %v1480_v33, %v4883_v52 }
  0xc3   :  { %8618 = vst [vmem:[#allocation48_spill] sm:$0xff] %v4956_v7  ;;  %v4967_v61 = vadd.f32 %v1373_v41, %v4550_v50  ;;  %v4970_v46 = vadd.f32 %v1374_v53, %v4550_v50  ;;  %v1492_v47 = vadd.f32 %v1491_v17, %v4952_v45  ;;  %v4974_v11 = vadd.f32 %v1375_v56, %v4550_v50 }
  0xc4   :  { %v1384_v54 = vmul.f32 %v4669_v38, %v4520_v5  ;;  %v4979_v28 = vadd.f32 %v1382_v25, %v4557_v55  ;;  %v1503_v40 = vadd.f32 %v1502_v60, %v4961_v34  ;;  %v1482_v33 = vadd.f32 %v1481_v20, %v4886_v31 }
  0xc5   :  { %8619 = vst [vmem:[#allocation49_spill] sm:$0xff] %v4967_v61  ;;  %8620 = vst [vmem:[#allocation50_spill] sm:$0xff] %v4970_v46  ;;  %v1493_v41 = vadd.f32 %v1492_v47, %v4956_v7  ;;  %v1522_v53 = vmul.f32 %v4654_v1, %v4654_v1  ;;  %v1523_v17 = vmul.f32 %v4657_v35, %v4657_v35 }
  0xc6   :  { %8621 = vst [vmem:[#allocation51_spill] sm:$0xff] %v4974_v11  ;;  %v4989_v56 = vadd.f32 %v1376_v49, %v4550_v50  ;;  %v1385_v38 = vmul.f32 %v4677_v0, %v4520_v5  ;;  %v4994_v25 = vadd.f32 %v1383_v43, %v4557_v55  ;;  %v1504_v60 = vadd.f32 %v1503_v40, %v4979_v28 }
  0xc7   :  { %v1483_v20 = vadd.f32 %v1482_v33, %v4897_v26  ;;  %v4999_v47 = vadd.f32 %v1377_v10, %v4550_v50  ;;  %v5002_v1 = vadd.f32 %v1378_v48, %v4550_v50  ;;  %v1494_v35 = vadd.f32 %v1493_v41, %v4967_v61 }
  0xc8   :  { %8622 = vst [vmem:[#allocation52_spill] sm:$0xff] %v4989_v56  ;;  %v1386_v49 = vmul.f32 %v4683_v2, %v4520_v5  ;;  %v1387_v0 = vmul.f32 %v4691_v23, %v4520_v5  ;;  %v5010_v43 = vadd.f32 %v1384_v54, %v4557_v55  ;;  %v1505_v40 = vadd.f32 %v1504_v60, %v4994_v25 }
  0xc9   :  { %8623 = vst [vmem:[#allocation53_spill] sm:$0xff] %v4999_v47  ;;  %8624 = vst [vmem:[#allocation54_spill] sm:$0xff] %v5002_v1  ;;  %1484 = vadd.xlane.f32.xlu1 %v1483_v20  ;;  %v1495_v10 = vadd.f32 %v1494_v35, %v4970_v46  ;;  %v1388_v50 = vmul.f32 %v4697_v6, %v4520_v5  ;;  %v1524_v48 = vmul.f32 %v4708_v16, %v4708_v16 }
  0xca   :  { %v1582_v33 = vadd.f32 %v1523_v17, %v1522_v53  ;;  %v1389_v2 = vmul.f32 %v4703_v21, %v4520_v5  ;;  %v5021_v23 = vadd.f32 %v1385_v38, %v4557_v55  ;;  %v1506_v54 = vadd.f32 %v1505_v40, %v5010_v43 }
  0xcb   :  { %v1525_v41 = vmul.f32 %v4728_v4, %v4728_v4  ;;  %v1496_v35 = vadd.f32 %v1495_v10, %v4974_v11  ;;  %v1537_v6 = vmul.f32 %v4753_v44, %v4753_v44  ;;  %v1538_v53 = vmul.f32 %v4756_v22, %v4756_v22 }
  0xcc   :  { %8625 = vst [vmem:[#allocation55_spill] sm:$0xff] %v5021_v23  ;;  %v1583_v60 = vadd.f32 %v1582_v33, %v1524_v48  ;;  %v1390_v21 = vmul.f32 %v4713_v12, %v4520_v5  ;;  %v1391_v17 = vmul.f32 %v4716_v36, %v4520_v5  ;;  %v5036_v38 = vadd.f32 %v1386_v49, %v4557_v55 }
  0xcd   :  { %v1507_v20 = vadd.f32 %v1506_v54, %v5021_v23  ;;  %v1497_v40 = vadd.f32 %v1496_v35, %v4989_v56  ;;  %v1392_v10 = vmul.f32 %v4723_v29, %v4520_v5  ;;  %v1526_v48 = vmul.f32 %v4745_v18, %v4745_v18 }
  0xce   :  { %v1584_v33 = vadd.f32 %v1583_v60, %v1525_v41  ;;  %v1393_v12 = vmul.f32 %v4732_v8, %v4520_v5  ;;  %v5047_v16 = vadd.f32 %v1387_v0, %v4557_v55  ;;  %v1527_v49 = vmul.f32 %v4763_v24, %v4763_v24 }
  0xcf   :  { %v1508_v36 = vadd.f32 %v1507_v20, %v5036_v38  ;;  %v1498_v54 = vadd.f32 %v1497_v40, %v4999_v47  ;;  %v1539_v29 = vmul.f32 %v4789_v42, %v4789_v42  ;;  %v1598_v44 = vadd.f32 %v1538_v53, %v1537_v6 }
  0xd0   :  { %8626 = vst [vmem:[#allocation56_spill] sm:$0xff] %v5047_v16  ;;  %v1585_v35 = vadd.f32 %v1584_v33, %v1526_v48  ;;  %v5056_v41 = vadd.f32 %v1388_v50, %v4557_v55  ;;  %v5059_v5 = vadd.f32 %v1389_v2, %v4557_v55  ;;  %v1528_v0 = vmul.f32 %v4769_v15, %v4769_v15 }
  0xd1   :  { %v1509_v8 = vadd.f32 %v1508_v36, %v5047_v16  ;;  %v1499_v60 = vadd.f32 %v1498_v54, %v5002_v1  ;;  %v1540_v40 = vmul.f32 %v4809_v58, %v4809_v58  ;;  %v1599_v48 = vadd.f32 %v1598_v44, %v1539_v29 }
  0xd2   :  { %8627 = vst [vmem:[#allocation57_spill] sm:$0xff] %v5056_v41  ;;  %8628 = vst [vmem:[#allocation58_spill] sm:$0xff] %v5059_v5  ;;  %v1586_v20 = vadd.f32 %v1585_v35, %v1527_v49  ;;  %v5068_v6 = vadd.f32 %v1390_v21, %v4557_v55  ;;  %v1552_v2 = vmul.f32 %v4839_v59, %v4839_v59 }
  0xd3   :  { %v1510_v50 = vadd.f32 %v1509_v8, %v5056_v41  ;;  %v1553_v53 = vmul.f32 %v4842_v62, %v4842_v62  ;;  %1500 = vadd.xlane.f32.xlu0 %v1499_v60  ;;  %v1529_v33 = vmul.f32 %v4774_v51, %v4774_v51  ;;  %v1541_v49 = vmul.f32 %v4820_v19, %v4820_v19 }
  0xd4   :  { %8629 = vst [vmem:[#allocation59_spill] sm:$0xff] %v5068_v6  ;;  %v1587_v36 = vadd.f32 %v1586_v20, %v1528_v0  ;;  %v1600_v44 = vadd.f32 %v1599_v48, %v1540_v40  ;;  %v5080_v21 = vadd.f32 %v1391_v17, %v4557_v55  ;;  %v5083_v54 = vadd.f32 %v1392_v10, %v4557_v55 }
  0xd5   :  { %v5086_v35 = vadd.f32 %v1393_v12, %v4557_v55  ;;  %v1511_v29 = vadd.f32 %v1510_v50, %v5059_v5  ;;  %v1530_v8 = vmul.f32 %v4777_v57, %v4777_v57  ;;  %v1542_v0 = vmul.f32 %v4835_v63, %v4835_v63  ;;  %v8633_v50 = vld [vmem:[#allocation36_spill] sm:$0xff] }
  0xd6   :  { %8630 = vst [vmem:[#allocation60_spill] sm:$0xff] %v5080_v21  ;;  %8631 = vst [vmem:[#allocation61_spill] sm:$0xff] %v5083_v54  ;;  %v1588_v60 = vadd.f32 %v1587_v36, %v1529_v33  ;;  %v1601_v20 = vadd.f32 %v1600_v44, %v1541_v49  ;;  %v1531_v17 = vmul.f32 %v4780_v32, %v4780_v32 }
  0xd7   :  { %8632 = vst [vmem:[#allocation62_spill] sm:$0xff] %v5086_v35  ;;  %v1512_v40 = vadd.f32 %v1511_v29, %v5068_v6  ;;  %v1554_v10 = vmul.f32 %v4874_v37, %v4874_v37  ;;  %v1614_v55 = vadd.f32 %v1553_v53, %v1552_v2  ;;  %v1532_v12 = vmul.f32 %v4784_v13, %v4784_v13  ;;  %v8635_v13 = vld [vmem:[#allocation33_spill] sm:$0xff] }
  0xd8   :  { %v1589_v48 = vadd.f32 %v1588_v60, %v1530_v8  ;;  %v1543_v33 = vmul.f32 %v8633_v50, %v8633_v50  ;;  %v1602_v36 = vadd.f32 %v1601_v20, %v1542_v0  ;;  %v1544_v49 = vmul.f32 %v4855_v9, %v4855_v9  ;;  %v8634_v60 = vld [vmem:[#allocation32_spill] sm:$0xff]  ;;  %v8637_v50 = vld [vmem:[#allocation39_spill] sm:$0xff] }
  0xd9   :  { %v1513_v57 = vadd.f32 %v1512_v40, %v5080_v21  ;;  %v1555_v44 = vmul.f32 %v4892_v3, %v4892_v3  ;;  %v1615_v29 = vadd.f32 %v1614_v55, %v1554_v10  ;;  %v1567_v2 = vmul.f32 %v4928_v39, %v4928_v39  ;;  %v8636_v55 = vld [vmem:[#allocation38_spill] sm:$0xff]  ;;  %v8638_v9 = vld [vmem:[#allocation47_spill] sm:$0xff] }
  0xda   :  { %v1590_v15 = vadd.f32 %v1589_v48, %v1531_v17  ;;  %v1603_v32 = vadd.f32 %v1602_v36, %v1543_v33  ;;  %v1568_v53 = vmul.f32 %v4931_v14, %v4931_v14  ;;  %v1533_v0 = vmul.f32 %v8634_v60, %v8634_v60 }
  0xdb   :  { %v1514_v8 = vadd.f32 %v1513_v57, %v5083_v54  ;;  %v1556_v20 = vmul.f32 %v4907_v27, %v4907_v27  ;;  %v1616_v40 = vadd.f32 %v1615_v29, %v1555_v44  ;;  %v1534_v10 = vmul.f32 %v8635_v13, %v8635_v13 }
  0xdc   :  { %v1591_v17 = vadd.f32 %v1590_v15, %v1532_v12  ;;  %v1545_v48 = vmul.f32 %v8636_v55, %v8636_v55  ;;  %v1604_v33 = vadd.f32 %v1603_v32, %v1544_v49  ;;  %v1546_v57 = vmul.f32 %v8637_v50, %v8637_v50  ;;  %v8639_v15 = vld [vmem:[#allocation34_spill] sm:$0xff]  ;;  %v8640_v32 = vld [vmem:[#allocation40_spill] sm:$0xff] }
  0xdd   :  { %v1515_v36 = vadd.f32 %v1514_v8, %v5086_v35  ;;  %v1557_v60 = vmul.f32 %v8638_v9, %v8638_v9  ;;  %v1617_v51 = vadd.f32 %v1616_v40, %v1556_v20  ;;  %v1569_v44 = vmul.f32 %v4961_v34, %v4961_v34  ;;  %v8641_v40 = vld [vmem:[#allocation35_spill] sm:$0xff] }
  0xde   :  { %v1592_v37 = vadd.f32 %v1591_v17, %v1533_v0  ;;  %v1605_v27 = vadd.f32 %v1604_v33, %v1545_v48  ;;  %v1630_v29 = vadd.f32 %v1568_v53, %v1567_v2  ;;  %v1535_v12 = vmul.f32 %v8639_v15, %v8639_v15  ;;  %v8642_v53 = vld [vmem:[#allocation42_spill] sm:$0xff] }
  0xdf   :  { %1516 = vadd.xlane.f32.xlu1 %v1515_v36  ;;  %v1547_v49 = vmul.f32 %v8640_v32, %v8640_v32  ;;  %v1558_v8 = vmul.f32 %v4937_v30, %v4937_v30  ;;  %v1618_v13 = vadd.f32 %v1617_v51, %v1557_v60  ;;  %v1570_v0 = vmul.f32 %v4979_v28, %v4979_v28 }
  0xe0   :  { %v1593_v55 = vadd.f32 %v1592_v37, %v1534_v10  ;;  %v1606_v50 = vadd.f32 %v1605_v27, %v1546_v57  ;;  %v1631_v20 = vadd.f32 %v1630_v29, %v1569_v44  ;;  %v1536_v2 = vmul.f32 %v8641_v40, %v8641_v40 }
  0xe1   :  { %v1548_v17 = vmul.f32 %v8642_v53, %v8642_v53  ;;  %v1559_v48 = vmul.f32 %v4952_v45, %v4952_v45  ;;  %v1619_v33 = vadd.f32 %v1618_v13, %v1558_v8  ;;  %v1571_v51 = vmul.f32 %v4994_v25, %v4994_v25 }
  0xe2   :  { %v1594_v36 = vadd.f32 %v1593_v55, %v1535_v12  ;;  %v1607_v32 = vadd.f32 %v1606_v50, %v1547_v49  ;;  %v1632_v37 = vadd.f32 %v1631_v20, %v1570_v0  ;;  %v1549_v27 = vmul.f32 %v4883_v52, %v4883_v52 }
  0xe3   :  { %v1560_v60 = vmul.f32 %v4956_v7, %v4956_v7  ;;  %v1620_v10 = vadd.f32 %v1619_v33, %v1559_v48  ;;  %v1572_v29 = vmul.f32 %v5010_v43, %v5010_v43  ;;  %v1561_v13 = vmul.f32 %v4967_v61, %v4967_v61 }
  0xe4   :  { %v1595_v57 = vadd.f32 %v1594_v36, %v1536_v2  ;;  %v1608_v44 = vadd.f32 %v1607_v32, %v1548_v17  ;;  %v1633_v40 = vadd.f32 %v1632_v37, %v1571_v51  ;;  %v1550_v55 = vmul.f32 %v4886_v31, %v4886_v31  ;;  %v8664_v31 = vld [vmem:[#allocation17_spill] sm:$0xff] }
  0xe5   :  { %v1621_v50 = vadd.f32 %v1620_v10, %v1560_v60  ;;  %v1573_v49 = vmul.f32 %v5021_v23, %v5021_v23  ;;  %v1562_v32 = vmul.f32 %v4970_v46, %v4970_v46  ;;  %v1551_v20 = vmul.f32 %v4897_v26, %v4897_v26  ;;  %v8661_v46 = vld [vmem:[#allocation14_spill] sm:$0xff] }
  0xe6   :  { %1596 = vadd.xlane.f32.xlu0 %v1595_v57  ;;  %v1609_v12 = vadd.f32 %v1608_v44, %v1549_v27  ;;  %v1634_v8 = vadd.f32 %v1633_v40, %v1572_v29  ;;  %v1574_v17 = vmul.f32 %v5036_v38, %v5036_v38  ;;  %v1563_v33 = vmul.f32 %v4974_v11, %v4974_v11  ;;  %v8662_v11 = vld [vmem:[#allocation18_spill] sm:$0xff] }
  0xe7   :  { %v1622_v0 = vadd.f32 %v1621_v50, %v1561_v13  ;;  %v1575_v40 = vmul.f32 %v5047_v16, %v5047_v16  ;;  %v1564_v27 = vmul.f32 %v4989_v56, %v4989_v56  ;;  %v1576_v10 = vmul.f32 %v5056_v41, %v5056_v41 }
  0xe8   :  { %v1610_v2 = vadd.f32 %v1609_v12, %v1550_v55  ;;  %v1635_v48 = vadd.f32 %v1634_v8, %v1573_v49  ;;  %v1565_v44 = vmul.f32 %v4999_v47, %v4999_v47  ;;  %v1577_v13 = vmul.f32 %v5059_v5, %v5059_v5 }
  0xe9   :  { %v1623_v36 = vadd.f32 %v1622_v0, %v1562_v32  ;;  %v1566_v55 = vmul.f32 %v5002_v1, %v5002_v1  ;;  %v1578_v49 = vmul.f32 %v5068_v6, %v5068_v6  ;;  %v1579_v0 = vmul.f32 %v5080_v21, %v5080_v21  ;;  %v8663_v6 = vld [vmem:[#allocation13_spill] sm:$0xff] }
  0xea   :  { %v1611_v51 = vadd.f32 %v1610_v2, %v1551_v20  ;;  %v1636_v37 = vadd.f32 %v1635_v48, %v1574_v17  ;;  %v1580_v2 = vmul.f32 %v5083_v54, %v5083_v54  ;;  %v1581_v48 = vmul.f32 %v5086_v35, %v5086_v35 }
  0xeb   :  { %v1624_v60 = vadd.f32 %v1623_v36, %v1563_v33 }
  0xec   :  { %1612 = vadd.xlane.f32.xlu1 %v1611_v51  ;;  %v1637_v57 = vadd.f32 %v1636_v37, %v1575_v40  ;;  %v8407_v51 = vmov 2  }
  0xed   :  { %v1625_v29 = vadd.f32 %v1624_v60, %v1564_v27  ;;  %4267 = vset.pattern.permute.xlu1 %v8407_v51  ;;  %4268 = vset.pattern.permute.xlu0 %v8407_v51 }
  0xee   :  { %v1638_v50 = vadd.f32 %v1637_v57, %v1576_v10 }
  0xef   :  { %v1626_v12 = vadd.f32 %v1625_v29, %v1565_v44 }
  0xf0   :  { %v1639_v8 = vadd.f32 %v1638_v50, %v1577_v13 }
  0xf1   :  { %v1627_v32 = vadd.f32 %v1626_v12, %v1566_v55 }
  0xf2   :  { %v1640_v20 = vadd.f32 %v1639_v8, %v1578_v49 }
  0xf3   :  { %1628 = vadd.xlane.f32.xlu0 %v1627_v32 }
  0xf4   :  { %v1641_v17 = vadd.f32 %v1640_v20, %v1579_v0 }
  0xf6   :  { %v1642_v33 = vadd.f32 %v1641_v17, %v1580_v2 }
  0xf8   :  { %v1643_v36 = vadd.f32 %v1642_v33, %v1581_v48 }
  0xfa   :  { %1644 = vadd.xlane.f32.xlu1 %v1643_v36 }
 0x11b   :  { %v151_v37 = vpop.xlane.xlu1 %150 }
 0x11c   :  { %v170_v60 = vmul.f32 0.0015625, %v151_v37 }
 0x11e   :  { %v222_v29 = vmul.f32 %v170_v60, %v170_v60 }
 0x11f   :  { %v157_v40 = vpop.xlane.xlu0 %156 }
 0x120   :  { %v171_v57 = vmul.f32 0.0015625, %v157_v40 }
 0x122   :  { %v223_v12 = vmul.f32 %v171_v57, %v171_v57 }
 0x126   :  { %v163_v27 = vpop.xlane.xlu0 %162 }
 0x127   :  { %v172_v13 = vmul.f32 0.0015625, %v163_v27 }
 0x128   :  { %v169_v10 = vpop.xlane.xlu1 %168 }
 0x129   :  { %v173_v49 = vmul.f32 0.0015625, %v169_v10  ;;  %v224_v2 = vmul.f32 %v172_v13, %v172_v13 }
 0x12a   :  { %v199_v44 = vpop.xlane.xlu0 %198 }
 0x12b   :  { %v218_v50 = vmul.f32 0.0015625, %v199_v44  ;;  %v225_v36 = vmul.f32 %v173_v49, %v173_v49 }
 0x12c   :  { %v205_v55 = vpop.xlane.xlu1 %204 }
 0x12d   :  { %v219_v8 = vmul.f32 0.0015625, %v205_v55  ;;  %v226_v32 = vsub.f32 %v218_v50, %v222_v29  ;;  %v5188_v29 = vld [vmem:[%s8343_s2] sm:$0xff] }
 0x12e   :  { %v211_v20 = vpop.xlane.xlu0 %210 }
 0x12f   :  { %v227_v0 = vsub.f32 %v219_v8, %v223_v12  ;;  %v230_v17 = vadd.f32 1e-05, %v226_v32  ;;  %v220_v48 = vmul.f32 0.0015625, %v211_v20  ;;  %v8643_v12 = vld [vmem:[#allocation2_spill] sm:$0xff]  ;;  %v5202_v20 = vld [vmem:[%s8343_s2 + $0x10] sm:$0xff] }
 0x131   :  { %v217_v33 = vpop.xlane.xlu1 %216  ;;  %v231_v51 = vadd.f32 1e-05, %v227_v0  ;;  %4283 = vrsqrt.f32 %v230_v17  ;;  %v228_v40 = vsub.f32 %v220_v48, %v224_v2 }
 0x132   :  { %v221_v37 = vmul.f32 0.0015625, %v217_v33 }
 0x133   :  { %4285 = vrsqrt.f32 %v231_v51  ;;  %v232_v27 = vadd.f32 1e-05, %v228_v40 }
 0x134   :  { %v229_v56 = vsub.f32 %v221_v37, %v225_v36 }
 0x135   :  { %4287 = vrsqrt.f32 %v232_v27 }
 0x136   :  { %v233_v44 = vadd.f32 1e-05, %v229_v56 }
 0x138   :  { %4289 = vrsqrt.f32 %v233_v44 }
 0x13b   :  { %v4284_v10 = vpop.eup %4283 }
 0x13c   :  { %v5191_v50 = vmul.f32 %v5188_v29, %v4284_v10 }
 0x13d   :  { %v4286_v55 = vpop.eup %4285 }
 0x13e   :  { %v5194_v8 = vmul.f32 %v4286_v55, %v8643_v12  ;;  %v282_v51 = vmul.f32 %v5191_v50, %v170_v60  ;;  %v5209_v60 = vld [vmem:[%s8343_s2 + $0x18] sm:$0xff] }
 0x13f   :  { %v4288_v32 = vpop.eup %4287 }
 0x140   :  { %v283_v56 = vmul.f32 %v5194_v8, %v171_v57  ;;  %290 = vrot.lane.b32.xlu0 %v282_v51, %s4346_s9  ;;  %v240_v2 = vmul.f32 %v5202_v20, %v4288_v32 }
 0x142   :  { %v4290_v0 = vpop.eup %4289  ;;  %292 = vrot.lane.b32.xlu1 %v283_v56, %s4346_s9  ;;  %v284_v17 = vmul.f32 %v240_v2, %v172_v13 }
 0x143   :  { %v241_v57 = vmul.f32 %v5209_v60, %v4290_v0 }
 0x145   :  { %v285_v48 = vmul.f32 %v241_v57, %v173_v49 }
 0x146   :  { %294 = vrot.lane.b32.xlu1 %v284_v17, %s4346_s9 }
 0x147   :  { %296 = vrot.lane.b32.xlu0 %v285_v48, %s4346_s9 }
 0x14c   :  { %v1469_v33 = vpop.xlane.xlu0 %1468 }
 0x14d   :  { %v1518_v40 = vmul.f32 0.00052083336, %v1469_v33 }
 0x14f   :  { %v1650_v10 = vmul.f32 %v1518_v40, %v1518_v40 }
 0x156   :  { %v1485_v37 = vpop.xlane.xlu1 %1484 }
 0x157   :  { %v1519_v12 = vmul.f32 0.00052083336, %v1485_v37 }
 0x159   :  { %v1651_v1 = vmul.f32 %v1519_v12, %v1519_v12 }
 0x160   :  { %v1501_v36 = vpop.xlane.xlu0 %1500 }
 0x161   :  { %v1520_v0 = vmul.f32 0.00052083336, %v1501_v36 }
 0x163   :  { %v1652_v21 = vmul.f32 %v1520_v0, %v1520_v0 }
 0x16c   :  { %v1517_v27 = vpop.xlane.xlu1 %1516 }
 0x16d   :  { %v1521_v54 = vmul.f32 0.00052083336, %v1517_v27 }
 0x173   :  { %v1597_v44 = vpop.xlane.xlu0 %1596 }
 0x174   :  { %v1646_v55 = vmul.f32 0.00052083336, %v1597_v44 }
 0x176   :  { %v1654_v51 = vsub.f32 %v1646_v55, %v1650_v10  ;;  %v1653_v55 = vmul.f32 %v1521_v54, %v1521_v54 }
 0x178   :  { %v1658_v32 = vadd.f32 1e-05, %v1654_v51 }
 0x179   :  { %v1613_v56 = vpop.xlane.xlu1 %1612 }
 0x17a   :  { %4291 = vrsqrt.f32 %v1658_v32  ;;  %v1647_v13 = vmul.f32 0.00052083336, %v1613_v56  ;;  %v4334_v32 = vld [vmem:[%s8343_s2 + $0x8] sm:$0xff] }
 0x17c   :  { %v1655_v49 = vsub.f32 %v1647_v13, %v1651_v1 }
 0x17e   :  { %v1659_v17 = vadd.f32 1e-05, %v1655_v49 }
 0x180   :  { %4293 = vrsqrt.f32 %v1659_v17  ;;  %v1629_v48 = vpop.xlane.xlu0 %1628 }
 0x181   :  { %v1648_v47 = vmul.f32 0.00052083336, %v1629_v48 }
 0x183   :  { %v1656_v35 = vsub.f32 %v1648_v47, %v1652_v21 }
 0x184   :  { %v4292_v33 = vpop.eup %4291 }
 0x185   :  { %v1660_v26 = vadd.f32 1e-05, %v1656_v35  ;;  %v1666_v44 = vmul.f32 %v5188_v29, %v4292_v33 }
 0x187   :  { %4295 = vrsqrt.f32 %v1660_v26  ;;  %v1645_v37 = vpop.xlane.xlu1 %1644  ;;  %v1750_v10 = vmul.f32 %v1666_v44, %v1518_v40 }
 0x188   :  { %v1649_v51 = vmul.f32 0.00052083336, %v1645_v37 }
 0x189   :  { %1758 = vrot.lane.b32.xlu1 %v1750_v10, %s4346_s9 }
 0x18a   :  { %v4294_v1 = vpop.eup %4293  ;;  %v1657_v36 = vsub.f32 %v1649_v51, %v1653_v55 }
 0x18b   :  { %v1667_v56 = vmul.f32 %v4334_v32, %v4294_v1 }
 0x18c   :  { %v1661_v47 = vadd.f32 1e-05, %v1657_v36 }
 0x18d   :  { %v1751_v21 = vmul.f32 %v1667_v56, %v1519_v12  ;;  %v4347_v12 = vmov 3  }
 0x18e   :  { %4297 = vrsqrt.f32 %v1661_v47  ;;  %v8645_v47 = vmov 0  }
 0x18f   :  { %1760 = vrot.lane.b32.xlu0 %v1751_v21, %s4346_s9 }
 0x191   :  { %v4296_v35 = vpop.eup %4295 }
 0x192   :  { %v1668_v26 = vmul.f32 %v5202_v20, %v4296_v35 }
 0x194   :  { %v1752_v40 = vmul.f32 %v1668_v26, %v1520_v0 }
 0x196   :  { %1762 = vrot.lane.b32.xlu1 %v1752_v40, %s4346_s9 }
 0x198   :  { %v4298_v27 = vpop.eup %4297 }
 0x199   :  { %v1669_v13 = vmul.f32 %v5209_v60, %v4298_v27 }
 0x19a   :  { %244 = vperm.xlu1 %4267, %v5191_v50  }
 0x19b   :  { %v1753_v49 = vmul.f32 %v1669_v13, %v1521_v54 }
 0x19d   :  { %1764 = vrot.lane.b32.xlu0 %v1753_v49, %s4346_s9  ;;  %v8648_v49 = vld [vmem:[#allocation3_spill] sm:$0xff] }
 0x19e   :  { %259 = vperm.xlu1 %4267, %v241_v57  }
 0x1a1   :  { %249 = vperm.xlu0 %4268, %v5194_v8   ;;  %v8644_v8 = vmov 2  }
 0x1a2   :  { %4269 = vset.pattern.permute.xlu1 %v4347_v12 }
 0x1a5   :  { %254 = vperm.xlu0 %4268, %v240_v2   ;;  %v8416_v2 = vmov 0.0  }
 0x1a6   :  { %495 = vmatprep.mubr.f32.mxu0 %v8416_v2  ;;  %608 = vmatprep.mubr.f32.mxu1 %v8416_v2  ;;  %v8658_v2 = vld [vmem:[#allocation7_spill] sm:$0xff] }
 0x1a9   :  { %4270 = vset.pattern.permute.xlu0 %v4347_v12 }
 0x1b2   :  { %v291_v17 = vpop.permute.xlu0 %290 }
 0x1b3   :  { %v302_v0 = vsub.f32 %v5188_v29, %v291_v17  ;;  %v8649_v17 = vld [vmem:[#allocation5_spill] sm:$0xff] }
 0x1b4   :  { %v293_v48 = vpop.permute.xlu1 %292 }
 0x1b5   :  { %308 = vperm.xlu1 %4269, %v302_v0   ;;  %v303_v33 = vsub.f32 %v4334_v32, %v293_v48  ;;  %v8650_v0 = vld [vmem:[#allocation16_spill] sm:$0xff] }
 0x1b8   :  { %v295_v37 = vpop.permute.xlu1 %294 }
 0x1b9   :  { %v297_v10 = vpop.permute.xlu0 %296  ;;  %v304_v50 = vsub.f32 %v5202_v20, %v295_v37  ;;  %313 = vperm.xlu1 %4269, %v303_v33   ;;  %v8651_v33 = vld [vmem:[#allocation21_spill] sm:$0xff] }
 0x1ba   :  { %v305_v54 = vsub.f32 %v5209_v60, %v297_v10  ;;  %v8652_v10 = vld [vmem:[#allocation9_spill] sm:$0xff] }
 0x1bb   :  { %318 = vperm.xlu0 %4270, %v304_v50  }
 0x1bd   :  { %323 = vperm.xlu1 %4269, %v305_v54  }
 0x1bf   :  { %4272 = vset.pattern.permute.xlu0 %v8644_v8 }
 0x1c0   :  { %1677 = vperm.xlu0 %4272, %v1667_v56  }
 0x1c1   :  { %4271 = vset.pattern.permute.xlu1 %v8644_v8  ;;  %v8659_v8 = vld [vmem:[#allocation10_spill] sm:$0xff] }
 0x1c2   :  { %1672 = vperm.xlu1 %4271, %v1666_v44  }
 0x1c4   :  { %1682 = vperm.xlu0 %4272, %v1668_v26  }
 0x1c6   :  { %1687 = vperm.xlu1 %4271, %v1669_v13   ;;  %v8647_v13 = vld [vmem:[#allocation6_spill] sm:$0xff] }
 0x1c8   :  { %4274 = vset.pattern.permute.xlu0 %v4347_v12 }
 0x1ca   :  { %4273 = vset.pattern.permute.xlu1 %v4347_v12 }
 0x1fb   :  { %v1759_v57 = vpop.permute.xlu1 %1758 }
 0x1fc   :  { %v1770_v55 = vsub.f32 %v5188_v29, %v1759_v57  ;;  %v8646_v29 = vld [vmem:[#allocation4_spill] sm:$0xff] }
 0x1fd   :  { %v8653_v57 = vld [vmem:[#allocation8_spill] sm:$0xff] }
 0x1fe   :  { %1776 = vperm.xlu1 %4273, %v1770_v55  }
 0x201   :  { %v1761_v51 = vpop.permute.xlu0 %1760 }
 0x202   :  { %v1771_v1 = vsub.f32 %v4334_v32, %v1761_v51  ;;  %v8654_v51 = vld [vmem:[#allocation15_spill] sm:$0xff] }
 0x204   :  { %1781 = vperm.xlu1 %4273, %v1771_v1  }
 0x208   :  { %v1763_v36 = vpop.permute.xlu1 %1762 }
 0x209   :  { %v1772_v56 = vsub.f32 %v5202_v20, %v1763_v36  ;;  %v8655_v36 = vld [vmem:[#allocation19_spill] sm:$0xff] }
 0x20b   :  { %1786 = vperm.xlu0 %4274, %v1772_v56  }
 0x20f   :  { %v1765_v44 = vpop.permute.xlu0 %1764  ;;  %4276 = vset.pattern.permute.xlu0 %v8645_v47 }
 0x210   :  { %v1773_v21 = vsub.f32 %v5209_v60, %v1765_v44  ;;  %v8656_v44 = vld [vmem:[#allocation22_spill] sm:$0xff] }
 0x212   :  { %1791 = vperm.xlu1 %4273, %v1773_v21  }
 0x216   :  { %4275 = vset.pattern.permute.xlu1 %v8645_v47 }
 0x219   :  { %v245_v35 = vpop.permute.xlu1 %244 }
 0x21a   :  { %v263_v27 = vmul.f32 %v245_v35, %v8646_v29  ;;  %v265_v32 = vmul.f32 %v245_v35, %v8647_v13  ;;  %v262_v12 = vmul.f32 %v245_v35, %v8648_v49  ;;  %v264_v20 = vmul.f32 %v245_v35, %v8649_v17  ;;  %v8657_v17 = vld [vmem:[#allocation11_spill] sm:$0xff] }
 0x21b   :  { %v266_v60 = vmul.f32 %v245_v35, %v8652_v10  ;;  %v8660_v10 = vld [vmem:[#allocation12_spill] sm:$0xff] }
 0x21d   :  { %v260_v40 = vpop.permute.xlu1 %259 }
 0x21e   :  { %v278_v48 = vmul.f32 %v260_v40, %v8650_v0  ;;  %v280_v37 = vmul.f32 %v260_v40, %v8651_v33  ;;  %v277_v1 = vmul.f32 %v260_v40, %v8654_v51  ;;  %v279_v56 = vmul.f32 %v260_v40, %v8655_v36 }
 0x21f   :  { %v281_v47 = vmul.f32 %v260_v40, %v8656_v44 }
 0x220   :  { %v250_v26 = vpop.permute.xlu0 %249 }
 0x221   :  { %v268_v55 = vmul.f32 %v250_v26, %v8653_v57  ;;  %v270_v0 = vmul.f32 %v250_v26, %v8657_v17  ;;  %v267_v33 = vmul.f32 %v250_v26, %v8658_v2  ;;  %v269_v35 = vmul.f32 %v250_v26, %v8659_v8 }
 0x222   :  { %v271_v5 = vmul.f32 %v250_v26, %v8660_v10 }
 0x224   :  { %v255_v50 = vpop.permute.xlu0 %254 }
 0x225   :  { %v273_v57 = vmul.f32 %v255_v50, %v8661_v46  ;;  %v275_v51 = vmul.f32 %v255_v50, %v8662_v11  ;;  %v272_v36 = vmul.f32 %v255_v50, %v8663_v6  ;;  %v274_v40 = vmul.f32 %v255_v50, %v8664_v31 }
 0x234   :  { %v309_v54 = vpop.permute.xlu1 %308 }
 0x235   :  { %v327_v21 = vadd.f32 %v309_v54, %v263_v27  ;;  %v329_v29 = vadd.f32 %v309_v54, %v265_v32  ;;  %v326_v13 = vadd.f32 %v309_v54, %v262_v12  ;;  %v328_v49 = vadd.f32 %v309_v54, %v264_v20 }
 0x237   :  { %v347_v32 = vmax.f32 %v327_v21, 0.0  ;;  %v349_v12 = vmax.f32 %v329_v29, 0.0  ;;  %v346_v20 = vmax.f32 %v326_v13, 0.0  ;;  %v348_v44 = vmax.f32 %v328_v49, 0.0  ;;  %v8665_v29 = vld [vmem:[#allocation20_spill] sm:$0xff] }
 0x238   :  { %v314_v27 = vpop.permute.xlu1 %313  ;;  %v330_v21 = vadd.f32 %v309_v54, %v266_v60  ;;  %v276_v13 = vmul.f32 %v255_v50, %v8665_v29  ;;  %v32_v29 = vld [vmem:[%s8347_s4 + $0x30] sm:$0xff] }
 0x239   :  { %v332_v15 = vadd.f32 %v314_v27, %v268_v55  ;;  %v334_v2 = vadd.f32 %v314_v27, %v270_v0  ;;  %v331_v16 = vadd.f32 %v314_v27, %v267_v33  ;;  %v333_v8 = vadd.f32 %v314_v27, %v269_v35 }
 0x23a   :  { %v319_v17 = vpop.permute.xlu0 %318 }
 0x23b   :  { %v337_v7 = vadd.f32 %v319_v17, %v273_v57  ;;  %v339_v26 = vadd.f32 %v319_v17, %v275_v51  ;;  %v336_v10 = vadd.f32 %v319_v17, %v272_v36  ;;  %v338_v46 = vadd.f32 %v319_v17, %v274_v40 }
 0x23c   :  { %v352_v41 = vmax.f32 %v332_v15, 0.0  ;;  %v354_v11 = vmax.f32 %v334_v2, 0.0  ;;  %v351_v61 = vmax.f32 %v331_v16, 0.0  ;;  %v353_v6 = vmax.f32 %v333_v8, 0.0  ;;  %v324_v52 = vpop.permute.xlu1 %323  ;;  %v5300_v2 = vld [vmem:[%s8346_s3 + $0x18] sm:$0xff]  ;;  %v28_v8 = vld [vmem:[%s8347_s4 + $0x10] sm:$0xff] }
 0x23d   :  { %v357_v31 = vmax.f32 %v337_v7, 0.0  ;;  %v359_v53 = vmax.f32 %v339_v26, 0.0  ;;  %v342_v33 = vadd.f32 %v324_v52, %v278_v48  ;;  %v344_v35 = vadd.f32 %v324_v52, %v280_v37  ;;  %v5314_v26 = vld [vmem:[%s8346_s3 + $0x20] sm:$0xff] }
 0x23e   :  { %v4168_v49 = vpack.c.bf16 %v352_v41, %v347_v32  ;;  %v4176_v23 = vpack.c.bf16 %v354_v11, %v349_v12  ;;  %v4170_v55 = vpack.c.bf16 %v351_v61, %v346_v20  ;;  %v4178_v0 = vpack.c.bf16 %v353_v6, %v348_v44  ;;  %v26_v20 = vld [vmem:[%s8347_s4] sm:$0xff]  ;;  %v5285_v44 = vld [vmem:[%s8346_s3 + $0x10] sm:$0xff] }
 0x23f   :  { %v341_v57 = vadd.f32 %v324_v52, %v277_v1  ;;  %v343_v51 = vadd.f32 %v324_v52, %v279_v56  ;;  %v356_v15 = vmax.f32 %v336_v10, 0.0  ;;  %v358_v36 = vmax.f32 %v338_v46, 0.0  ;;  %368 = vperm.xlu1 %4275, %v26_v20   ;;  %v29_v10 = vld [vmem:[%s8347_s4 + $0x18] sm:$0xff]  ;;  %v5328_v46 = vld [vmem:[%s8346_s3 + $0x28] sm:$0xff]  ;;  %v30_v11 = vld [vmem:[%s8347_s4 + $0x20] sm:$0xff] }
 0x240   :  { %4169 = vmatprep.subr.bf16.mxu0 %v4168_v49  ;;  %4177 = vmatprep.subr.bf16.mxu1 %v4176_v23  ;;  %v335_v16 = vadd.f32 %v314_v27, %v271_v5  ;;  %v345_v40 = vadd.f32 %v324_v52, %v281_v47  ;;  %v362_v7 = vmax.f32 %v342_v33, 0.0  ;;  %v364_v60 = vmax.f32 %v344_v35, 0.0  ;;  %v5261_v52 = vld [vmem:[%s8346_s3] sm:$0xff]  ;;  %v5271_v27 = vld [vmem:[%s8346_s3 + $0x8] sm:$0xff]  ;;  %v5342_v6 = vld [vmem:[%s8346_s3 + $0x30] sm:$0xff] }
 0x241   :  { %4171 = vmatpush1.bf16.msra.mxu0 %v4170_v55  ;;  %4179 = vmatpush1.bf16.msra.mxu1 %v4178_v0  ;;  %v361_v54 = vmax.f32 %v341_v57, 0.0  ;;  %v363_v50 = vmax.f32 %v343_v51, 0.0  ;;  %v350_v41 = vmax.f32 %v330_v21, 0.0  ;;  %v340_v61 = vadd.f32 %v319_v17, %v276_v13  ;;  %v27_v17 = vld [vmem:[%s8347_s4 + $0x8] sm:$0xff]  ;;  %v5356_v21 = vld [vmem:[%s8346_s3 + $0x38] sm:$0xff]  ;;  %v5377_v55 = vpop.permute.xlu1 %1672  ;;  %v5387_v0 = vpop.permute.xlu0 %1677  ;;  %v8668_v51 = vld [vmem:[#allocation24_spill] sm:$0xff] }
 0x242   :  { %v355_v32 = vmax.f32 %v335_v16, 0.0  ;;  %v4172_v12 = vpack.c.bf16 %v362_v7, %v357_v31  ;;  %v4180_v48 = vpack.c.bf16 %v364_v60, %v359_v53  ;;  %v365_v56 = vmax.f32 %v345_v40, 0.0  ;;  %373 = vperm.xlu0 %4276, %v27_v17   ;;  %v31_v31 = vld [vmem:[%s8347_s4 + $0x28] sm:$0xff]  ;;  %v33_v13 = vld [vmem:[%s8347_s4 + $0x38] sm:$0xff] }
 0x243   :  { %v4174_v37 = vpack.c.bf16 %v361_v54, %v356_v15  ;;  %v4182_v1 = vpack.c.bf16 %v363_v50, %v358_v36  ;;  %v360_v5 = vmax.f32 %v340_v61, 0.0  ;;  %v8666_v47 = vmov 0.0   ;;  %378 = vperm.xlu1 %4275, %v28_v8   ;;  %v8669_v7 = vld [vmem:[#allocation23_spill] sm:$0xff]  ;;  %v8670_v54 = vld [vmem:[#allocation26_spill] sm:$0xff] }
 0x244   :  { %4173 = vmatprep.subr.bf16.mxu0 %v4172_v12  ;;  %4181 = vmatprep.subr.bf16.mxu1 %v4180_v48  ;;  %v4184_v23 = vpack.c.bf16 %v355_v32, %v350_v41  ;;  %v8667_v49 = vmov 1   ;;  %v1691_v15 = vmul.f32 %v5377_v55, %v8668_v51  ;;  %v1706_v36 = vmul.f32 %v5387_v0, %v4756_v22 }
 0x245   :  { %4175 = vmatpush1.bf16.msra.mxu0 %v4174_v37  ;;  %4183 = vmatpush1.bf16.msra.mxu1 %v4182_v1  ;;  %v4188_v53 = vpack.c.bf16 %v365_v56, %v360_v5  ;;  %v5389_v33 = vpop.permute.xlu1 %1687  ;;  %v5394_v35 = vpop.permute.xlu0 %1682  ;;  %v1693_v16 = vmul.f32 %v5377_v55, %v4728_v4  ;;  %v1708_v40 = vmul.f32 %v5387_v0, %v4809_v58  ;;  %v8671_v4 = vld [vmem:[#allocation25_spill] sm:$0xff] }
 0x246   :  { %4185 = vmatprep.subr.bf16.mxu0 %v4184_v23  ;;  %388 = vperm.xlu0 %4276, %v30_v11   ;;  %v1690_v60 = vmul.f32 %v5377_v55, %v8669_v7  ;;  %v1705_v50 = vmul.f32 %v5387_v0, %v8670_v54  ;;  %v1721_v41 = vmul.f32 %v5394_v35, %v4842_v62  ;;  %v8673_v54 = vld [vmem:[#allocation46_spill] sm:$0xff] }
 0x247   :  { %383 = vperm.xlu1 %4275, %v29_v10   ;;  %v1720_v22 = vmul.f32 %v5394_v35, %v4839_v59  ;;  %v1692_v12 = vmul.f32 %v5377_v55, %v8671_v4  ;;  %v5421_v48 = vmul.f32 %v5389_v33, %v4931_v14  ;;  %v5425_v37 = vmul.f32 %v5389_v33, %v4928_v39  ;;  %v8676_v4 = vld [vmem:[#allocation30_spill] sm:$0xff] }
 0x248   :  { %3872 = vmatmul.mubr.msk.f32.vlgmr.msra.gmra.mrb[0].mxu0 %vm406_vm0, %v5261_v52  ;;  %3880 = vmatmul.mubr.msk.f32.vlgmr.msra.gmra.mrb[0].mxu1 %vm406_vm0, %v5261_v52  ;;  %v1695_v62 = vmul.f32 %v5377_v55, %v4763_v24  ;;  %v1710_v59 = vmul.f32 %v5387_v0, %v4835_v63  ;;  %v1694_v14 = vmul.f32 %v5377_v55, %v4745_v18 }
 0x249   :  { %4187 = vmatpush3.bf16.msra.mxu0 %v4184_v23  ;;  %501 = vmatprep.mubr.f32.mxu0 %v8666_v47  ;;  %v1707_v23 = vmul.f32 %v5387_v0, %v4789_v42  ;;  %v1709_v24 = vmul.f32 %v5387_v0, %v4820_v19  ;;  %v1723_v42 = vmul.f32 %v5394_v35, %v4892_v3 }
 0x24a   :  { %4189 = vmatprep.subr.bf16.mxu0 %v4188_v53  ;;  %614 = vmatprep.mubr.f32.mxu1 %v8666_v47  ;;  %v5450_v51 = vmul.f32 %v5394_v35, %v8638_v9  ;;  %v1739_v9 = vmul.f32 %v5389_v33, %v4994_v25 }
 0x24b   :  { %393 = vperm.xlu1 %4275, %v31_v31   ;;  %398 = vperm.xlu0 %4276, %v32_v29  }
 0x24c   :  { %3873 = vmatmul.mubr.msk.f32.gmra.mrb[2].mxu0 %vm406_vm0, %v5271_v27  ;;  %3881 = vmatmul.mubr.msk.f32.gmra.mrb[2].mxu1 %vm406_vm0, %v5271_v27 }
 0x24d   :  { %4191 = vmatpush3.bf16.msra.mxu0 %v4188_v53  ;;  %507 = vmatprep.mubr.f32.mxu0 %v8666_v47 }
 0x24e   :  { %620 = vmatprep.mubr.f32.mxu1 %v8666_v47 }
 0x24f   :  { %403 = vperm.xlu1 %4275, %v33_v13   ;;  %4278 = vset.pattern.permute.xlu0 %v8667_v49  ;;  %v1738_v13 = vmul.f32 %v5389_v33, %v4979_v28  ;;  %v5460_v28 = vmul.f32 %v5394_v35, %v8673_v54 }
 0x250   :  { %3874 = vmatmul.mubr.msk.f32.gmra.mrb[4].mxu0 %vm406_vm0, %v5285_v44  ;;  %3882 = vmatmul.mubr.msk.f32.gmra.mrb[4].mxu1 %vm406_vm0, %v5285_v44 }
 0x251   :  { %513 = vmatprep.mubr.f32.mxu0 %v8666_v47  ;;  %626 = vmatprep.mubr.f32.mxu1 %v8666_v47 }
 0x253   :  { %4277 = vset.pattern.permute.xlu1 %v8667_v49 }
 0x254   :  { %3875 = vmatmul.mubr.msk.f32.gmra.mrb[6].mxu0 %vm406_vm0, %v5300_v2  ;;  %3883 = vmatmul.mubr.msk.f32.gmra.mrb[6].mxu1 %vm406_vm0, %v5300_v2 }
 0x255   :  { %519 = vmatprep.mubr.f32.mxu0 %v8666_v47  ;;  %632 = vmatprep.mubr.f32.mxu1 %v8666_v47 }
 0x258   :  { %3876 = vmatmul.mubr.msk.f32.gmra.mrb[8].mxu0 %vm406_vm0, %v5314_v26  ;;  %3884 = vmatmul.mubr.msk.f32.gmra.mrb[8].mxu1 %vm406_vm0, %v5314_v26 }
 0x259   :  { %525 = vmatprep.mubr.f32.mxu0 %v8666_v47  ;;  %638 = vmatprep.mubr.f32.mxu1 %v8666_v47 }
 0x25c   :  { %3877 = vmatmul.mubr.msk.f32.gmra.mrb[10].mxu0 %vm406_vm0, %v5328_v46  ;;  %3885 = vmatmul.mubr.msk.f32.gmra.mrb[10].mxu1 %vm406_vm0, %v5328_v46 }
 0x25d   :  { %531 = vmatprep.mubr.f32.mxu0 %v8666_v47  ;;  %644 = vmatprep.mubr.f32.mxu1 %v8666_v47 }
 0x260   :  { %3878 = vmatmul.mubr.msk.f32.gmra.mrb[12].mxu0 %vm406_vm0, %v5342_v6  ;;  %3886 = vmatmul.mubr.msk.f32.gmra.mrb[12].mxu1 %vm406_vm0, %v5342_v6 }
 0x261   :  { %537 = vmatprep.mubr.f32.mxu0 %v8666_v47  ;;  %650 = vmatprep.mubr.f32.mxu1 %v8666_v47 }
 0x264   :  { %3879 = vmatmul.mubr.msk.f32.gmra.mrb[14].mxu0 %vm406_vm0, %v5356_v21  ;;  %3887 = vmatmul.mubr.msk.f32.gmra.mrb[14].mxu1 %vm406_vm0, %v5356_v21 }
 0x265   :  { %4136 = vmatprep.mubr.msk.f32.mxu0 %vm406_vm0, %v5261_v52  ;;  %1978 = vmatprep.mubr.f32.mxu1 %v8666_v47 }
 0x268   :  { %4137 = vmatmul.mubr.msk.f32.vlgmr.msra.gmra.mrb[16].mxu0 %vm406_vm0, %v5271_v27 }
 0x269   :  { %4139 = vmatprep.mubr.msk.f32.mxu0 %vm406_vm0, %v5285_v44 }
 0x26c   :  { %4140 = vmatmul.mubr.msk.f32.gmra.mrb[18].mxu0 %vm406_vm0, %v5300_v2 }
 0x26d   :  { %4142 = vmatprep.mubr.msk.f32.mxu0 %vm406_vm0, %v5314_v26 }
 0x270   :  { %4143 = vmatmul.mubr.msk.f32.gmra.mrb[20].mxu0 %vm406_vm0, %v5328_v46 }
 0x271   :  { %4145 = vmatprep.mubr.msk.f32.mxu0 %vm406_vm0, %v5342_v6 }
 0x274   :  { %4146 = vmatmul.mubr.msk.f32.gmra.mrb[22].mxu0 %vm406_vm0, %v5356_v21 }
 0x275   :  { %2091 = vmatprep.mubr.f32.mxu0 %v8666_v47 }
 0x27d   :  { %v5396_v57 = vpop.permute.xlu1 %1776 }
 0x27e   :  { %v1795_v32 = vadd.f32 %v5396_v57, %v1691_v15  ;;  %v1797_v61 = vadd.f32 %v5396_v57, %v1693_v16  ;;  %v1794_v58 = vadd.f32 %v5396_v57, %v1690_v60  ;;  %v1796_v56 = vadd.f32 %v5396_v57, %v1692_v12  ;;  %v8677_v12 = vld [vmem:[#allocation39_spill] sm:$0xff] }
 0x27f   :  { %v1740_v16 = vmul.f32 %v5389_v33, %v5010_v43  ;;  %v1737_v60 = vmul.f32 %v5389_v33, %v4961_v34  ;;  %v8675_v43 = vld [vmem:[#allocation37_spill] sm:$0xff]  ;;  %v5470_v34 = vmul.f32 %v5377_v55, %v8676_v4  ;;  %v1799_v25 = vadd.f32 %v5396_v57, %v1695_v62 }
 0x280   :  { %v1855_v20 = vmax.f32 %v1795_v32, 0.0  ;;  %v1857_v17 = vmax.f32 %v1797_v61, 0.0  ;;  %v1854_v11 = vmax.f32 %v1794_v58, 0.0  ;;  %v1856_v31 = vmax.f32 %v1796_v56, 0.0 }
 0x281   :  { %v1712_v61 = vmul.f32 %v5387_v0, %v8675_v43  ;;  %v1714_v58 = vmul.f32 %v5387_v0, %v8677_v12 }
 0x283   :  { %v5429_v1 = vpop.permute.xlu1 %1781 }
 0x284   :  { %v1810_v5 = vadd.f32 %v5429_v1, %v1706_v36  ;;  %v1812_v39 = vadd.f32 %v5429_v1, %v1708_v40  ;;  %v1809_v53 = vadd.f32 %v5429_v1, %v1705_v50  ;;  %v1811_v63 = vadd.f32 %v5429_v1, %v1707_v23  ;;  %v8672_v40 = vld [vmem:[#allocation41_spill] sm:$0xff]  ;;  %v8674_v50 = vld [vmem:[#allocation28_spill] sm:$0xff]  ;;  %v8678_v23 = vld [vmem:[#allocation27_spill] sm:$0xff] }
 0x285   :  { %v1722_v7 = vmul.f32 %v5394_v35, %v8672_v40  ;;  %v1697_v32 = vmul.f32 %v5377_v55, %v8674_v50  ;;  %v1696_v56 = vmul.f32 %v5377_v55, %v8678_v23  ;;  %v1859_v40 = vmax.f32 %v1799_v25, 0.0 }
 0x286   :  { %v1870_v8 = vmax.f32 %v1810_v5, 0.0  ;;  %v1872_v10 = vmax.f32 %v1812_v39, 0.0  ;;  %v1869_v18 = vmax.f32 %v1809_v53, 0.0  ;;  %v1871_v29 = vmax.f32 %v1811_v63, 0.0  ;;  %v8679_v53 = vld [vmem:[#allocation36_spill] sm:$0xff] }
 0x287   :  { %v1801_v39 = vadd.f32 %v5396_v57, %v1697_v32  ;;  %v1814_v63 = vadd.f32 %v5429_v1, %v1710_v59  ;;  %v1813_v54 = vadd.f32 %v5429_v1, %v1709_v24  ;;  %v1800_v32 = vadd.f32 %v5396_v57, %v1696_v56 }
 0x288   :  { %v4192_v19 = vpack.c.bf16 %v1870_v8, %v1855_v20  ;;  %v4200_v15 = vpack.c.bf16 %v1872_v10, %v1857_v17  ;;  %v4194_v36 = vpack.c.bf16 %v1869_v18, %v1854_v11  ;;  %v4202_v3 = vpack.c.bf16 %v1871_v29, %v1856_v31  ;;  %v8680_v18 = vld [vmem:[#allocation55_spill] sm:$0xff]  ;;  %v8681_v31 = vld [vmem:[#allocation32_spill] sm:$0xff] }
 0x289   :  { %v1711_v20 = vmul.f32 %v5387_v0, %v8679_v53  ;;  %v1727_v17 = vmul.f32 %v5394_v35, %v4952_v45  ;;  %v1816_v8 = vadd.f32 %v5429_v1, %v1712_v61  ;;  %v1742_v10 = vmul.f32 %v5389_v33, %v5036_v38  ;;  %v8683_v45 = vld [vmem:[#allocation43_spill] sm:$0xff] }
 0x28a   :  { %4193 = vmatprep.subr.bf16.mxu1 %v4192_v19  ;;  %4201 = vmatprep.subr.bf16.mxu0 %v4200_v15  ;;  %v5476_v5 = vpop.permute.xlu0 %1786  ;;  %v1726_v11 = vmul.f32 %v5394_v35, %v4937_v30  ;;  %v1741_v62 = vmul.f32 %v5389_v33, %v8680_v18  ;;  %v1701_v29 = vmul.f32 %v5377_v55, %v8681_v31  ;;  %v8682_v19 = vld [vmem:[#allocation42_spill] sm:$0xff]  ;;  %v1861_v50 = vmax.f32 %v1801_v39, 0.0 }
 0x28b   :  { %4195 = vmatpush1.bf16.msra.mxu1 %v4194_v36  ;;  %4203 = vmatpush1.bf16.msra.mxu0 %v4202_v3  ;;  %v1716_v15 = vmul.f32 %v5387_v0, %v8682_v19  ;;  %v5498_v59 = vmul.f32 %v5387_v0, %v8683_v45  ;;  %v1825_v36 = vadd.f32 %v5476_v5, %v1721_v41  ;;  %v1874_v61 = vmax.f32 %v1814_v63, 0.0 }
 0x28c   :  { %v1824_v38 = vadd.f32 %v5476_v5, %v1720_v22  ;;  %v1798_v3 = vadd.f32 %v5396_v57, %v1694_v14  ;;  %v1827_v30 = vadd.f32 %v5476_v5, %v1723_v42  ;;  %v1826_v4 = vadd.f32 %v5476_v5, %v1722_v7 }
 0x28d   :  { %v1876_v12 = vmax.f32 %v1816_v8, 0.0  ;;  %v5510_v41 = vadd.f32 %v5429_v1, %v1714_v58  ;;  %v1815_v42 = vadd.f32 %v5429_v1, %v1711_v20  ;;  %v1885_v23 = vmax.f32 %v1825_v36, 0.0 }
 0x28e   :  { %v1884_v56 = vmax.f32 %v1824_v38, 0.0  ;;  %v1887_v25 = vmax.f32 %v1827_v30, 0.0  ;;  %v1873_v8 = vmax.f32 %v1813_v54, 0.0  ;;  %v1886_v18 = vmax.f32 %v1826_v4, 0.0 }
 0x28f   :  { %v1829_v20 = vadd.f32 %v5476_v5, %v5450_v51  ;;  %v4208_v45 = vpack.c.bf16 %v1874_v61, %v1859_v40  ;;  %v1831_v38 = vadd.f32 %v5476_v5, %v1727_v17  ;;  %v4216_v30 = vpack.c.bf16 %v1876_v12, %v1861_v50 }
 0x290   :  { %v1875_v54 = vmax.f32 %v1815_v42, 0.0  ;;  %v1820_v40 = vadd.f32 %v5429_v1, %v1716_v15  ;;  %v1803_v17 = vadd.f32 %v5396_v57, %v5470_v34  ;;  %v1860_v61 = vmax.f32 %v1800_v32, 0.0 }
 0x291   :  { %v5506_v43 = vpop.permute.xlu1 %1791  ;;  %v1830_v50 = vadd.f32 %v5476_v5, %v1726_v11  ;;  %v1878_v15 = vmax.f32 %v5510_v41, 0.0 }
 0x292   :  { %v1840_v22 = vadd.f32 %v5506_v43, %v5421_v48  ;;  %v1839_v14 = vadd.f32 %v5506_v43, %v5425_v37  ;;  %v1842_v24 = vadd.f32 %v5506_v43, %v1738_v13  ;;  %v1841_v39 = vadd.f32 %v5506_v43, %v1737_v60 }
 0x293   :  { %v1844_v58 = vadd.f32 %v5506_v43, %v1740_v16  ;;  %v1846_v31 = vadd.f32 %v5506_v43, %v1742_v10  ;;  %v1843_v60 = vadd.f32 %v5506_v43, %v1739_v9  ;;  %v1845_v4 = vadd.f32 %v5506_v43, %v1741_v62 }
 0x294   :  { %v1900_v7 = vmax.f32 %v1840_v22, 0.0  ;;  %v1899_v53 = vmax.f32 %v1839_v14, 0.0  ;;  %v1902_v63 = vmax.f32 %v1842_v24, 0.0  ;;  %v1901_v48 = vmax.f32 %v1841_v39, 0.0 }
 0x295   :  { %v1904_v16 = vmax.f32 %v1844_v58, 0.0  ;;  %v1858_v10 = vmax.f32 %v1798_v3, 0.0  ;;  %v1828_v22 = vadd.f32 %v5476_v5, %v5460_v28  ;;  %v1906_v51 = vmax.f32 %v1846_v31, 0.0  ;;  %v8685_v58 = vld [vmem:[#allocation38_spill] sm:$0xff]  ;;  %v8687_v31 = vld [vmem:[#allocation57_spill] sm:$0xff] }
 0x296   :  { %v4196_v37 = vpack.c.bf16 %v1900_v7, %v1885_v23  ;;  %v4198_v19 = vpack.c.bf16 %v1899_v53, %v1884_v56  ;;  %v4204_v13 = vpack.c.bf16 %v1902_v63, %v1887_v25  ;;  %v4206_v36 = vpack.c.bf16 %v1901_v48, %v1886_v18  ;;  %v8686_v18 = vld [vmem:[#allocation49_spill] sm:$0xff] }
 0x297   :  { %v1889_v9 = vmax.f32 %v1829_v20, 0.0  ;;  %v4210_v12 = vpack.c.bf16 %v1873_v8, %v1858_v10  ;;  %v1903_v62 = vmax.f32 %v1843_v60, 0.0  ;;  %v1891_v14 = vmax.f32 %v1831_v38, 0.0  ;;  %v8689_v20 = vld [vmem:[#allocation56_spill] sm:$0xff]  ;;  %v8693_v10 = vld [vmem:[#allocation31_spill] sm:$0xff] }
 0x298   :  { %4197 = vmatprep.subr.bf16.mxu1 %v4196_v37  ;;  %4205 = vmatprep.subr.bf16.mxu0 %v4204_v13  ;;  %v1805_v3 = vadd.f32 %v5396_v57, %v1701_v29  ;;  %v4218_v24 = vpack.c.bf16 %v1875_v54, %v1860_v61  ;;  %v1905_v42 = vmax.f32 %v1845_v4, 0.0  ;;  %v1888_v34 = vmax.f32 %v1828_v22, 0.0  ;;  %v8691_v38 = vld [vmem:[#allocation40_spill] sm:$0xff]  ;;  %v8695_v61 = vld [vmem:[#allocation51_spill] sm:$0xff] }
 0x299   :  { %4199 = vmatpush1.bf16.msra.mxu1 %v4198_v19  ;;  %4207 = vmatpush1.bf16.msra.mxu0 %v4206_v36  ;;  %v4212_v28 = vpack.c.bf16 %v1904_v16, %v1889_v9  ;;  %v4220_v11 = vpack.c.bf16 %v1906_v51, %v1891_v14  ;;  %v1880_v32 = vmax.f32 %v1820_v40, 0.0  ;;  %v1863_v23 = vmax.f32 %v1803_v17, 0.0  ;;  %v8688_v19 = vld [vmem:[#allocation48_spill] sm:$0xff]  ;;  %v8690_v36 = vld [vmem:[#allocation34_spill] sm:$0xff]  ;;  %v8694_v51 = vld [vmem:[#allocation59_spill] sm:$0xff] }
 0x29a   :  { %4209 = vmatprep.subr.bf16.mxu1 %v4208_v45  ;;  %4217 = vmatprep.subr.bf16.mxu0 %v4216_v30  ;;  %v1890_v29 = vmax.f32 %v1830_v50, 0.0  ;;  %v5541_v56 = vadd.f32 %v5429_v1, %v5498_v59  ;;  %v4214_v41 = vpack.c.bf16 %v1903_v62, %v1888_v34  ;;  %v1865_v25 = vmax.f32 %v1805_v3, 0.0  ;;  %v8684_v59 = vld [vmem:[#allocation29_spill] sm:$0xff]  ;;  %v8692_v54 = vld [vmem:[#allocation44_spill] sm:$0xff]  ;;  %v8696_v14 = vld [vmem:[#allocation50_spill] sm:$0xff] }
 0x29b   :  { %v4224_v39 = vpack.c.bf16 %v1878_v15, %v1863_v23  ;;  %v1698_v63 = vmul.f32 %v5377_v55, %v8684_v59  ;;  %v1713_v8 = vmul.f32 %v5387_v0, %v8685_v58  ;;  %v1729_v48 = vmul.f32 %v5394_v35, %v8686_v18  ;;  %v8698_v34 = vld [vmem:[#allocation35_spill] sm:$0xff] }
 0x29c   :  { %3928 = vmatmul.mubr.msk.f32.vlgmr.msra.gmra.mrb[16].mxu1 %vm406_vm0, %v5261_v52  ;;  %3936 = vmatmul.mubr.msk.f32.vlgmr.msra.gmra.mrb[24].mxu0 %vm406_vm0, %v5261_v52  ;;  %v4222_v7 = vpack.c.bf16 %v1905_v42, %v1890_v29  ;;  %v4232_v53 = vpack.c.bf16 %v1880_v32, %v1865_v25  ;;  %v1744_v37 = vmul.f32 %v5389_v33, %v8687_v31 }
 0x29d   :  { %4211 = vmatpush1.bf16.msra.mxu1 %v4210_v12  ;;  %1984 = vmatprep.mubr.f32.mxu1 %v8666_v47  ;;  %v1728_v13 = vmul.f32 %v5394_v35, %v8688_v19  ;;  %v1743_v45 = vmul.f32 %v5389_v33, %v8689_v20  ;;  %v1703_v60 = vmul.f32 %v5377_v55, %v8690_v36 }
 0x29e   :  { %4213 = vmatprep.subr.bf16.mxu1 %v4212_v28  ;;  %4219 = vmatpush1.bf16.msra.mxu0 %v4218_v24  ;;  %v1715_v16 = vmul.f32 %v5387_v0, %v8691_v38  ;;  %v1817_v30 = vadd.f32 %v5429_v1, %v1713_v8  ;;  %v1718_v4 = vmul.f32 %v5387_v0, %v8692_v54  ;;  %v8697_v24 = vld [vmem:[#allocation58_spill] sm:$0xff] }
 0x29f   :  { %4221 = vmatprep.subr.bf16.mxu0 %v4220_v11  ;;  %2097 = vmatprep.mubr.f32.mxu0 %v8666_v47  ;;  %v1700_v22 = vmul.f32 %v5377_v55, %v8693_v10  ;;  %v1746_v40 = vmul.f32 %v5389_v33, %v8694_v51  ;;  %v1848_v9 = vadd.f32 %v5506_v43, %v1744_v37 }
 0x2a0   :  { %3929 = vmatmul.mubr.msk.f32.gmra.mrb[18].mxu1 %vm406_vm0, %v5271_v27  ;;  %3937 = vmatmul.mubr.msk.f32.gmra.mrb[26].mxu0 %vm406_vm0, %v5271_v27  ;;  %v1819_v17 = vadd.f32 %v5429_v1, %v1715_v16  ;;  %v1731_v50 = vmul.f32 %v5394_v35, %v8695_v61  ;;  %v1802_v12 = vadd.f32 %v5396_v57, %v1698_v63  ;;  %v1877_v32 = vmax.f32 %v1817_v30, 0.0  ;;  %v8700_v61 = vld [vmem:[#allocation61_spill] sm:$0xff] }
 0x2a1   :  { %4215 = vmatpush1.bf16.msra.mxu1 %v4214_v41  ;;  %1990 = vmatprep.mubr.f32.mxu1 %v8666_v47  ;;  %v1850_v62 = vadd.f32 %v5506_v43, %v1746_v40  ;;  %v1730_v3 = vmul.f32 %v5394_v35, %v8696_v14  ;;  %v1833_v28 = vadd.f32 %v5476_v5, %v1729_v48  ;;  %v8699_v41 = vld [vmem:[#allocation45_spill] sm:$0xff]  ;;  %v8702_v14 = vld [vmem:[#allocation62_spill] sm:$0xff] }
 0x2a2   :  { %4225 = vmatprep.subr.bf16.mxu1 %v4224_v39  ;;  %4223 = vmatpush1.bf16.msra.mxu0 %v4222_v7  ;;  %v1804_v15 = vadd.f32 %v5396_v57, %v1700_v22  ;;  %v1745_v42 = vmul.f32 %v5389_v33, %v8697_v24  ;;  %v1704_v11 = vmul.f32 %v5377_v55, %v8698_v34  ;;  %v1908_v39 = vmax.f32 %v1848_v9, 0.0 }
 0x2a3   :  { %4233 = vmatprep.subr.bf16.mxu0 %v4232_v53  ;;  %2103 = vmatprep.mubr.f32.mxu0 %v8666_v47  ;;  %v1847_v23 = vadd.f32 %v5506_v43, %v1743_v45  ;;  %v1835_v29 = vadd.f32 %v5476_v5, %v1731_v50  ;;  %v1719_v25 = vmul.f32 %v5387_v0, %v8699_v41  ;;  %v1879_v53 = vmax.f32 %v1819_v17, 0.0 }
 0x2a4   :  { %3930 = vmatmul.mubr.msk.f32.gmra.mrb[20].mxu1 %vm406_vm0, %v5285_v44  ;;  %3938 = vmatmul.mubr.msk.f32.gmra.mrb[28].mxu0 %vm406_vm0, %v5285_v44  ;;  %v1822_v7 = vadd.f32 %v5429_v1, %v1718_v4  ;;  %v1849_v59 = vadd.f32 %v5506_v43, %v1745_v42  ;;  %v1862_v63 = vmax.f32 %v1802_v12, 0.0  ;;  %v1832_v58 = vadd.f32 %v5476_v5, %v1728_v13  ;;  %v8701_v12 = vld [vmem:[#allocation33_spill] sm:$0xff]  ;;  %v8704_v42 = vld [vmem:[#allocation60_spill] sm:$0xff] }
 0x2a5   :  { %1996 = vmatprep.mubr.f32.mxu1 %v8666_v47  ;;  %2109 = vmatprep.mubr.f32.mxu0 %v8666_v47  ;;  %v1910_v0 = vmax.f32 %v1850_v62, 0.0  ;;  %v1823_v8 = vadd.f32 %v5429_v1, %v1719_v25  ;;  %v1893_v18 = vmax.f32 %v1833_v28, 0.0  ;;  %v1807_v48 = vadd.f32 %v5396_v57, %v1703_v60  ;;  %v8703_v28 = vld [vmem:[#allocation53_spill] sm:$0xff]  ;;  %v8706_v25 = vld [vmem:[#allocation52_spill] sm:$0xff] }
 0x2a6   :  { %v1864_v31 = vmax.f32 %v1804_v15, 0.0  ;;  %v1834_v37 = vadd.f32 %v5476_v5, %v1730_v3  ;;  %v4226_v19 = vpack.c.bf16 %v1877_v32, %v1862_v63  ;;  %v1907_v20 = vmax.f32 %v1847_v23, 0.0 }
 0x2a7   :  { %v1895_v45 = vmax.f32 %v1835_v29, 0.0  ;;  %v1808_v36 = vadd.f32 %v5396_v57, %v1704_v11  ;;  %v4228_v13 = vpack.c.bf16 %v1908_v39, %v1893_v18  ;;  %v1882_v38 = vmax.f32 %v1822_v7, 0.0  ;;  %v8705_v11 = vld [vmem:[#allocation54_spill] sm:$0xff] }
 0x2a8   :  { %3931 = vmatmul.mubr.msk.f32.gmra.mrb[22].mxu1 %vm406_vm0, %v5300_v2  ;;  %3939 = vmatmul.mubr.msk.f32.gmra.mrb[30].mxu0 %vm406_vm0, %v5300_v2  ;;  %v4234_v1 = vpack.c.bf16 %v1879_v53, %v1864_v31  ;;  %v1909_v16 = vmax.f32 %v1849_v59, 0.0  ;;  %v1892_v60 = vmax.f32 %v1832_v58, 0.0  ;;  %v1883_v54 = vmax.f32 %v1823_v8, 0.0 }
 0x2a9   :  { %2002 = vmatprep.mubr.f32.mxu1 %v8666_v47  ;;  %2115 = vmatprep.mubr.f32.mxu0 %v8666_v47  ;;  %v4236_v30 = vpack.c.bf16 %v1910_v0, %v1895_v45  ;;  %v1867_v4 = vmax.f32 %v1807_v48, 0.0  ;;  %v1894_v10 = vmax.f32 %v1834_v37, 0.0  ;;  %v1868_v51 = vmax.f32 %v1808_v36, 0.0 }
 0x2aa   :  { %v4230_v22 = vpack.c.bf16 %v1907_v20, %v1892_v60  ;;  %v1748_v50 = vmul.f32 %v5389_v33, %v8700_v61  ;;  %v1702_v62 = vmul.f32 %v5377_v55, %v8701_v12  ;;  %v1749_v3 = vmul.f32 %v5389_v33, %v8702_v14 }
 0x2ab   :  { %v4240_v40 = vpack.c.bf16 %v1882_v38, %v1867_v4  ;;  %v4238_v9 = vpack.c.bf16 %v1909_v16, %v1894_v10  ;;  %v4248_v17 = vpack.c.bf16 %v1883_v54, %v1868_v51  ;;  %v1733_v15 = vmul.f32 %v5394_v35, %v8703_v28 }
 0x2ac   :  { %3932 = vmatmul.mubr.msk.f32.gmra.mrb[24].mxu1 %vm406_vm0, %v5314_v26  ;;  %3940 = vmatmul.mubr.msk.f32.gmra.mrb[32].mxu0 %vm406_vm0, %v5314_v26  ;;  %v1852_v24 = vadd.f32 %v5506_v43, %v1748_v50  ;;  %v1747_v34 = vmul.f32 %v5389_v33, %v8704_v42  ;;  %v1806_v55 = vadd.f32 %v5396_v57, %v1702_v62  ;;  %v1881_v41 = vmax.f32 %v5541_v56, 0.0 }
 0x2ad   :  { %2008 = vmatprep.mubr.f32.mxu1 %v8666_v47  ;;  %2121 = vmatprep.mubr.f32.mxu0 %v8666_v47  ;;  %v1734_v32 = vmul.f32 %v5394_v35, %v8705_v11  ;;  %v1853_v23 = vadd.f32 %v5506_v43, %v1749_v3  ;;  %v1837_v29 = vadd.f32 %v5476_v5, %v1733_v15 }
 0x2ae   :  { %v1732_v33 = vmul.f32 %v5394_v35, %v8706_v25  ;;  %v1851_v39 = vadd.f32 %v5506_v43, %v1747_v34  ;;  %v1912_v57 = vmax.f32 %v1852_v24, 0.0  ;;  %v1866_v53 = vmax.f32 %v1806_v55, 0.0 }
 0x2af   :  { %v1838_v7 = vadd.f32 %v5476_v5, %v1734_v32  ;;  %v1913_v56 = vmax.f32 %v1853_v23, 0.0  ;;  %v1897_v35 = vmax.f32 %v1837_v29, 0.0 }
 0x2b0   :  { %3933 = vmatmul.mubr.msk.f32.gmra.mrb[26].mxu1 %vm406_vm0, %v5328_v46  ;;  %3941 = vmatmul.mubr.msk.f32.gmra.mrb[34].mxu0 %vm406_vm0, %v5328_v46  ;;  %v1836_v59 = vadd.f32 %v5476_v5, %v1732_v33  ;;  %v4242_v63 = vpack.c.bf16 %v1881_v41, %v1866_v53  ;;  %v1911_v43 = vmax.f32 %v1851_v39, 0.0 }
 0x2b1   :  { %2014 = vmatprep.mubr.f32.mxu1 %v8666_v47  ;;  %2127 = vmatprep.mubr.f32.mxu0 %v8666_v47  ;;  %v1898_v58 = vmax.f32 %v1838_v7, 0.0  ;;  %v4244_v0 = vpack.c.bf16 %v1912_v57, %v1897_v35 }
 0x2b2   :  { %v1896_v8 = vmax.f32 %v1836_v59, 0.0 }
 0x2b3   :  { %v4252_v18 = vpack.c.bf16 %v1913_v56, %v1898_v58 }
 0x2b4   :  { %3934 = vmatmul.mubr.msk.f32.gmra.mrb[28].mxu1 %vm406_vm0, %v5342_v6  ;;  %3942 = vmatmul.mubr.msk.f32.gmra.mrb[36].mxu0 %vm406_vm0, %v5342_v6  ;;  %v4246_v5 = vpack.c.bf16 %v1911_v43, %v1896_v8 }
 0x2b5   :  { %2020 = vmatprep.mubr.f32.mxu1 %v8666_v47  ;;  %2133 = vmatprep.mubr.f32.mxu0 %v8666_v47 }
 0x2b8   :  { %3935 = vmatmul.mubr.msk.f32.gmra.mrb[30].mxu1 %vm406_vm0, %v5356_v21  ;;  %3943 = vmatmul.mubr.msk.f32.gmra.mrb[38].mxu0 %vm406_vm0, %v5356_v21 }
 0x2b9   :  { %2204 = vmatprep.mubr.f32.mxu1 %v8666_v47  ;;  %2317 = vmatprep.mubr.f32.mxu0 %v8666_v47 }
 0x2bc   :  { %3944 = vmatmul.mubr.msk.f32.vlgmr.msra.gmra.mrb[32].mxu1 %vm406_vm0, %v5261_v52  ;;  %3952 = vmatmul.mubr.msk.f32.vlgmr.msra.gmra.mrb[40].mxu0 %vm406_vm0, %v5261_v52 }
 0x2bd   :  { %4227 = vmatpush1.bf16.msra.mxu1 %v4226_v19  ;;  %2210 = vmatprep.mubr.f32.mxu1 %v8666_v47 }
 0x2be   :  { %4229 = vmatprep.subr.bf16.mxu1 %v4228_v13  ;;  %4235 = vmatpush1.bf16.msra.mxu0 %v4234_v1  ;;  %v5790_v36 = vpop.permute.xlu1 %368 }
 0x2bf   :  { %4237 = vmatprep.subr.bf16.mxu0 %v4236_v30  ;;  %2323 = vmatprep.mubr.f32.mxu0 %v8666_v47 }
 0x2c0   :  { %3945 = vmatmul.mubr.msk.f32.gmra.mrb[34].mxu1 %vm406_vm0, %v5271_v27  ;;  %3953 = vmatmul.mubr.msk.f32.gmra.mrb[42].mxu0 %vm406_vm0, %v5271_v27 }
 0x2c1   :  { %4231 = vmatpush1.bf16.msra.mxu1 %v4230_v22  ;;  %2216 = vmatprep.mubr.f32.mxu1 %v8666_v47 }
 0x2c2   :  { %4241 = vmatprep.subr.bf16.mxu1 %v4240_v40  ;;  %4239 = vmatpush1.bf16.msra.mxu0 %v4238_v9  ;;  %v5809_v22 = vpop.permute.xlu1 %378 }
 0x2c3   :  { %4249 = vmatprep.subr.bf16.mxu0 %v4248_v17  ;;  %2329 = vmatprep.mubr.f32.mxu0 %v8666_v47 }
 0x2c4   :  { %3946 = vmatmul.mubr.msk.f32.gmra.mrb[36].mxu1 %vm406_vm0, %v5285_v44  ;;  %3954 = vmatmul.mubr.msk.f32.gmra.mrb[44].mxu0 %vm406_vm0, %v5285_v44 }
 0x2c5   :  { %2222 = vmatprep.mubr.f32.mxu1 %v8666_v47  ;;  %2335 = vmatprep.mubr.f32.mxu0 %v8666_v47 }
 0x2c6   :  { %v5862_v39 = vpop.permute.xlu1 %383 }
 0x2c8   :  { %3947 = vmatmul.mubr.msk.f32.gmra.mrb[38].mxu1 %vm406_vm0, %v5300_v2  ;;  %3955 = vmatmul.mubr.msk.f32.gmra.mrb[46].mxu0 %vm406_vm0, %v5300_v2 }
 0x2c9   :  { %2228 = vmatprep.mubr.f32.mxu1 %v8666_v47  ;;  %2341 = vmatprep.mubr.f32.mxu0 %v8666_v47 }
 0x2cc   :  { %3948 = vmatmul.mubr.msk.f32.gmra.mrb[40].mxu1 %vm406_vm0, %v5314_v26  ;;  %3956 = vmatmul.mubr.msk.f32.gmra.mrb[48].mxu0 %vm406_vm0, %v5314_v26 }
 0x2cd   :  { %2234 = vmatprep.mubr.f32.mxu1 %v8666_v47  ;;  %2347 = vmatprep.mubr.f32.mxu0 %v8666_v47 }
 0x2d0   :  { %3949 = vmatmul.mubr.msk.f32.gmra.mrb[42].mxu1 %vm406_vm0, %v5328_v46  ;;  %3957 = vmatmul.mubr.msk.f32.gmra.mrb[50].mxu0 %vm406_vm0, %v5328_v46 }
 0x2d1   :  { %2240 = vmatprep.mubr.f32.mxu1 %v8666_v47  ;;  %2353 = vmatprep.mubr.f32.mxu0 %v8666_v47 }
 0x2d4   :  { %3950 = vmatmul.mubr.msk.f32.gmra.mrb[44].mxu1 %vm406_vm0, %v5342_v6  ;;  %3958 = vmatmul.mubr.msk.f32.gmra.mrb[52].mxu0 %vm406_vm0, %v5342_v6 }
 0x2d5   :  { %2246 = vmatprep.mubr.f32.mxu1 %v8666_v47  ;;  %2359 = vmatprep.mubr.f32.mxu0 %v8666_v47 }
 0x2d8   :  { %3951 = vmatmul.mubr.msk.f32.gmra.mrb[46].mxu1 %vm406_vm0, %v5356_v21  ;;  %3959 = vmatmul.mubr.msk.f32.gmra.mrb[54].mxu0 %vm406_vm0, %v5356_v21 }
 0x2d9   :  { %2430 = vmatprep.mubr.f32.mxu1 %v8666_v47  ;;  %2543 = vmatprep.mubr.f32.mxu0 %v8666_v47 }
 0x2dc   :  { %3960 = vmatmul.mubr.msk.f32.vlgmr.msra.gmra.mrb[48].mxu1 %vm406_vm0, %v5261_v52  ;;  %3968 = vmatmul.mubr.msk.f32.vlgmr.msra.gmra.mrb[56].mxu0 %vm406_vm0, %v5261_v52 }
 0x2dd   :  { %4243 = vmatpush1.bf16.msra.mxu1 %v4242_v63  ;;  %2436 = vmatprep.mubr.f32.mxu1 %v8666_v47 }
 0x2de   :  { %4245 = vmatprep.subr.bf16.mxu1 %v4244_v0  ;;  %4251 = vmatpush3.bf16.msra.mxu0 %v4248_v17 }
 0x2df   :  { %4253 = vmatprep.subr.bf16.mxu0 %v4252_v18  ;;  %2549 = vmatprep.mubr.f32.mxu0 %v8666_v47 }
 0x2e0   :  { %3961 = vmatmul.mubr.msk.f32.gmra.mrb[50].mxu1 %vm406_vm0, %v5271_v27  ;;  %3969 = vmatmul.mubr.msk.f32.gmra.mrb[58].mxu0 %vm406_vm0, %v5271_v27 }
 0x2e1   :  { %4247 = vmatpush1.bf16.msra.mxu1 %v4246_v5  ;;  %2442 = vmatprep.mubr.f32.mxu1 %v8666_v47 }
 0x2e2   :  { %4255 = vmatpush3.bf16.msra.mxu0 %v4252_v18  ;;  %2555 = vmatprep.mubr.f32.mxu0 %v8666_v47 }
 0x2e4   :  { %3962 = vmatmul.mubr.msk.f32.gmra.mrb[52].mxu1 %vm406_vm0, %v5285_v44  ;;  %3970 = vmatmul.mubr.msk.f32.gmra.mrb[60].mxu0 %vm406_vm0, %v5285_v44 }
 0x2e5   :  { %2448 = vmatprep.mubr.f32.mxu1 %v8666_v47  ;;  %2561 = vmatprep.mubr.f32.mxu0 %v8666_v47 }
 0x2e8   :  { %3963 = vmatmul.mubr.msk.f32.gmra.mrb[54].mxu1 %vm406_vm0, %v5300_v2  ;;  %3971 = vmatmul.mubr.msk.f32.gmra.mrb[62].mxu0 %vm406_vm0, %v5300_v2 }
 0x2e9   :  { %2454 = vmatprep.mubr.f32.mxu1 %v8666_v47  ;;  %2567 = vmatprep.mubr.f32.mxu0 %v8666_v47 }
 0x2ec   :  { %3964 = vmatmul.mubr.msk.f32.gmra.mrb[56].mxu1 %vm406_vm0, %v5314_v26  ;;  %3972 = vmatmul.mubr.msk.f32.gmra.mrb[64].mxu0 %vm406_vm0, %v5314_v26 }
 0x2ed   :  { %2460 = vmatprep.mubr.f32.mxu1 %v8666_v47  ;;  %2573 = vmatprep.mubr.f32.mxu0 %v8666_v47 }
 0x2f0   :  { %3965 = vmatmul.mubr.msk.f32.gmra.mrb[58].mxu1 %vm406_vm0, %v5328_v46  ;;  %3973 = vmatmul.mubr.msk.f32.gmra.mrb[66].mxu0 %vm406_vm0, %v5328_v46 }
 0x2f1   :  { %2466 = vmatprep.mubr.f32.mxu1 %v8666_v47  ;;  %2579 = vmatprep.mubr.f32.mxu0 %v8666_v47 }
 0x2f4   :  { %3966 = vmatmul.mubr.msk.f32.gmra.mrb[60].mxu1 %vm406_vm0, %v5342_v6  ;;  %3974 = vmatmul.mubr.msk.f32.gmra.mrb[68].mxu0 %vm406_vm0, %v5342_v6 }
 0x2f5   :  { %2472 = vmatprep.mubr.f32.mxu1 %v8666_v47  ;;  %2585 = vmatprep.mubr.f32.mxu0 %v8666_v47 }
 0x2f8   :  { %3967 = vmatmul.mubr.msk.f32.gmra.mrb[62].mxu1 %vm406_vm0, %v5356_v21  ;;  %3975 = vmatmul.mubr.msk.f32.gmra.mrb[70].mxu0 %vm406_vm0, %v5356_v21 }
 0x2f9   :  { %2656 = vmatprep.mubr.f32.mxu1 %v8666_v47  ;;  %4156 = vmatprep.mubr.msk.f32.mxu0 %vm406_vm0, %v5261_v52 }
 0x2fc   :  { %3976 = vmatmul.mubr.msk.f32.vlgmr.msra.gmra.mrb[64].mxu1 %vm406_vm0, %v5261_v52  ;;  %4157 = vmatmul.mubr.msk.f32.vlgmr.msra.gmra.mrb[72].mxu0 %vm406_vm0, %v5271_v27 }
 0x2fd   :  { %2662 = vmatprep.mubr.f32.mxu1 %v8666_v47  ;;  %4159 = vmatprep.mubr.msk.f32.mxu0 %vm406_vm0, %v5285_v44 }
 0x300   :  { %3977 = vmatmul.mubr.msk.f32.gmra.mrb[66].mxu1 %vm406_vm0, %v5271_v27  ;;  %4160 = vmatmul.mubr.msk.f32.gmra.mrb[74].mxu0 %vm406_vm0, %v5300_v2 }
 0x301   :  { %2668 = vmatprep.mubr.f32.mxu1 %v8666_v47  ;;  %4162 = vmatprep.mubr.msk.f32.mxu0 %vm406_vm0, %v5314_v26 }
 0x304   :  { %3978 = vmatmul.mubr.msk.f32.gmra.mrb[68].mxu1 %vm406_vm0, %v5285_v44  ;;  %4163 = vmatmul.mubr.msk.f32.gmra.mrb[76].mxu0 %vm406_vm0, %v5328_v46 }
 0x305   :  { %2674 = vmatprep.mubr.f32.mxu1 %v8666_v47  ;;  %4165 = vmatprep.mubr.msk.f32.mxu0 %vm406_vm0, %v5342_v6 }
 0x308   :  { %3979 = vmatmul.mubr.msk.f32.gmra.mrb[70].mxu1 %vm406_vm0, %v5300_v2  ;;  %4166 = vmatmul.mubr.msk.f32.gmra.mrb[78].mxu0 %vm406_vm0, %v5356_v21 }
 0x309   :  { %2680 = vmatprep.mubr.f32.mxu1 %v8666_v47 }
 0x30c   :  { %3980 = vmatmul.mubr.msk.f32.gmra.mrb[72].mxu1 %vm406_vm0, %v5314_v26 }
 0x30d   :  { %2686 = vmatprep.mubr.f32.mxu1 %v8666_v47 }
 0x310   :  { %3981 = vmatmul.mubr.msk.f32.gmra.mrb[74].mxu1 %vm406_vm0, %v5328_v46 }
 0x311   :  { %2692 = vmatprep.mubr.f32.mxu1 %v8666_v47 }
 0x314   :  { %3982 = vmatmul.mubr.msk.f32.gmra.mrb[76].mxu1 %vm406_vm0, %v5342_v6 }
 0x315   :  { %2698 = vmatprep.mubr.f32.mxu1 %v8666_v47 }
 0x318   :  { %3983 = vmatmul.mubr.msk.f32.gmra.mrb[78].mxu1 %vm406_vm0, %v5356_v21  ;;  %v5796_v21 = vpop.permute.xlu0 %373 }
 0x31b   :  { %v497_v52 = vpop.f32.mrb[0].mxu0  ;;  %v610_v27 = vpop.f32.mrb[0].mxu1 }
 0x31c   :  { %v499_v44 = vpop.f32.mrb[1].mxu0  ;;  %v612_v2 = vpop.f32.mrb[1].mxu1  ;;  %v5799_v1 = vadd.f32 %v497_v52, %v5790_v36  ;;  %v5807_v10 = vadd.f32 %v610_v27, %v5790_v36 }
 0x31d   :  { %v5802_v16 = vadd.f32 %v499_v44, %v5790_v36  ;;  %v5838_v15 = vadd.f32 %v612_v2, %v5790_v36  ;;  %v5871_v59 = vpop.permute.xlu0 %388 }
 0x31e   :  { %v818_v61 = vmul.f32 %v5799_v1, %v5799_v1  ;;  %v820_v28 = vmul.f32 %v5807_v10, %v5807_v10 }
 0x31f   :  { %v503_v26 = vpop.f32.mrb[2].mxu0  ;;  %v616_v48 = vpop.f32.mrb[2].mxu1  ;;  %v819_v50 = vmul.f32 %v5802_v16, %v5802_v16  ;;  %v762_v24 = vadd.f32 %v5802_v16, %v5799_v1  ;;  %v821_v35 = vmul.f32 %v5838_v15, %v5838_v15 }
 0x320   :  { %v505_v31 = vpop.f32.mrb[3].mxu0  ;;  %v618_v37 = vpop.f32.mrb[3].mxu1  ;;  %v5812_v51 = vadd.f32 %v503_v26, %v5796_v21  ;;  %v5845_v34 = vadd.f32 %v616_v48, %v5796_v21 }
 0x321   :  { %v5815_v40 = vadd.f32 %v505_v31, %v5796_v21  ;;  %v858_v32 = vadd.f32 %v819_v50, %v818_v61  ;;  %v5869_v53 = vadd.f32 %v618_v37, %v5796_v21  ;;  %v763_v56 = vadd.f32 %v762_v24, %v5807_v10 }
 0x322   :  { %8707 = vst [vmem:[#allocation47_spill] sm:$0xff] %v5812_v51  ;;  %8711 = vst [vmem:[#allocation3_spill] sm:$0xff] %v5845_v34  ;;  %v823_v23 = vmul.f32 %v5812_v51, %v5812_v51  ;;  %v825_v18 = vmul.f32 %v5845_v34, %v5845_v34 }
 0x323   :  { %v509_v19 = vpop.f32.mrb[4].mxu0  ;;  %v622_v46 = vpop.f32.mrb[4].mxu1  ;;  %8708 = vst [vmem:[#allocation2_spill] sm:$0xff] %v5815_v40  ;;  %v768_v42 = vadd.f32 %v5815_v40, %v5812_v51  ;;  %v824_v29 = vmul.f32 %v5815_v40, %v5815_v40  ;;  %8713 = vst [vmem:[#allocation16_spill] sm:$0xff] %v5869_v53  ;;  %v859_v0 = vadd.f32 %v858_v32, %v820_v28 }
 0x324   :  { %v511_v20 = vpop.f32.mrb[5].mxu0  ;;  %v624_v45 = vpop.f32.mrb[5].mxu1  ;;  %v5830_v14 = vadd.f32 %v509_v19, %v5809_v22  ;;  %v5860_v33 = vadd.f32 %v622_v46, %v5809_v22  ;;  %v826_v31 = vmul.f32 %v5869_v53, %v5869_v53 }
 0x325   :  { %v5833_v3 = vadd.f32 %v511_v20, %v5809_v22  ;;  %v769_v63 = vadd.f32 %v768_v42, %v5845_v34  ;;  %v864_v8 = vadd.f32 %v824_v29, %v823_v23  ;;  %v5896_v26 = vadd.f32 %v624_v45, %v5809_v22 }
 0x326   :  { %8709 = vst [vmem:[#allocation4_spill] sm:$0xff] %v5830_v14  ;;  %8712 = vst [vmem:[#allocation5_spill] sm:$0xff] %v5860_v33  ;;  %v828_v7 = vmul.f32 %v5830_v14, %v5830_v14  ;;  %v830_v2 = vmul.f32 %v5860_v33, %v5860_v33  ;;  %v860_v45 = vadd.f32 %v859_v0, %v821_v35 }
 0x327   :  { %v515_v6 = vpop.f32.mrb[6].mxu0  ;;  %v5792_v13 = vpop.f32.mrb[6].mxu1  ;;  %8710 = vst [vmem:[#allocation6_spill] sm:$0xff] %v5833_v3  ;;  %v829_v57 = vmul.f32 %v5833_v3, %v5833_v3  ;;  %8714 = vst [vmem:[#allocation21_spill] sm:$0xff] %v5896_v26  ;;  %v774_v46 = vadd.f32 %v5833_v3, %v5830_v14  ;;  %v865_v28 = vadd.f32 %v864_v8, %v825_v18 }
 0x328   :  { %v517_v47 = vpop.f32.mrb[7].mxu0  ;;  %v5794_v38 = vpop.f32.mrb[7].mxu1  ;;  %v5884_v5 = vadd.f32 %v515_v6, %v5862_v39  ;;  %v770_v6 = vadd.f32 %v769_v63, %v5869_v53  ;;  %v5912_v61 = vadd.f32 %v5792_v13, %v5862_v39  ;;  %v831_v24 = vmul.f32 %v5896_v26, %v5896_v26 }
 0x329   :  { %v5887_v52 = vadd.f32 %v517_v47, %v5862_v39  ;;  %v870_v48 = vadd.f32 %v829_v57, %v828_v7  ;;  %v764_v47 = vadd.f32 %v763_v56, %v5838_v15  ;;  %v5936_v56 = vadd.f32 %v5794_v38, %v5862_v39 }
 0x32a   :  { %8717 = vst [vmem:[#allocation15_spill] sm:$0xff] %v5912_v61  ;;  %v833_v38 = vmul.f32 %v5884_v5, %v5884_v5 }
 0x32b   :  { %v521_v60 = vpop.f32.mrb[8].mxu0  ;;  %v634_v30 = vpop.f32.mrb[8].mxu1  ;;  %v871_v23 = vadd.f32 %v870_v48, %v830_v2  ;;  %8720 = vst [vmem:[#allocation11_spill] sm:$0xff] %v5936_v56  ;;  %v866_v48 = vadd.f32 %v865_v28, %v826_v31 }
 0x32c   :  { %v523_v54 = vpop.f32.mrb[9].mxu0  ;;  %v5804_v4 = vpop.f32.mrb[9].mxu1  ;;  %v5901_v37 = vadd.f32 %v521_v60, %v5871_v59  ;;  %v780_v60 = vadd.f32 %v5887_v52, %v5884_v5  ;;  %v5922_v42 = vadd.f32 %v634_v30, %v5871_v59 }
 0x32d   :  { %v5904_v19 = vadd.f32 %v523_v54, %v5871_v59  ;;  %v5938_v30 = vpop.permute.xlu1 %393 }
 0x32e   :  { %8715 = vst [vmem:[#allocation9_spill] sm:$0xff] %v5901_v37  ;;  %8719 = vst [vmem:[#allocation22_spill] sm:$0xff] %v5922_v42  ;;  %v838_v29 = vmul.f32 %v5901_v37, %v5901_v37  ;;  %v781_v18 = vadd.f32 %v780_v60, %v5912_v61 }
 0x32f   :  { %v5817_v9 = vpop.f32.mrb[10].mxu0  ;;  %v5819_v17 = vpop.f32.mrb[10].mxu1  ;;  %8716 = vst [vmem:[#allocation8_spill] sm:$0xff] %v5904_v19  ;;  %v786_v13 = vadd.f32 %v5904_v19, %v5901_v37  ;;  %v839_v7 = vmul.f32 %v5904_v19, %v5904_v19  ;;  %v872_v37 = vadd.f32 %v871_v23, %v831_v24  ;;  %v835_v24 = vmul.f32 %v5912_v61, %v5912_v61 }
 0x330   :  { %v5825_v12 = vpop.f32.mrb[11].mxu0  ;;  %v5827_v62 = vpop.f32.mrb[11].mxu1  ;;  %v5964_v19 = vadd.f32 %v5817_v9, %v5938_v30 }
 0x331   :  { %v882_v28 = vadd.f32 %v839_v7, %v838_v29  ;;  %v775_v29 = vadd.f32 %v774_v46, %v5860_v33  ;;  %v782_v7 = vadd.f32 %v781_v18, %v5936_v56  ;;  %v836_v46 = vmul.f32 %v5936_v56, %v5936_v56 }
 0x332   :  { %8723 = vst [vmem:[#allocation12_spill] sm:$0xff] %v5964_v19 }
 0x333   :  { %v5847_v55 = vpop.f32.mrb[12].mxu0  ;;  %v5849_v11 = vpop.f32.mrb[12].mxu1 }
 0x334   :  { %v5855_v41 = vpop.f32.mrb[13].mxu0  ;;  %v5857_v25 = vpop.f32.mrb[13].mxu1 }
 0x337   :  { %v5877_v43 = vpop.f32.mrb[14].mxu0  ;;  %v5879_v58 = vpop.f32.mrb[14].mxu1 }
 0x338   :  { %v5889_v27 = vpop.f32.mrb[15].mxu0  ;;  %v5891_v44 = vpop.f32.mrb[15].mxu1 }
 0x33b   :  { %v4138_v20 = vpop.f32.mrb[16].mxu0 }
 0x33c   :  { %v5917_v50 = vadd.f32 %v4138_v20, %v5796_v21  ;;  %v723_v54 = vpop.f32.mrb[17].mxu0  ;;  %v834_v20 = vmul.f32 %v5887_v52, %v5887_v52 }
 0x33d   :  { %v5925_v32 = vadd.f32 %v723_v54, %v5790_v36  ;;  %v5956_v54 = vpop.permute.xlu0 %398 }
 0x33e   :  { %8718 = vst [vmem:[#allocation19_spill] sm:$0xff] %v5917_v50  ;;  %v771_v57 = vadd.f32 %v770_v6, %v5917_v50  ;;  %v827_v8 = vmul.f32 %v5917_v50, %v5917_v50  ;;  %v840_v6 = vmul.f32 %v5922_v42, %v5922_v42  ;;  %v5968_v50 = vadd.f32 %v5825_v12, %v5938_v30 }
 0x33f   :  { %v4141_v35 = vpop.f32.mrb[18].mxu0  ;;  %v765_v63 = vadd.f32 %v764_v47, %v5925_v32  ;;  %v822_v0 = vmul.f32 %v5925_v32, %v5925_v32  ;;  %v5954_v47 = vadd.f32 %v5804_v4, %v5871_v59  ;;  %v5982_v9 = vadd.f32 %v5855_v41, %v5956_v54 }
 0x340   :  { %v733_v2 = vpop.f32.mrb[19].mxu0  ;;  %772 = vadd.xlane.f32.xlu1 %v771_v57  ;;  %v787_v57 = vadd.f32 %v786_v13, %v5922_v42  ;;  %8724 = vst [vmem:[#allocation14_spill] sm:$0xff] %v5968_v50  ;;  %v5971_v4 = vadd.f32 %v4141_v35, %v5862_v39  ;;  %v5978_v13 = vadd.f32 %v5847_v55, %v5956_v54 }
 0x341   :  { %8721 = vst [vmem:[#allocation7_spill] sm:$0xff] %v5954_v47  ;;  %v5959_v60 = vadd.f32 %v733_v2, %v5809_v22  ;;  %766 = vadd.xlane.f32.xlu0 %v765_v63  ;;  %v861_v31 = vadd.f32 %v860_v45, %v822_v0  ;;  %v867_v2 = vadd.f32 %v866_v48, %v827_v8  ;;  %8727 = vst [vmem:[#allocation17_spill] sm:$0xff] %v5982_v9 }
 0x342   :  { %8725 = vst [vmem:[#allocation18_spill] sm:$0xff] %v5971_v4  ;;  %8726 = vst [vmem:[#allocation13_spill] sm:$0xff] %v5978_v13  ;;  %v876_v35 = vadd.f32 %v834_v20, %v833_v38  ;;  %v841_v55 = vmul.f32 %v5954_v47, %v5954_v47  ;;  %v5993_v41 = vadd.f32 %v5819_v17, %v5938_v30 }
 0x343   :  { %8722 = vst [vmem:[#allocation10_spill] sm:$0xff] %v5959_v60  ;;  %v4144_v53 = vpop.f32.mrb[20].mxu0  ;;  %v832_v45 = vmul.f32 %v5959_v60, %v5959_v60  ;;  %v792_v0 = vadd.f32 %v5968_v50, %v5964_v19  ;;  %v783_v8 = vadd.f32 %v782_v7, %v5971_v4  ;;  %v788_v18 = vadd.f32 %v787_v57, %v5954_v47 }
 0x344   :  { %v743_v12 = vpop.f32.mrb[21].mxu0  ;;  %862 = vadd.xlane.f32.xlu1 %v861_v31  ;;  %8728 = vst [vmem:[#allocation20_spill] sm:$0xff] %v5993_v41  ;;  %v883_v48 = vadd.f32 %v882_v28, %v840_v6  ;;  %v798_v38 = vadd.f32 %v5982_v9, %v5978_v13  ;;  %v848_v20 = vmul.f32 %v5978_v13, %v5978_v13 }
 0x345   :  { %868 = vadd.xlane.f32.xlu0 %v867_v2  ;;  %v873_v23 = vadd.f32 %v872_v37, %v832_v45  ;;  %v5996_v63 = vadd.f32 %v743_v12, %v5871_v59  ;;  %v849_v17 = vmul.f32 %v5982_v9, %v5982_v9  ;;  %v6010_v31 = vadd.f32 %v5849_v11, %v5956_v54  ;;  %v6023_v11 = vpop.permute.xlu1 %403 }
 0x346   :  { %v776_v45 = vadd.f32 %v775_v29, %v5896_v26  ;;  %v877_v57 = vadd.f32 %v876_v35, %v835_v24  ;;  %v843_v6 = vmul.f32 %v5964_v19, %v5964_v19  ;;  %v844_v28 = vmul.f32 %v5968_v50, %v5968_v50 }
 0x347   :  { %8729 = vst [vmem:[#allocation24_spill] sm:$0xff] %v5996_v63  ;;  %v4147_v37 = vpop.f32.mrb[22].mxu0  ;;  %8730 = vst [vmem:[#allocation23_spill] sm:$0xff] %v6010_v31  ;;  %v845_v12 = vmul.f32 %v5993_v41, %v5993_v41  ;;  %v6021_v7 = vadd.f32 %v5827_v62, %v5938_v30  ;;  %v842_v29 = vmul.f32 %v5996_v63, %v5996_v63 }
 0x348   :  { %v753_v2 = vpop.f32.mrb[23].mxu0  ;;  %874 = vadd.xlane.f32.xlu1 %v873_v23  ;;  %v789_v23 = vadd.f32 %v788_v18, %v5996_v63  ;;  %v793_v24 = vadd.f32 %v792_v0, %v5993_v41  ;;  %v6031_v35 = vadd.f32 %v5857_v25, %v5956_v54  ;;  %v837_v9 = vmul.f32 %v5971_v4, %v5971_v4 }
 0x349   :  { %784 = vadd.xlane.f32.xlu0 %v783_v8  ;;  %8731 = vst [vmem:[#allocation26_spill] sm:$0xff] %v6021_v7  ;;  %v777_v8 = vadd.f32 %v776_v45, %v5959_v60  ;;  %v894_v62 = vadd.f32 %v849_v17, %v848_v20  ;;  %v799_v13 = vadd.f32 %v798_v38, %v6010_v31 }
 0x34a   :  { %8732 = vst [vmem:[#allocation25_spill] sm:$0xff] %v6031_v35  ;;  %v850_v18 = vmul.f32 %v6010_v31, %v6010_v31  ;;  %v884_v47 = vadd.f32 %v883_v48, %v841_v55  ;;  %v6041_v0 = vadd.f32 %v5877_v43, %v6023_v11  ;;  %v6045_v25 = vadd.f32 %v5889_v27, %v6023_v11 }
 0x34b   :  { %v878_v45 = vadd.f32 %v877_v57, %v836_v46  ;;  %v888_v63 = vadd.f32 %v844_v28, %v843_v6  ;;  %v6048_v20 = vadd.f32 %v753_v2, %v5956_v54  ;;  %v846_v17 = vmul.f32 %v6021_v7, %v6021_v7 }
 0x34c   :  { %790 = vadd.xlane.f32.xlu1 %v789_v23  ;;  %8733 = vst [vmem:[#allocation41_spill] sm:$0xff] %v6041_v0  ;;  %8734 = vst [vmem:[#allocation46_spill] sm:$0xff] %v6045_v25  ;;  %v885_v38 = vadd.f32 %v884_v47, %v842_v29  ;;  %v6053_v55 = vadd.f32 %v4144_v53, %v5938_v30  ;;  %v851_v43 = vmul.f32 %v6031_v35, %v6031_v35 }
 0x34d   :  { %778 = vadd.xlane.f32.xlu0 %v777_v8  ;;  %8735 = vst [vmem:[#allocation28_spill] sm:$0xff] %v6048_v20  ;;  %v879_v48 = vadd.f32 %v878_v45, %v837_v9  ;;  %v800_v27 = vadd.f32 %v799_v13, %v6031_v35  ;;  %v794_v46 = vadd.f32 %v793_v24, %v6021_v7 }
 0x34e   :  { %8736 = vst [vmem:[#allocation37_spill] sm:$0xff] %v6053_v55  ;;  %v895_v57 = vadd.f32 %v894_v62, %v850_v18  ;;  %v804_v2 = vadd.f32 %v6045_v25, %v6041_v0  ;;  %v853_v47 = vmul.f32 %v6041_v0, %v6041_v0  ;;  %v854_v53 = vmul.f32 %v6045_v25, %v6045_v25 }
 0x34f   :  { %v889_v9 = vadd.f32 %v888_v63, %v845_v12  ;;  %v801_v6 = vadd.f32 %v800_v27, %v6048_v20  ;;  %v852_v28 = vmul.f32 %v6048_v20, %v6048_v20  ;;  %v795_v13 = vadd.f32 %v794_v46, %v6053_v55 }
 0x350   :  { %886 = vadd.xlane.f32.xlu1 %v885_v38  ;;  %v847_v23 = vmul.f32 %v6053_v55, %v6053_v55  ;;  %v6073_v29 = vadd.f32 %v5879_v58, %v6023_v11  ;;  %v896_v24 = vadd.f32 %v895_v57, %v851_v43  ;;  %v900_v8 = vadd.f32 %v854_v53, %v853_v47 }
 0x351   :  { %880 = vadd.xlane.f32.xlu0 %v879_v48  ;;  %v890_v62 = vadd.f32 %v889_v9, %v846_v17  ;;  %v6078_v18 = vadd.f32 %v5891_v44, %v6023_v11  ;;  %v6081_v45 = vadd.f32 %v4147_v37, %v6023_v11 }
 0x352   :  { %8737 = vst [vmem:[#allocation30_spill] sm:$0xff] %v6073_v29  ;;  %v805_v63 = vadd.f32 %v804_v2, %v6073_v29  ;;  %v897_v12 = vadd.f32 %v896_v24, %v852_v28  ;;  %v855_v58 = vmul.f32 %v6073_v29, %v6073_v29 }
 0x353   :  { %8738 = vst [vmem:[#allocation39_spill] sm:$0xff] %v6078_v18  ;;  %8739 = vst [vmem:[#allocation27_spill] sm:$0xff] %v6081_v45  ;;  %v891_v38 = vadd.f32 %v890_v62, %v847_v23  ;;  %v856_v17 = vmul.f32 %v6078_v18, %v6078_v18  ;;  %v857_v44 = vmul.f32 %v6081_v45, %v6081_v45 }
 0x354   :  { %802 = vadd.xlane.f32.xlu1 %v801_v6  ;;  %v806_v48 = vadd.f32 %v805_v63, %v6078_v18  ;;  %v901_v43 = vadd.f32 %v900_v8, %v855_v58 }
 0x355   :  { %796 = vadd.xlane.f32.xlu0 %v795_v13 }
 0x356   :  { %v807_v27 = vadd.f32 %v806_v48, %v6081_v45  ;;  %v902_v37 = vadd.f32 %v901_v43, %v856_v17 }
 0x358   :  { %898 = vadd.xlane.f32.xlu1 %v897_v12  ;;  %v903_v46 = vadd.f32 %v902_v37, %v857_v44 }
 0x359   :  { %892 = vadd.xlane.f32.xlu0 %v891_v38 }
 0x35d   :  { %808 = vadd.xlane.f32.xlu0 %v807_v27 }
 0x361   :  { %904 = vadd.xlane.f32.xlu0 %v903_v46 }
 0x36f   :  { %v1980_v57 = vpop.f32.mrb[16].mxu1  ;;  %v2093_v2 = vpop.f32.mrb[24].mxu0 }
 0x370   :  { %v1982_v47 = vpop.f32.mrb[17].mxu1  ;;  %v2095_v53 = vpop.f32.mrb[25].mxu0  ;;  %v6092_v8 = vadd.f32 %v1980_v57, %v5790_v36  ;;  %v6098_v38 = vadd.f32 %v2093_v2, %v5790_v36 }
 0x371   :  { %v6095_v62 = vadd.f32 %v1982_v47, %v5790_v36  ;;  %v6111_v46 = vadd.f32 %v2095_v53, %v5790_v36 }
 0x372   :  { %8740 = vst [vmem:[#allocation36_spill] sm:$0xff] %v6092_v8  ;;  %8742 = vst [vmem:[#allocation32_spill] sm:$0xff] %v6098_v38  ;;  %v2946_v27 = vmul.f32 %v6092_v8, %v6092_v8  ;;  %v2948_v45 = vmul.f32 %v6098_v38, %v6098_v38 }
 0x373   :  { %v1986_v9 = vpop.f32.mrb[18].mxu1  ;;  %v2099_v6 = vpop.f32.mrb[26].mxu0  ;;  %8741 = vst [vmem:[#allocation55_spill] sm:$0xff] %v6095_v62  ;;  %v2947_v44 = vmul.f32 %v6095_v62, %v6095_v62  ;;  %8745 = vst [vmem:[#allocation29_spill] sm:$0xff] %v6111_v46  ;;  %v2810_v2 = vadd.f32 %v6095_v62, %v6092_v8  ;;  %v2949_v31 = vmul.f32 %v6111_v46, %v6111_v46 }
 0x374   :  { %v1988_v28 = vpop.f32.mrb[19].mxu1  ;;  %v2101_v13 = vpop.f32.mrb[27].mxu0  ;;  %v6101_v58 = vadd.f32 %v1986_v9, %v5796_v21 }
 0x375   :  { %v6104_v48 = vadd.f32 %v1988_v28, %v5796_v21  ;;  %v6122_v28 = vadd.f32 %v2099_v6, %v5796_v21  ;;  %v2811_v62 = vadd.f32 %v2810_v2, %v6098_v38  ;;  %v3066_v8 = vadd.f32 %v2947_v44, %v2946_v27 }
 0x376   :  { %8743 = vst [vmem:[#allocation42_spill] sm:$0xff] %v6101_v58  ;;  %v2961_v53 = vmul.f32 %v6101_v58, %v6101_v58  ;;  %v6135_v6 = vadd.f32 %v2101_v13, %v5796_v21 }
 0x377   :  { %v1992_v23 = vpop.f32.mrb[20].mxu1  ;;  %v2105_v24 = vpop.f32.mrb[28].mxu0  ;;  %8744 = vst [vmem:[#allocation43_spill] sm:$0xff] %v6104_v48  ;;  %8748 = vst [vmem:[#allocation57_spill] sm:$0xff] %v6122_v28  ;;  %v2962_v18 = vmul.f32 %v6104_v48, %v6104_v48  ;;  %v2826_v27 = vadd.f32 %v6104_v48, %v6101_v58  ;;  %v3067_v2 = vadd.f32 %v3066_v8, %v2948_v45 }
 0x378   :  { %v1994_v63 = vpop.f32.mrb[21].mxu1  ;;  %v2107_v12 = vpop.f32.mrb[29].mxu0  ;;  %v6116_v47 = vadd.f32 %v1992_v23, %v5809_v22  ;;  %v6132_v23 = vadd.f32 %v2105_v24, %v5809_v22  ;;  %8750 = vst [vmem:[#allocation56_spill] sm:$0xff] %v6135_v6  ;;  %v2963_v24 = vmul.f32 %v6122_v28, %v6122_v28  ;;  %v6154_v42 = vadd.f32 %v2811_v62, %v6111_v46 }
 0x379   :  { %v6119_v9 = vadd.f32 %v1994_v63, %v5809_v22  ;;  %v3082_v38 = vadd.f32 %v2962_v18, %v2961_v53  ;;  %v6159_v51 = vadd.f32 %v2107_v12, %v5809_v22  ;;  %v2827_v48 = vadd.f32 %v2826_v27, %v6122_v28 }
 0x37a   :  { %8746 = vst [vmem:[#allocation38_spill] sm:$0xff] %v6116_v47  ;;  %8749 = vst [vmem:[#allocation48_spill] sm:$0xff] %v6132_v23  ;;  %v2976_v20 = vmul.f32 %v6116_v47, %v6116_v47  ;;  %v2978_v40 = vmul.f32 %v6132_v23, %v6132_v23  ;;  %v2964_v18 = vmul.f32 %v6135_v6, %v6135_v6 }
 0x37b   :  { %v1998_v43 = vpop.f32.mrb[22].mxu1  ;;  %v2111_v17 = vpop.f32.mrb[30].mxu0  ;;  %8747 = vst [vmem:[#allocation49_spill] sm:$0xff] %v6119_v9  ;;  %v2977_v35 = vmul.f32 %v6119_v9, %v6119_v9  ;;  %8753 = vst [vmem:[#allocation44_spill] sm:$0xff] %v6159_v51  ;;  %v3083_v58 = vadd.f32 %v3082_v38, %v2963_v24  ;;  %v6190_v24 = vadd.f32 %v3067_v2, %v2949_v31 }
 0x37c   :  { %v2000_v37 = vpop.f32.mrb[23].mxu1  ;;  %v2113_v57 = vpop.f32.mrb[31].mxu0  ;;  %v6148_v44 = vadd.f32 %v1998_v43, %v5862_v39  ;;  %v2842_v43 = vadd.f32 %v6119_v9, %v6116_v47  ;;  %v6167_v45 = vadd.f32 %v2111_v17, %v5862_v39 }
 0x37d   :  { %v6151_v13 = vadd.f32 %v2000_v37, %v5862_v39  ;;  %v3098_v62 = vadd.f32 %v2977_v35, %v2976_v20  ;;  %v2979_v20 = vmul.f32 %v6159_v51, %v6159_v51 }
 0x37e   :  { %8751 = vst [vmem:[#allocation34_spill] sm:$0xff] %v6148_v44  ;;  %8754 = vst [vmem:[#allocation31_spill] sm:$0xff] %v6167_v45  ;;  %v2991_v9 = vmul.f32 %v6148_v44, %v6148_v44  ;;  %v2843_v17 = vadd.f32 %v2842_v43, %v6132_v23 }
 0x37f   :  { %v2004_v29 = vpop.f32.mrb[24].mxu1  ;;  %v2117_v63 = vpop.f32.mrb[32].mxu0  ;;  %8752 = vst [vmem:[#allocation40_spill] sm:$0xff] %v6151_v13  ;;  %v2858_v27 = vadd.f32 %v6151_v13, %v6148_v44  ;;  %v2992_v47 = vmul.f32 %v6151_v13, %v6151_v13  ;;  %v3099_v35 = vadd.f32 %v3098_v62, %v2978_v40  ;;  %v6193_v44 = vadd.f32 %v2827_v48, %v6135_v6 }
 0x380   :  { %v2006_v25 = vpop.f32.mrb[25].mxu1  ;;  %v2119_v0 = vpop.f32.mrb[33].mxu0  ;;  %v6170_v53 = vadd.f32 %v2004_v29, %v5871_v59  ;;  %v6188_v29 = vadd.f32 %v2117_v63, %v5871_v59  ;;  %v2993_v40 = vmul.f32 %v6167_v45, %v6167_v45  ;;  %v6213_v6 = vadd.f32 %v2843_v17, %v6159_v51 }
 0x381   :  { %v6173_v12 = vadd.f32 %v2006_v25, %v5871_v59  ;;  %v6185_v25 = vadd.f32 %v2113_v57, %v5862_v39  ;;  %v2859_v43 = vadd.f32 %v2858_v27, %v6167_v45  ;;  %v3114_v48 = vadd.f32 %v2992_v47, %v2991_v9 }
 0x382   :  { %8755 = vst [vmem:[#allocation59_spill] sm:$0xff] %v6170_v53  ;;  %8758 = vst [vmem:[#allocation58_spill] sm:$0xff] %v6188_v29  ;;  %v3006_v57 = vmul.f32 %v6170_v53, %v6170_v53  ;;  %v6210_v27 = vadd.f32 %v3083_v58, %v2964_v18  ;;  %v6215_v45 = vadd.f32 %v3099_v35, %v2979_v20 }
 0x383   :  { %v2010_v34 = vpop.f32.mrb[26].mxu1  ;;  %v2123_v55 = vpop.f32.mrb[34].mxu0  ;;  %8756 = vst [vmem:[#allocation51_spill] sm:$0xff] %v6173_v12  ;;  %8757 = vst [vmem:[#allocation50_spill] sm:$0xff] %v6185_v25  ;;  %v3007_v63 = vmul.f32 %v6173_v12, %v6173_v12  ;;  %v2874_v2 = vadd.f32 %v6173_v12, %v6170_v53  ;;  %v2994_v7 = vmul.f32 %v6185_v25, %v6185_v25 }
 0x384   :  { %v2012_v37 = vpop.f32.mrb[27].mxu1  ;;  %v2125_v8 = vpop.f32.mrb[35].mxu0  ;;  %v6203_v23 = vadd.f32 %v2010_v34, %v5938_v30  ;;  %v3008_v34 = vmul.f32 %v6188_v29, %v6188_v29  ;;  %v3115_v9 = vadd.f32 %v3114_v48, %v2993_v40  ;;  %v6225_v58 = vadd.f32 %v2859_v43, %v6185_v25 }
 0x385   :  { %v6206_v31 = vadd.f32 %v2012_v37, %v5938_v30  ;;  %v6222_v37 = vadd.f32 %v2119_v0, %v5871_v59  ;;  %v2875_v18 = vadd.f32 %v2874_v2, %v6188_v29  ;;  %v6229_v17 = vadd.f32 %v2123_v55, %v5938_v30 }
 0x386   :  { %8759 = vst [vmem:[#allocation35_spill] sm:$0xff] %v6203_v23  ;;  %v3130_v20 = vadd.f32 %v3007_v63, %v3006_v57  ;;  %v3021_v53 = vmul.f32 %v6203_v23, %v6203_v23  ;;  %v6236_v51 = vadd.f32 %v2125_v8, %v5938_v30 }
 0x387   :  { %v2016_v28 = vpop.f32.mrb[28].mxu1  ;;  %v2129_v38 = vpop.f32.mrb[36].mxu0  ;;  %8760 = vst [vmem:[#allocation45_spill] sm:$0xff] %v6206_v31  ;;  %8761 = vst [vmem:[#allocation61_spill] sm:$0xff] %v6222_v37  ;;  %v3022_v0 = vmul.f32 %v6206_v31, %v6206_v31  ;;  %v2890_v63 = vadd.f32 %v6206_v31, %v6203_v23  ;;  %v3009_v8 = vmul.f32 %v6222_v37, %v6222_v37 }
 0x388   :  { %v2018_v13 = vpop.f32.mrb[29].mxu1  ;;  %v2131_v62 = vpop.f32.mrb[37].mxu0  ;;  %8762 = vst [vmem:[#allocation33_spill] sm:$0xff] %v6229_v17  ;;  %8763 = vst [vmem:[#allocation62_spill] sm:$0xff] %v6236_v51  ;;  %v6239_v40 = vadd.f32 %v2016_v28, %v5956_v54  ;;  %v3131_v48 = vadd.f32 %v3130_v20, %v3008_v34  ;;  %v6255_v28 = vadd.f32 %v2129_v38, %v5956_v54 }
 0x389   :  { %v6242_v43 = vadd.f32 %v2018_v13, %v5956_v54  ;;  %v6257_v13 = vadd.f32 %v3115_v9, %v2994_v7  ;;  %v3023_v34 = vmul.f32 %v6229_v17, %v6229_v17  ;;  %v3146_v31 = vadd.f32 %v3022_v0, %v3021_v53 }
 0x38a   :  { %8764 = vst [vmem:[#allocation53_spill] sm:$0xff] %v6239_v40  ;;  %8768 = vst [vmem:[#allocation63_spill] sm:$0xff] %v6255_v28  ;;  %v2891_v23 = vadd.f32 %v2890_v63, %v6229_v17  ;;  %v3024_v38 = vmul.f32 %v6236_v51, %v6236_v51  ;;  %v3036_v9 = vmul.f32 %v6239_v40, %v6239_v40 }
 0x38b   :  { %v2022_v46 = vpop.f32.mrb[30].mxu1  ;;  %v2135_v47 = vpop.f32.mrb[38].mxu0  ;;  %8765 = vst [vmem:[#allocation60_spill] sm:$0xff] %v6242_v43  ;;  %v6283_v63 = vadd.f32 %v3131_v48, %v3009_v8  ;;  %v3038_v17 = vmul.f32 %v6255_v28, %v6255_v28  ;;  %v2906_v50 = vadd.f32 %v6242_v43, %v6239_v40  ;;  %v6296_v26 = vadd.f32 %v2131_v62, %v5956_v54 }
 0x38c   :  { %v2024_v12 = vpop.f32.mrb[31].mxu1  ;;  %v2137_v35 = vpop.f32.mrb[39].mxu0  ;;  %v6245_v55 = vadd.f32 %v2022_v46, %v6023_v11  ;;  %v6271_v7 = vadd.f32 %v2135_v47, %v6023_v11  ;;  %v3147_v8 = vadd.f32 %v3146_v31, %v3023_v34  ;;  %v6302_v33 = vadd.f32 %v2891_v23, %v6236_v51 }
 0x38d   :  { %v6248_v57 = vadd.f32 %v2024_v12, %v6023_v11  ;;  %v6263_v12 = vadd.f32 %v2875_v18, %v6222_v37  ;;  %v3037_v18 = vmul.f32 %v6242_v43, %v6242_v43  ;;  %8773 = vst [vmem:[#allocation68_spill] sm:$0xff] %v6296_v26  ;;  %v6299_v48 = vadd.f32 %v2137_v35, %v6023_v11 }
 0x38e   :  { %8766 = vst [vmem:[#allocation54_spill] sm:$0xff] %v6245_v55  ;;  %8770 = vst [vmem:[#allocation65_spill] sm:$0xff] %v6271_v7  ;;  %v3053_v3 = vmul.f32 %v6271_v7, %v6271_v7 }
 0x38f   :  { %8767 = vst [vmem:[#allocation52_spill] sm:$0xff] %v6248_v57  ;;  %v2206_v2 = vpop.f32.mrb[32].mxu1  ;;  %v2319_v29 = vpop.f32.mrb[40].mxu0  ;;  %v3052_v53 = vmul.f32 %v6248_v57, %v6248_v57  ;;  %8774 = vst [vmem:[#allocation69_spill] sm:$0xff] %v6299_v48  ;;  %v2922_v40 = vadd.f32 %v6248_v57, %v6245_v55 }
 0x390   :  { %v6260_v46 = vadd.f32 %v2206_v2, %v5790_v36  ;;  %v2208_v25 = vpop.f32.mrb[33].mxu1  ;;  %v2321_v20 = vpop.f32.mrb[41].mxu0  ;;  %v3051_v2 = vmul.f32 %v6245_v55, %v6245_v55  ;;  %v6307_v43 = vadd.f32 %v2319_v29, %v5790_v36 }
 0x391   :  { %v6286_v47 = vadd.f32 %v2208_v25, %v5790_v36  ;;  %v6330_v51 = vadd.f32 %v2321_v20, %v5790_v36 }
 0x392   :  { %8769 = vst [vmem:[#allocation64_spill] sm:$0xff] %v6260_v46  ;;  %v2950_v0 = vmul.f32 %v6260_v46, %v6260_v46  ;;  %8775 = vst [vmem:[#allocation70_spill] sm:$0xff] %v6307_v43  ;;  %v3178_v62 = vadd.f32 %v3052_v53, %v3051_v2  ;;  %v2813_v35 = vadd.f32 %v6154_v42, %v6260_v46 }
 0x393   :  { %8771 = vst [vmem:[#allocation66_spill] sm:$0xff] %v6286_v47  ;;  %v2212_v37 = vpop.f32.mrb[34].mxu1  ;;  %v2325_v41 = vpop.f32.mrb[42].mxu0  ;;  %v2951_v23 = vmul.f32 %v6286_v47, %v6286_v47  ;;  %v3039_v2 = vmul.f32 %v6296_v26, %v6296_v26  ;;  %8777 = vst [vmem:[#allocation72_spill] sm:$0xff] %v6330_v51 }
 0x394   :  { %v6293_v19 = vadd.f32 %v2212_v37, %v5796_v21  ;;  %v2214_v60 = vpop.f32.mrb[35].mxu1  ;;  %v2327_v25 = vpop.f32.mrb[43].mxu0  ;;  %v3162_v37 = vadd.f32 %v3037_v18, %v3036_v9  ;;  %v3069_v14 = vadd.f32 %v6190_v24, %v2950_v0  ;;  %v2907_v18 = vadd.f32 %v2906_v50, %v6255_v28 }
 0x395   :  { %v6319_v34 = vadd.f32 %v2214_v60, %v5796_v21  ;;  %v3054_v24 = vmul.f32 %v6299_v48, %v6299_v48  ;;  %v2923_v0 = vadd.f32 %v2922_v40, %v6271_v7  ;;  %v3179_v55 = vadd.f32 %v3178_v62, %v3053_v3 }
 0x396   :  { %8772 = vst [vmem:[#allocation67_spill] sm:$0xff] %v6293_v19  ;;  %v2965_v31 = vmul.f32 %v6293_v19, %v6293_v19  ;;  %v3163_v57 = vadd.f32 %v3162_v37, %v3038_v17  ;;  %v2952_v60 = vmul.f32 %v6307_v43, %v6307_v43  ;;  %v2814_v50 = vadd.f32 %v2813_v35, %v6286_v47 }
 0x397   :  { %8776 = vst [vmem:[#allocation71_spill] sm:$0xff] %v6319_v34  ;;  %v2218_v29 = vpop.f32.mrb[36].mxu1  ;;  %v2331_v9 = vpop.f32.mrb[44].mxu0  ;;  %v6337_v37 = vadd.f32 %v2325_v41, %v5796_v21  ;;  %v6340_v28 = vadd.f32 %v2327_v25, %v5796_v21  ;;  %v3070_v46 = vadd.f32 %v3069_v14, %v2951_v23  ;;  %v2829_v3 = vadd.f32 %v6193_v44, %v6293_v19 }
 0x398   :  { %v2220_v42 = vpop.f32.mrb[37].mxu1  ;;  %v2333_v53 = vpop.f32.mrb[45].mxu0  ;;  %v6334_v17 = vadd.f32 %v2218_v29, %v5809_v22  ;;  %v3085_v40 = vadd.f32 %v6210_v27, %v2965_v31  ;;  %v2966_v20 = vmul.f32 %v6319_v34, %v6319_v34  ;;  %v6347_v7 = vadd.f32 %v3147_v8, %v3024_v38 }
 0x399   :  { %8779 = vst [vmem:[#allocation74_spill] sm:$0xff] %v6337_v37  ;;  %8780 = vst [vmem:[#allocation75_spill] sm:$0xff] %v6340_v28  ;;  %v6350_v29 = vadd.f32 %v2907_v18, %v6296_v26  ;;  %v6352_v41 = vadd.f32 %v3163_v57, %v3039_v2  ;;  %v6358_v44 = vadd.f32 %v2923_v0, %v6299_v48 }
 0x39a   :  { %8778 = vst [vmem:[#allocation73_spill] sm:$0xff] %v6334_v17  ;;  %v2815_v27 = vadd.f32 %v2814_v50, %v6307_v43  ;;  %v3071_v31 = vadd.f32 %v3070_v46, %v2952_v60  ;;  %v2953_v38 = vmul.f32 %v6330_v51, %v6330_v51  ;;  %v2980_v8 = vmul.f32 %v6334_v17, %v6334_v17 }
 0x39b   :  { %v2224_v62 = vpop.f32.mrb[38].mxu1  ;;  %v2337_v35 = vpop.f32.mrb[46].mxu0  ;;  %v6366_v57 = vadd.f32 %v2220_v42, %v5809_v22  ;;  %v6368_v18 = vadd.f32 %v3179_v55, %v3054_v24  ;;  %v2967_v2 = vmul.f32 %v6337_v37, %v6337_v37  ;;  %v2830_v0 = vadd.f32 %v2829_v3, %v6319_v34 }
 0x39c   :  { %v6355_v25 = vadd.f32 %v2224_v62, %v5862_v39  ;;  %v2226_v14 = vpop.f32.mrb[39].mxu1  ;;  %v2339_v23 = vpop.f32.mrb[47].mxu0  ;;  %v3086_v62 = vadd.f32 %v3085_v40, %v2966_v20  ;;  %v2968_v46 = vmul.f32 %v6340_v28, %v6340_v28  ;;  %v6376_v60 = vadd.f32 %v2331_v9, %v5809_v22 }
 0x39d   :  { %8782 = vst [vmem:[#allocation77_spill] sm:$0xff] %v6366_v57  ;;  %v2845_v42 = vadd.f32 %v6213_v6, %v6334_v17  ;;  %v6383_v24 = vadd.f32 %v2226_v14, %v5862_v39  ;;  %v6389_v26 = vadd.f32 %v2815_v27, %v6330_v51  ;;  %v6391_v9 = vadd.f32 %v3071_v31, %v2953_v38 }
 0x39e   :  { %8781 = vst [vmem:[#allocation76_spill] sm:$0xff] %v6355_v25  ;;  %8783 = vst [vmem:[#allocation78_spill] sm:$0xff] %v6376_v60  ;;  %v2995_v55 = vmul.f32 %v6355_v25, %v6355_v25  ;;  %v2831_v34 = vadd.f32 %v2830_v0, %v6337_v37  ;;  %v6395_v6 = vadd.f32 %v2333_v53, %v5809_v22 }
 0x39f   :  { %v2230_v48 = vpop.f32.mrb[40].mxu1  ;;  %v2343_v50 = vpop.f32.mrb[48].mxu0  ;;  %8784 = vst [vmem:[#allocation79_spill] sm:$0xff] %v6383_v24  ;;  %v3101_v17 = vadd.f32 %v6215_v45, %v2980_v8  ;;  %v2981_v14 = vmul.f32 %v6366_v57, %v6366_v57  ;;  %v3087_v19 = vadd.f32 %v3086_v62, %v2967_v2  ;;  %v2861_v27 = vadd.f32 %v6225_v58, %v6355_v25 }
 0x3a0   :  { %v6386_v3 = vadd.f32 %v2230_v48, %v5871_v59  ;;  %v2232_v40 = vpop.f32.mrb[41].mxu1  ;;  %v2345_v20 = vpop.f32.mrb[49].mxu0  ;;  %8786 = vst [vmem:[#allocation81_spill] sm:$0xff] %v6395_v6  ;;  %v6401_v48 = vadd.f32 %v2337_v35, %v5862_v39  ;;  %v2982_v45 = vmul.f32 %v6376_v60, %v6376_v60  ;;  %v2846_v0 = vadd.f32 %v2845_v42, %v6366_v57 }
 0x3a1   :  { %v6408_v38 = vadd.f32 %v2232_v40, %v5871_v59  ;;  %v3117_v2 = vadd.f32 %v6257_v13, %v2995_v55  ;;  %v2996_v35 = vmul.f32 %v6383_v24, %v6383_v24  ;;  %v6420_v40 = vadd.f32 %v2831_v34, %v6340_v28 }
 0x3a2   :  { %8785 = vst [vmem:[#allocation80_spill] sm:$0xff] %v6386_v3  ;;  %8787 = vst [vmem:[#allocation82_spill] sm:$0xff] %v6401_v48  ;;  %v3010_v31 = vmul.f32 %v6386_v3, %v6386_v3  ;;  %v2983_v25 = vmul.f32 %v6395_v6, %v6395_v6  ;;  %v6425_v51 = vadd.f32 %v2339_v23, %v5862_v39 }
 0x3a3   :  { %8788 = vst [vmem:[#allocation83_spill] sm:$0xff] %v6408_v38  ;;  %v2236_v53 = vpop.f32.mrb[42].mxu1  ;;  %v2349_v8 = vpop.f32.mrb[50].mxu0  ;;  %v6428_v42 = vadd.f32 %v2343_v50, %v5871_v59  ;;  %v3102_v13 = vadd.f32 %v3101_v17, %v2981_v14  ;;  %v6430_v55 = vadd.f32 %v3087_v19, %v2968_v46  ;;  %v2997_v57 = vmul.f32 %v6401_v48, %v6401_v48 }
 0x3a4   :  { %v6417_v58 = vadd.f32 %v2236_v53, %v5938_v30  ;;  %v2238_v62 = vpop.f32.mrb[43].mxu1  ;;  %v2351_v37 = vpop.f32.mrb[51].mxu0  ;;  %8790 = vst [vmem:[#allocation85_spill] sm:$0xff] %v6425_v51  ;;  %v2847_v53 = vadd.f32 %v2846_v0, %v6376_v60  ;;  %v2862_v34 = vadd.f32 %v2861_v27, %v6383_v24  ;;  %v2877_v28 = vadd.f32 %v6263_v12, %v6386_v3 }
 0x3a5   :  { %8791 = vst [vmem:[#allocation86_spill] sm:$0xff] %v6428_v42  ;;  %v3133_v43 = vadd.f32 %v6283_v63, %v3010_v31  ;;  %v3011_v23 = vmul.f32 %v6408_v38, %v6408_v38  ;;  %v3118_v17 = vadd.f32 %v3117_v2, %v2996_v35  ;;  %v6444_v46 = vadd.f32 %v2238_v62, %v5938_v30 }
 0x3a6   :  { %8789 = vst [vmem:[#allocation84_spill] sm:$0xff] %v6417_v58  ;;  %v3025_v19 = vmul.f32 %v6417_v58, %v6417_v58  ;;  %v3103_v14 = vadd.f32 %v3102_v13, %v2982_v45  ;;  %v2863_v60 = vadd.f32 %v2862_v34, %v6401_v48  ;;  %v2998_v12 = vmul.f32 %v6425_v51, %v6425_v51 }
 0x3a7   :  { %v2242_v50 = vpop.f32.mrb[44].mxu1  ;;  %v2355_v47 = vpop.f32.mrb[52].mxu0  ;;  %8792 = vst [vmem:[#allocation87_spill] sm:$0xff] %v6444_v46  ;;  %v3012_v63 = vmul.f32 %v6428_v42, %v6428_v42  ;;  %v6452_v31 = vadd.f32 %v2345_v20, %v5871_v59  ;;  %v6458_v35 = vadd.f32 %v2847_v53, %v6395_v6  ;;  %v3119_v45 = vadd.f32 %v3118_v17, %v2997_v57 }
 0x3a8   :  { %v2244_v0 = vpop.f32.mrb[45].mxu1  ;;  %v2357_v27 = vpop.f32.mrb[53].mxu0  ;;  %v6455_v2 = vadd.f32 %v2242_v50, %v5956_v54  ;;  %v6461_v62 = vadd.f32 %v2349_v8, %v5938_v30  ;;  %v2878_v13 = vadd.f32 %v2877_v28, %v6408_v38  ;;  %v3134_v34 = vadd.f32 %v3133_v43, %v3011_v23 }
 0x3a9   :  { %8793 = vst [vmem:[#allocation88_spill] sm:$0xff] %v6452_v31  ;;  %v2893_v3 = vadd.f32 %v6302_v33, %v6417_v58  ;;  %v6467_v20 = vadd.f32 %v2351_v37, %v5938_v30  ;;  %v3149_v50 = vadd.f32 %v6347_v7, %v3025_v19  ;;  %v3026_v53 = vmul.f32 %v6444_v46, %v6444_v46 }
 0x3aa   :  { %8794 = vst [vmem:[#allocation89_spill] sm:$0xff] %v6455_v2  ;;  %8795 = vst [vmem:[#allocation90_spill] sm:$0xff] %v6461_v62  ;;  %v6472_v57 = vadd.f32 %v3103_v14, %v2983_v25  ;;  %v6478_v23 = vadd.f32 %v2863_v60, %v6425_v51  ;;  %v2879_v33 = vadd.f32 %v2878_v13, %v6428_v42 }
 0x3ab   :  { %v2248_v48 = vpop.f32.mrb[46].mxu1  ;;  %8796 = vst [vmem:[#allocation91_spill] sm:$0xff] %v6467_v20  ;;  %v2361_v24 = vpop.f32.mrb[54].mxu0  ;;  %v3135_v37 = vadd.f32 %v3134_v34, %v3012_v63  ;;  %v3013_v17 = vmul.f32 %v6452_v31, %v6452_v31  ;;  %v3040_v7 = vmul.f32 %v6455_v2, %v6455_v2  ;;  %v6486_v25 = vadd.f32 %v2244_v0, %v5956_v54 }
 0x3ac   :  { %v6475_v8 = vadd.f32 %v2248_v48, %v6023_v11  ;;  %v2250_v28 = vpop.f32.mrb[47].mxu1  ;;  %v2363_v43 = vpop.f32.mrb[55].mxu0  ;;  %v6488_v19 = vadd.f32 %v3119_v45, %v2998_v12  ;;  %v3027_v48 = vmul.f32 %v6461_v62, %v6461_v62  ;;  %v2894_v60 = vadd.f32 %v2893_v3, %v6444_v46 }
 0x3ad   :  { %8798 = vst [vmem:[#allocation93_spill] sm:$0xff] %v6486_v25  ;;  %v3028_v63 = vmul.f32 %v6467_v20, %v6467_v20  ;;  %v6496_v13 = vadd.f32 %v2355_v47, %v5956_v54  ;;  %v6499_v34 = vadd.f32 %v2357_v27, %v5956_v54  ;;  %v3150_v0 = vadd.f32 %v3149_v50, %v3026_v53 }
 0x3ae   :  { %8797 = vst [vmem:[#allocation92_spill] sm:$0xff] %v6475_v8  ;;  %v3055_v12 = vmul.f32 %v6475_v8, %v6475_v8  ;;  %v6504_v45 = vadd.f32 %v2250_v28, %v6023_v11  ;;  %v2909_v47 = vadd.f32 %v6350_v29, %v6455_v2  ;;  %v6512_v46 = vadd.f32 %v2879_v33, %v6452_v31 }
 0x3af   :  { %v2432_v14 = vpop.f32.mrb[48].mxu1  ;;  %8799 = vst [vmem:[#allocation94_spill] sm:$0xff] %v6496_v13  ;;  %8800 = vst [vmem:[#allocation95_spill] sm:$0xff] %v6499_v34  ;;  %v2545_v42 = vpop.f32.mrb[56].mxu0  ;;  %v6514_v27 = vadd.f32 %v3135_v37, %v3013_v17  ;;  %v2895_v50 = vadd.f32 %v2894_v60, %v6461_v62  ;;  %v3165_v53 = vadd.f32 %v6352_v41, %v3040_v7 }
 0x3b0   :  { %8801 = vst [vmem:[#allocation96_spill] sm:$0xff] %v6504_v45  ;;  %v6507_v3 = vadd.f32 %v2432_v14, %v5790_v36  ;;  %v2434_v38 = vpop.f32.mrb[49].mxu1  ;;  %v2547_v6 = vpop.f32.mrb[57].mxu0  ;;  %v3041_v28 = vmul.f32 %v6486_v25, %v6486_v25  ;;  %v3151_v58 = vadd.f32 %v3150_v0, %v3027_v48  ;;  %v6521_v14 = vadd.f32 %v2361_v24, %v6023_v11 }
 0x3b1   :  { %v2925_v51 = vadd.f32 %v6358_v44, %v6475_v8  ;;  %v6528_v33 = vadd.f32 %v2434_v38, %v5790_v36  ;;  %v3042_v41 = vmul.f32 %v6496_v13, %v6496_v13  ;;  %v3181_v7 = vadd.f32 %v6368_v18, %v3055_v12 }
 0x3b2   :  { %8802 = vst [vmem:[#allocation97_spill] sm:$0xff] %v6507_v3  ;;  %8803 = vst [vmem:[#allocation98_spill] sm:$0xff] %v6521_v14  ;;  %v2954_v29 = vmul.f32 %v6507_v3, %v6507_v3  ;;  %v3056_v24 = vmul.f32 %v6504_v45, %v6504_v45  ;;  %v3043_v44 = vmul.f32 %v6499_v34, %v6499_v34 }
 0x3b3   :  { %8804 = vst [vmem:[#allocation99_spill] sm:$0xff] %v6528_v33  ;;  %v2438_v37 = vpop.f32.mrb[50].mxu1  ;;  %v2551_v17 = vpop.f32.mrb[58].mxu0  ;;  %v6538_v60 = vadd.f32 %v2363_v43, %v6023_v11  ;;  %v2910_v38 = vadd.f32 %v2909_v47, %v6486_v25  ;;  %v6545_v2 = vadd.f32 %v2895_v50, %v6467_v20  ;;  %v6548_v18 = vadd.f32 %v2545_v42, %v5790_v36 }
 0x3b4   :  { %v2440_v48 = vpop.f32.mrb[51].mxu1  ;;  %v2553_v0 = vpop.f32.mrb[59].mxu0  ;;  %v6542_v8 = vadd.f32 %v2438_v37, %v5796_v21  ;;  %v3166_v12 = vadd.f32 %v3165_v53, %v3041_v28  ;;  %v2817_v31 = vadd.f32 %v6389_v26, %v6507_v3  ;;  %v6552_v62 = vadd.f32 %v3151_v58, %v3028_v63 }
 0x3b5   :  { %8805 = vst [vmem:[#allocation100_spill] sm:$0xff] %v6538_v60  ;;  %8807 = vst [vmem:[#allocation102_spill] sm:$0xff] %v6548_v18  ;;  %v3057_v43 = vmul.f32 %v6521_v14, %v6521_v14  ;;  %v2926_v47 = vadd.f32 %v2925_v51, %v6504_v45  ;;  %v3073_v37 = vadd.f32 %v6391_v9, %v2954_v29 }
 0x3b6   :  { %8806 = vst [vmem:[#allocation101_spill] sm:$0xff] %v6542_v8  ;;  %v2955_v50 = vmul.f32 %v6528_v33, %v6528_v33  ;;  %v2911_v25 = vadd.f32 %v2910_v38, %v6496_v13  ;;  %v3182_v53 = vadd.f32 %v3181_v7, %v3056_v24  ;;  %v3167_v28 = vadd.f32 %v3166_v12, %v3042_v41 }
 0x3b7   :  { %v2444_v42 = vpop.f32.mrb[52].mxu1  ;;  %v2557_v20 = vpop.f32.mrb[60].mxu0  ;;  %v3058_v26 = vmul.f32 %v6538_v60, %v6538_v60  ;;  %v6564_v58 = vadd.f32 %v2547_v6, %v5790_v36  ;;  %v2969_v51 = vmul.f32 %v6542_v8, %v6542_v8  ;;  %v6569_v9 = vadd.f32 %v2440_v48, %v5796_v21 }
 0x3b8   :  { %v2446_v4 = vpop.f32.mrb[53].mxu1  ;;  %v2559_v63 = vpop.f32.mrb[61].mxu0  ;;  %v2927_v29 = vadd.f32 %v2926_v47, %v6521_v14  ;;  %v2956_v7 = vmul.f32 %v6548_v18, %v6548_v18  ;;  %v2818_v41 = vadd.f32 %v2817_v31, %v6528_v33  ;;  %v3183_v24 = vadd.f32 %v3182_v53, %v3057_v43 }
 0x3b9   :  { %8808 = vst [vmem:[#allocation103_spill] sm:$0xff] %v6564_v58  ;;  %8809 = vst [vmem:[#allocation104_spill] sm:$0xff] %v6569_v9  ;;  %v6576_v38 = vadd.f32 %v2551_v17, %v5796_v21  ;;  %v6579_v6 = vadd.f32 %v2553_v0, %v5796_v21  ;;  %v3074_v12 = vadd.f32 %v3073_v37, %v2955_v50 }
 0x3ba   :  { %v2833_v45 = vadd.f32 %v6420_v40, %v6542_v8  ;;  %v6584_v48 = vadd.f32 %v2444_v42, %v5809_v22  ;;  %v6587_v47 = vadd.f32 %v2911_v25, %v6499_v34  ;;  %v6589_v31 = vadd.f32 %v3167_v28, %v3043_v44 }
 0x3bb   :  { %8810 = vst [vmem:[#allocation105_spill] sm:$0xff] %v6576_v38  ;;  %8811 = vst [vmem:[#allocation106_spill] sm:$0xff] %v6579_v6  ;;  %v2450_v14 = vpop.f32.mrb[54].mxu1  ;;  %v2563_v13 = vpop.f32.mrb[62].mxu0  ;;  %v2819_v0 = vadd.f32 %v2818_v41, %v6548_v18  ;;  %v2957_v37 = vmul.f32 %v6564_v58, %v6564_v58  ;;  %v3089_v50 = vadd.f32 %v6430_v55, %v2969_v51 }
 0x3bc   :  { %8812 = vst [vmem:[#allocation107_spill] sm:$0xff] %v6584_v48  ;;  %v6592_v17 = vadd.f32 %v2450_v14, %v5862_v39  ;;  %v2452_v43 = vpop.f32.mrb[55].mxu1  ;;  %v2565_v40 = vpop.f32.mrb[63].mxu0  ;;  %v2970_v25 = vmul.f32 %v6569_v9, %v6569_v9  ;;  %v6601_v42 = vadd.f32 %v2446_v4, %v5809_v22  ;;  %v3075_v44 = vadd.f32 %v3074_v12, %v2956_v7 }
 0x3bd   :  { %v6604_v53 = vadd.f32 %v2927_v29, %v6538_v60  ;;  %v6606_v14 = vadd.f32 %v3183_v24, %v3058_v26  ;;  %v2971_v28 = vmul.f32 %v6576_v38, %v6576_v38  ;;  %v2972_v41 = vmul.f32 %v6579_v6, %v6579_v6 }
 0x3be   :  { %8813 = vst [vmem:[#allocation108_spill] sm:$0xff] %v6592_v17  ;;  %8814 = vst [vmem:[#allocation109_spill] sm:$0xff] %v6601_v42  ;;  %v2834_v55 = vadd.f32 %v2833_v45, %v6569_v9  ;;  %v2984_v51 = vmul.f32 %v6584_v48, %v6584_v48  ;;  %v6616_v4 = vadd.f32 %v2557_v20, %v5809_v22 }
 0x3bf   :  { %v2456_v34 = vpop.f32.mrb[56].mxu1  ;;  %v6619_v29 = vadd.f32 %v2559_v63, %v5809_v22  ;;  %v2569_v26 = vpop.f32.mrb[64].mxu0  ;;  %v2999_v7 = vmul.f32 %v6592_v17, %v6592_v17  ;;  %v6624_v24 = vadd.f32 %v2452_v43, %v5862_v39  ;;  %v6630_v60 = vadd.f32 %v2819_v0, %v6564_v58 }
 0x3c0   :  { %8815 = vst [vmem:[#allocation110_spill] sm:$0xff] %v6616_v4  ;;  %v6627_v12 = vadd.f32 %v2456_v34, %v5871_v59  ;;  %v2458_v45 = vpop.f32.mrb[57].mxu1  ;;  %v2571_v9 = vpop.f32.mrb[65].mxu0  ;;  %v3090_v20 = vadd.f32 %v3089_v50, %v2970_v25  ;;  %v2849_v63 = vadd.f32 %v6458_v35, %v6584_v48  ;;  %v2985_v8 = vmul.f32 %v6601_v42, %v6601_v42 }
 0x3c1   :  { %8816 = vst [vmem:[#allocation111_spill] sm:$0xff] %v6619_v29  ;;  %8817 = vst [vmem:[#allocation112_spill] sm:$0xff] %v6624_v24  ;;  %v6636_v18 = vadd.f32 %v3075_v44, %v2957_v37  ;;  %v6641_v34 = vadd.f32 %v2458_v45, %v5871_v59  ;;  %v2835_v33 = vadd.f32 %v2834_v55, %v6576_v38 }
 0x3c2   :  { %8818 = vst [vmem:[#allocation113_spill] sm:$0xff] %v6627_v12  ;;  %v3014_v43 = vmul.f32 %v6627_v12, %v6627_v12  ;;  %v6645_v0 = vadd.f32 %v2563_v13, %v5862_v39  ;;  %v3105_v50 = vadd.f32 %v6472_v57, %v2984_v51  ;;  %v2865_v35 = vadd.f32 %v6478_v23, %v6592_v17 }
 0x3c3   :  { %8819 = vst [vmem:[#allocation114_spill] sm:$0xff] %v6641_v34  ;;  %v2462_v25 = vpop.f32.mrb[58].mxu1  ;;  %v2986_v37 = vmul.f32 %v6616_v4, %v6616_v4  ;;  %v2987_v44 = vmul.f32 %v6619_v29, %v6619_v29  ;;  %v2575_v48 = vpop.f32.mrb[66].mxu0  ;;  %v3121_v45 = vadd.f32 %v6488_v19, %v2999_v7  ;;  %v3000_v55 = vmul.f32 %v6624_v24, %v6624_v24 }
 0x3c4   :  { %8820 = vst [vmem:[#allocation115_spill] sm:$0xff] %v6645_v0  ;;  %v6658_v13 = vadd.f32 %v2462_v25, %v5938_v30  ;;  %v2464_v57 = vpop.f32.mrb[59].mxu1  ;;  %v6661_v51 = vadd.f32 %v2569_v26, %v5871_v59  ;;  %v2577_v23 = vpop.f32.mrb[67].mxu0  ;;  %v2850_v38 = vadd.f32 %v2849_v63, %v6601_v42  ;;  %v2881_v17 = vadd.f32 %v6512_v46, %v6627_v12 }
 0x3c5   :  { %v3091_v58 = vadd.f32 %v3090_v20, %v2971_v28  ;;  %v6667_v3 = vadd.f32 %v2565_v40, %v5862_v39  ;;  %v3137_v19 = vadd.f32 %v6514_v27, %v3014_v43  ;;  %v3015_v7 = vmul.f32 %v6641_v34, %v6641_v34 }
 0x3c6   :  { %8821 = vst [vmem:[#allocation116_spill] sm:$0xff] %v6658_v13  ;;  %8822 = vst [vmem:[#allocation117_spill] sm:$0xff] %v6661_v51  ;;  %v6673_v25 = vadd.f32 %v2835_v33, %v6579_v6  ;;  %v3001_v26 = vmul.f32 %v6645_v0, %v6645_v0  ;;  %v3106_v56 = vadd.f32 %v3105_v50, %v2985_v8 }
 0x3c7   :  { %8823 = vst [vmem:[#allocation118_spill] sm:$0xff] %v6667_v3  ;;  %v2866_v63 = vadd.f32 %v2865_v35, %v6624_v24  ;;  %v2468_v42 = vpop.f32.mrb[60].mxu1  ;;  %v2851_v46 = vadd.f32 %v2850_v38, %v6616_v4  ;;  %v6680_v40 = vadd.f32 %v2571_v9, %v5871_v59  ;;  %v2581_v28 = vpop.f32.mrb[68].mxu0  ;;  %v3122_v27 = vadd.f32 %v3121_v45, %v3000_v55 }
 0x3c8   :  { %v3029_v20 = vmul.f32 %v6658_v13, %v6658_v13  ;;  %v6685_v33 = vadd.f32 %v2464_v57, %v5938_v30  ;;  %v2470_v43 = vpop.f32.mrb[61].mxu1  ;;  %v3016_v8 = vmul.f32 %v6661_v51, %v6661_v51  ;;  %v2583_v50 = vpop.f32.mrb[69].mxu0  ;;  %v2882_v35 = vadd.f32 %v2881_v17, %v6641_v34 }
 0x3c9   :  { %8824 = vst [vmem:[#allocation119_spill] sm:$0xff] %v6680_v40  ;;  %v3107_v12 = vadd.f32 %v3106_v56, %v2986_v37  ;;  %v2867_v38 = vadd.f32 %v2866_v63, %v6645_v0  ;;  %v3002_v9 = vmul.f32 %v6667_v3, %v6667_v3  ;;  %v3138_v45 = vadd.f32 %v3137_v19, %v3015_v7 }
 0x3ca   :  { %8825 = vst [vmem:[#allocation120_spill] sm:$0xff] %v6685_v33  ;;  %v3123_v55 = vadd.f32 %v3122_v27, %v3001_v26  ;;  %v6694_v4 = vadd.f32 %v2575_v48, %v5938_v30  ;;  %v6697_v57 = vadd.f32 %v2577_v23, %v5938_v30  ;;  %v2897_v6 = vadd.f32 %v6545_v2, %v6658_v13 }
 0x3cb   :  { %v6701_v24 = vadd.f32 %v3091_v58, %v2972_v41  ;;  %v6704_v56 = vadd.f32 %v2468_v42, %v5956_v54  ;;  %v2474_v17 = vpop.f32.mrb[62].mxu1  ;;  %v3017_v37 = vmul.f32 %v6680_v40, %v6680_v40  ;;  %v2587_v19 = vpop.f32.mrb[70].mxu0  ;;  %v3153_v7 = vadd.f32 %v6552_v62, %v3029_v20 }
 0x3cc   :  { %8826 = vst [vmem:[#allocation121_spill] sm:$0xff] %v6694_v4  ;;  %8827 = vst [vmem:[#allocation122_spill] sm:$0xff] %v6697_v57  ;;  %v3030_v48 = vmul.f32 %v6685_v33, %v6685_v33  ;;  %v2476_v23 = vpop.f32.mrb[63].mxu1  ;;  %v2883_v26 = vadd.f32 %v2882_v35, %v6661_v51  ;;  %v3139_v63 = vadd.f32 %v3138_v45, %v3016_v8  ;;  %v2589_v2 = vpop.f32.mrb[71].mxu0 }
 0x3cd   :  { %8828 = vst [vmem:[#allocation123_spill] sm:$0xff] %v6704_v56  ;;  %v6713_v58 = vadd.f32 %v2470_v43, %v5956_v54  ;;  %v6716_v42 = vadd.f32 %v2851_v46, %v6619_v29  ;;  %v6718_v41 = vadd.f32 %v3107_v12, %v2987_v44  ;;  %v6721_v27 = vadd.f32 %v2867_v38, %v6667_v3 }
 0x3ce   :  { %v6723_v62 = vadd.f32 %v3123_v55, %v3002_v9  ;;  %v3031_v20 = vmul.f32 %v6694_v4, %v6694_v4  ;;  %v3032_v8 = vmul.f32 %v6697_v57, %v6697_v57  ;;  %v6730_v35 = vadd.f32 %v2581_v28, %v5956_v54 }
 0x3cf   :  { %8829 = vst [vmem:[#allocation124_spill] sm:$0xff] %v6713_v58  ;;  %v2898_v43 = vadd.f32 %v2897_v6, %v6685_v33  ;;  %v2913_v12 = vadd.f32 %v6587_v47, %v6704_v56  ;;  %v3044_v44 = vmul.f32 %v6704_v56, %v6704_v56  ;;  %v2658_v46 = vpop.f32.mrb[64].mxu1  ;;  %v6738_v38 = vadd.f32 %v2583_v50, %v5956_v54  ;;  %v4158_v9 = vpop.f32.mrb[72].mxu0 }
 0x3d0   :  { %v3154_v45 = vadd.f32 %v3153_v7, %v3030_v48  ;;  %v6741_v55 = vadd.f32 %v2658_v46, %v5790_v36  ;;  %v6744_v28 = vadd.f32 %v2883_v26, %v6680_v40  ;;  %v6746_v51 = vadd.f32 %v3139_v63, %v3017_v37  ;;  %v2660_v6 = vpop.f32.mrb[65].mxu1  ;;  %v2771_v34 = vpop.f32.mrb[73].mxu0 }
 0x3d1   :  { %v3045_v47 = vmul.f32 %v6713_v58, %v6713_v58  ;;  %v6751_v56 = vadd.f32 %v2474_v17, %v6023_v11  ;;  %v6754_v50 = vadd.f32 %v2660_v6, %v5790_v36  ;;  %v2899_v7 = vadd.f32 %v2898_v43, %v6694_v4 }
 0x3d2   :  { %8830 = vst [vmem:[#allocation125_spill] sm:$0xff] %v6741_v55  ;;  %v2821_v48 = vadd.f32 %v6630_v60, %v6741_v55  ;;  %v2958_v37 = vmul.f32 %v6741_v55, %v6741_v55  ;;  %v3046_v26 = vmul.f32 %v6730_v35, %v6730_v35  ;;  %v6764_v63 = vadd.f32 %v2771_v34, %v5790_v36 }
 0x3d3   :  { %8831 = vst [vmem:[#allocation126_spill] sm:$0xff] %v6751_v56  ;;  %8832 = vst [vmem:[#allocation127_spill] sm:$0xff] %v6754_v50  ;;  %v3169_v17 = vadd.f32 %v6589_v31, %v3044_v44  ;;  %v2914_v46 = vadd.f32 %v2913_v12, %v6713_v58  ;;  %v3155_v6 = vadd.f32 %v3154_v45, %v3031_v20  ;;  %v2664_v40 = vpop.f32.mrb[66].mxu1  ;;  %v4161_v60 = vpop.f32.mrb[74].mxu0 }
 0x3d4   :  { %8833 = vst [vmem:[#allocation128_spill] sm:$0xff] %v6764_v63  ;;  %v6770_v43 = vmul.f32 %v6738_v38, %v6738_v38  ;;  %v6773_v29 = vadd.f32 %v2476_v23, %v6023_v11  ;;  %v6776_v4 = vadd.f32 %v2664_v40, %v5796_v21  ;;  %v2666_v33 = vpop.f32.mrb[67].mxu1  ;;  %v6779_v36 = vadd.f32 %v4158_v9, %v5796_v21  ;;  %v2781_v31 = vpop.f32.mrb[75].mxu0 }
 0x3d5   :  { %v2822_v34 = vadd.f32 %v2821_v48, %v6754_v50  ;;  %v3059_v20 = vmul.f32 %v6751_v56, %v6751_v56  ;;  %v2959_v12 = vmul.f32 %v6754_v50, %v6754_v50  ;;  %v6787_v44 = vadd.f32 %v2899_v7, %v6697_v57  ;;  %v6792_v40 = vpop.xlane.xlu0 %766 }
 0x3d6   :  { %8834 = vst [vmem:[#allocation129_spill] sm:$0xff] %v6773_v29  ;;  %8835 = vst [vmem:[#allocation130_spill] sm:$0xff] %v6776_v4  ;;  %v6790_v23 = vadd.f32 %v2666_v33, %v5796_v21  ;;  %v2837_v9 = vadd.f32 %v6673_v25, %v6776_v4  ;;  %v2973_v45 = vmul.f32 %v6776_v4, %v6776_v4 }
 0x3d7   :  { %v2823_v48 = vadd.f32 %v2822_v34, %v6764_v63  ;;  %v3077_v58 = vadd.f32 %v6636_v18, %v2958_v37  ;;  %v2670_v7 = vpop.f32.mrb[68].mxu1  ;;  %v6803_v57 = vadd.f32 %v2587_v19, %v6023_v11  ;;  %v6806_v21 = vadd.f32 %v2589_v2, %v6023_v11  ;;  %v6808_v33 = vpop.f32.mrb[76].mxu0 }
 0x3d8   :  { %8836 = vst [vmem:[#allocation131_spill] sm:$0xff] %v6790_v23  ;;  %v2974_v13 = vmul.f32 %v6790_v23, %v6790_v23  ;;  %v2960_v25 = vmul.f32 %v6764_v63, %v6764_v63  ;;  %v6813_v4 = vadd.f32 %v2670_v7, %v5809_v22  ;;  %v2672_v34 = vpop.f32.mrb[69].mxu1  ;;  %v2838_v18 = vadd.f32 %v2837_v9, %v6790_v23  ;;  %v6816_v37 = vpop.f32.mrb[77].mxu0 }
 0x3d9   :  { %8837 = vst [vmem:[#allocation132_spill] sm:$0xff] %v6803_v57  ;;  %8838 = vst [vmem:[#allocation133_spill] sm:$0xff] %v6806_v21  ;;  %2824 = vadd.xlane.f32.xlu1 %v2823_v48  ;;  %v2975_v19 = vmul.f32 %v6779_v36, %v6779_v36  ;;  %v3093_v2 = vadd.f32 %v6701_v24, %v2973_v45  ;;  %v3170_v3 = vadd.f32 %v3169_v17, %v3045_v47  ;;  %v6826_v50 = vpop.xlane.xlu0 %868 }
 0x3da   :  { %v2929_v0 = vadd.f32 %v6604_v53, %v6751_v56  ;;  %v3185_v63 = vadd.f32 %v6606_v14, %v3059_v20  ;;  %v3060_v7 = vmul.f32 %v6773_v29, %v6773_v29  ;;  %v6828_v9 = vadd.f32 %v3155_v6, %v3032_v8  ;;  %v8925_v56 = vld [vmem:[#allocation91_spill] sm:$0xff] }
 0x3db   :  { %v2839_v48 = vadd.f32 %v2838_v18, %v6779_v36  ;;  %v3078_v23 = vadd.f32 %v3077_v58, %v2959_v12  ;;  %v3094_v55 = vadd.f32 %v3093_v2, %v2974_v13  ;;  %v2915_v61 = vadd.f32 %v2914_v46, %v6730_v35  ;;  %v2676_v47 = vpop.f32.mrb[70].mxu1  ;;  %v6839_v17 = vpop.f32.mrb[78].mxu0 }
 0x3dc   :  { %v2853_v24 = vadd.f32 %v6716_v42, %v6813_v4  ;;  %v2988_v53 = vmul.f32 %v6813_v4, %v6813_v4  ;;  %v6837_v14 = vadd.f32 %v2672_v34, %v5809_v22  ;;  %v3061_v8 = vmul.f32 %v6803_v57, %v6803_v57  ;;  %v2678_v13 = vpop.f32.mrb[71].mxu1  ;;  %v6846_v42 = vpop.f32.mrb[79].mxu0 }
 0x3dd   :  { %v6844_v58 = vadd.f32 %v2676_v47, %v5862_v39  ;;  %2840 = vadd.xlane.f32.xlu0 %v2839_v48  ;;  %v3079_v46 = vadd.f32 %v3078_v23, %v2960_v25  ;;  %v3095_v6 = vadd.f32 %v3094_v55, %v2975_v19  ;;  %v2930_v20 = vadd.f32 %v2929_v0, %v6773_v29  ;;  %v6862_v23 = vpop.xlane.xlu0 %784  ;;  %v773_v19 = vpop.xlane.xlu1 %772  ;;  %v8923_v29 = vld [vmem:[#allocation90_spill] sm:$0xff] }
 0x3de   :  { %v3186_v12 = vadd.f32 %v3185_v63, %v3060_v7  ;;  %v3171_v45 = vadd.f32 %v3170_v3, %v3046_v26  ;;  %v6850_v34 = vadd.f32 %v2678_v13, %v5862_v39  ;;  %v6857_v47 = vadd.f32 %v4161_v60, %v5862_v39 }
 0x3df   :  { %v2869_v18 = vadd.f32 %v6721_v27, %v6844_v58  ;;  %v3003_v2 = vmul.f32 %v6844_v58, %v6844_v58  ;;  %v6860_v55 = vadd.f32 %v2781_v31, %v5809_v22  ;;  %3096 = vadd.xlane.f32.xlu1 %v3095_v6  ;;  %v2989_v3 = vmul.f32 %v6837_v14, %v6837_v14  ;;  %v2682_v26 = vpop.f32.mrb[72].mxu1 }
 0x3e0   :  { %v2931_v0 = vadd.f32 %v2930_v20, %v6803_v57  ;;  %v2854_v27 = vadd.f32 %v2853_v24, %v6837_v14  ;;  %v3109_v63 = vadd.f32 %v6718_v41, %v2988_v53  ;;  %v3004_v39 = vmul.f32 %v6850_v34, %v6850_v34  ;;  %v2684_v22 = vpop.f32.mrb[73].mxu1  ;;  %v8919_v57 = vld [vmem:[#allocation84_spill] sm:$0xff] }
 0x3e1   :  { %v6872_v60 = vadd.f32 %v2682_v26, %v5871_v59  ;;  %3080 = vadd.xlane.f32.xlu0 %v3079_v46  ;;  %v2870_v31 = vadd.f32 %v2869_v18, %v6850_v34  ;;  %v3125_v25 = vadd.f32 %v6723_v62, %v3003_v2  ;;  %v2916_v7 = vadd.f32 %v2915_v61, %v6738_v38  ;;  %v779_v26 = vpop.xlane.xlu0 %778 }
 0x3e2   :  { %v6878_v48 = vadd.f32 %v3171_v45, %v6770_v43  ;;  %v3187_v24 = vadd.f32 %v3186_v12, %v3061_v8  ;;  %v3062_v41 = vmul.f32 %v6806_v21, %v6806_v21  ;;  %v2855_v53 = vadd.f32 %v2854_v27, %v6860_v55 }
 0x3e3   :  { %v2871_v13 = vadd.f32 %v2870_v31, %v6857_v47  ;;  %v2990_v46 = vmul.f32 %v6860_v55, %v6860_v55  ;;  %v3005_v62 = vmul.f32 %v6857_v47, %v6857_v47  ;;  %v2932_v6 = vadd.f32 %v2931_v0, %v6806_v21  ;;  %v2688_v20 = vpop.f32.mrb[74].mxu1 }
 0x3e4   :  { %v2885_v61 = vadd.f32 %v6744_v28, %v6872_v60  ;;  %v3018_v43 = vmul.f32 %v6872_v60, %v6872_v60  ;;  %v6894_v8 = vadd.f32 %v2684_v22, %v5871_v59  ;;  %v6897_v12 = vadd.f32 %v2688_v20, %v5938_v30  ;;  %v2690_v45 = vpop.f32.mrb[75].mxu1 }
 0x3e5   :  { %2856 = vadd.xlane.f32.xlu0 %v2855_v53  ;;  %2872 = vadd.xlane.f32.xlu1 %v2871_v13  ;;  %v3110_v18 = vadd.f32 %v3109_v63, %v2989_v3  ;;  %v3126_v2 = vadd.f32 %v3125_v25, %v3004_v39  ;;  %v6900_v0 = vadd.f32 %v2690_v45, %v5938_v30  ;;  %v6910_v22 = vmul.f32 0.0015625, %v773_v19  ;;  %v863_v25 = vpop.xlane.xlu1 %862 }
 0x3e6   :  { %v6904_v28 = vadd.f32 %v6808_v33, %v5938_v30  ;;  %v6908_v27 = vadd.f32 %v6816_v37, %v5871_v59  ;;  %v2901_v31 = vadd.f32 %v6787_v44, %v6897_v12  ;;  %v3033_v3 = vmul.f32 %v6897_v12, %v6897_v12 }
 0x3e7   :  { %v3111_v63 = vadd.f32 %v3110_v18, %v2990_v46  ;;  %v3127_v39 = vadd.f32 %v3126_v2, %v3005_v62  ;;  %v3019_v53 = vmul.f32 %v6894_v8, %v6894_v8  ;;  %v3034_v30 = vmul.f32 %v6900_v0, %v6900_v0  ;;  %v2694_v33 = vpop.f32.mrb[76].mxu1  ;;  %v881_v2 = vpop.xlane.xlu0 %880 }
 0x3e8   :  { %v2886_v59 = vadd.f32 %v2885_v61, %v6894_v8  ;;  %v3141_v37 = vadd.f32 %v6746_v51, %v3018_v43  ;;  %v6923_v19 = vadd.f32 %v2694_v33, %v5956_v54  ;;  %v2696_v44 = vpop.f32.mrb[77].mxu1  ;;  %v2902_v13 = vadd.f32 %v2901_v31, %v6900_v0 }
 0x3e9   :  { %3112 = vadd.xlane.f32.xlu0 %v3111_v63  ;;  %3128 = vadd.xlane.f32.xlu1 %v3127_v39  ;;  %v3157_v46 = vadd.f32 %v6828_v9, %v3033_v3  ;;  %v6928_v62 = vmul.f32 0.0015625, %v6792_v40  ;;  %v6931_v20 = vadd.f32 %v2696_v44, %v5956_v54  ;;  %v3020_v51 = vmul.f32 %v6908_v27, %v6908_v27 }
 0x3ea   :  { %v2887_v61 = vadd.f32 %v2886_v59, %v6908_v27  ;;  %v3035_v43 = vmul.f32 %v6904_v28, %v6904_v28  ;;  %v2917_v45 = vadd.f32 %v2916_v7, %v6923_v19  ;;  %v3048_v18 = vmul.f32 %v6923_v19, %v6923_v19 }
 0x3eb   :  { %v2903_v9 = vadd.f32 %v2902_v13, %v6904_v28  ;;  %v3158_v40 = vadd.f32 %v3157_v46, %v3034_v30  ;;  %v3188_v31 = vadd.f32 %v3187_v24, %v3062_v41  ;;  %v2700_v3 = vpop.f32.mrb[78].mxu1  ;;  %v6944_v63 = vadd.f32 %v6846_v42, %v5956_v54  ;;  %v875_v41 = vpop.xlane.xlu1 %874 }
 0x3ec   :  { %v3142_v39 = vadd.f32 %v3141_v37, %v3019_v53  ;;  %v915_v33 = vmul.f32 %v6910_v22, %v6910_v22  ;;  %v6949_v59 = vadd.f32 %v2700_v3, %v6023_v11  ;;  %v2702_v7 = vpop.f32.mrb[79].mxu1  ;;  %v914_v30 = vmul.f32 %v6928_v62, %v6928_v62 }
 0x3ed   :  { %2888 = vadd.xlane.f32.xlu0 %v2887_v61  ;;  %2904 = vadd.xlane.f32.xlu1 %v2903_v9  ;;  %v906_v44 = vmul.f32 0.0015625, %v863_v25  ;;  %v907_v24 = vmul.f32 0.0015625, %v6826_v50  ;;  %v3049_v54 = vmul.f32 %v6931_v20, %v6931_v20  ;;  %v6957_v42 = vadd.f32 %v2702_v7, %v6023_v11 }
 0x3ee   :  { %8839 = vst [vmem:[#allocation134_spill] sm:$0xff] %v6949_v59  ;;  %v3143_v53 = vadd.f32 %v3142_v39, %v3020_v51  ;;  %v3159_v37 = vadd.f32 %v3158_v40, %v3035_v43  ;;  %v2933_v13 = vadd.f32 %v2932_v6, %v6949_v59  ;;  %v3063_v46 = vmul.f32 %v6949_v59, %v6949_v59  ;;  %v797_v40 = vpop.xlane.xlu0 %796 }
 0x3ef   :  { %8840 = vst [vmem:[#allocation135_spill] sm:$0xff] %v6957_v42  ;;  %v2918_v61 = vadd.f32 %v2917_v45, %v6931_v20  ;;  %v3173_v25 = vadd.f32 %v6878_v48, %v3048_v18  ;;  %v6966_v50 = vadd.f32 %v6839_v17, %v6023_v11  ;;  %v3064_v9 = vmul.f32 %v6957_v42, %v6957_v42  ;;  %v791_v7 = vpop.xlane.xlu1 %790 }
 0x3f0   :  { %v6970_v3 = vmul.f32 0.0015625, %v779_v26  ;;  %v2934_v6 = vadd.f32 %v2933_v13, %v6957_v42  ;;  %v3189_v51 = vadd.f32 %v3188_v31, %v3063_v46  ;;  %v923_v43 = vsub.f32 %v907_v24, %v915_v33 }
 0x3f1   :  { %8841 = vst [vmem:[#allocation136_spill] sm:$0xff] %v6966_v50  ;;  %3144 = vadd.xlane.f32.xlu0 %v3143_v53  ;;  %3160 = vadd.xlane.f32.xlu1 %v3159_v37  ;;  %v3050_v45 = vmul.f32 %v6944_v63, %v6944_v63  ;;  %v922_v48 = vsub.f32 %v906_v44, %v914_v30  ;;  %v6976_v18 = vmul.f32 0.0015625, %v6862_v23  ;;  %v909_v30 = vmul.f32 0.0015625, %v881_v2 }
 0x3f2   :  { %v2919_v11 = vadd.f32 %v2918_v61, %v6944_v63  ;;  %v2935_v17 = vadd.f32 %v2934_v6, %v6966_v50  ;;  %v3174_v26 = vadd.f32 %v3173_v25, %v3049_v54  ;;  %v3190_v39 = vadd.f32 %v3189_v51, %v3064_v9  ;;  %v893_v54 = vpop.xlane.xlu0 %892 }
 0x3f3   :  { %v916_v53 = vmul.f32 %v6970_v3, %v6970_v3  ;;  %v3065_v31 = vmul.f32 %v6966_v50, %v6966_v50  ;;  %v931_v33 = vadd.f32 1e-05, %v923_v43  ;;  %v908_v44 = vmul.f32 0.0015625, %v875_v41  ;;  %v887_v61 = vpop.xlane.xlu1 %886 }
 0x3f4   :  { %v3175_v23 = vadd.f32 %v3174_v26, %v3050_v45  ;;  %v930_v37 = vadd.f32 1e-05, %v922_v48  ;;  %v917_v13 = vmul.f32 %v6976_v18, %v6976_v18  ;;  %v814_v43 = vmul.f32 0.0015625, %v791_v7  ;;  %v6991_v7 = vld [vmem:[%s8347_s4 + $0x8] sm:$0xff] }
 0x3f5   :  { %2920 = vadd.xlane.f32.xlu0 %v2919_v11  ;;  %2936 = vadd.xlane.f32.xlu1 %v2935_v17  ;;  %v3191_v24 = vadd.f32 %v3190_v39, %v3065_v31  ;;  %v924_v46 = vsub.f32 %v908_v44, %v916_v53  ;;  %4299 = vrsqrt.f32 %v931_v33  ;;  %v910_v41 = vmul.f32 0.0015625, %v887_v61 }
 0x3f6   :  { %v925_v25 = vsub.f32 %v909_v30, %v917_v13  ;;  %4301 = vrsqrt.f32 %v930_v37  ;;  %v809_v51 = vpop.xlane.xlu0 %808  ;;  %v815_v45 = vmul.f32 0.0015625, %v797_v40  ;;  %v918_v48 = vmul.f32 %v814_v43, %v814_v43  ;;  %v6997_v13 = vld [vmem:[%s8347_s4] sm:$0xff] }
 0x3f7   :  { %v932_v9 = vadd.f32 1e-05, %v924_v46  ;;  %v803_v2 = vpop.xlane.xlu1 %802  ;;  %v911_v17 = vmul.f32 0.0015625, %v893_v54  ;;  %v6986_v53 = vmul.f32 0.0015625, %v809_v51 }
 0x3f8   :  { %v933_v6 = vadd.f32 1e-05, %v925_v25  ;;  %v926_v39 = vsub.f32 %v910_v41, %v918_v48  ;;  %v919_v33 = vmul.f32 %v815_v45, %v815_v45  ;;  %v816_v44 = vmul.f32 0.0015625, %v803_v2 }
 0x3f9   :  { %3176 = vadd.xlane.f32.xlu0 %v3175_v23  ;;  %3192 = vadd.xlane.f32.xlu1 %v3191_v24  ;;  %4303 = vrsqrt.f32 %v932_v9  ;;  %v921_v61 = vmul.f32 %v6986_v53, %v6986_v53 }
 0x3fa   :  { %4305 = vrsqrt.f32 %v933_v6  ;;  %v905_v26 = vpop.xlane.xlu0 %904  ;;  %v927_v40 = vsub.f32 %v911_v17, %v919_v33  ;;  %v934_v37 = vadd.f32 1e-05, %v926_v39  ;;  %v920_v9 = vmul.f32 %v816_v44, %v816_v44  ;;  %v7013_v39 = vld [vmem:[%s8347_s4 + $0x18] sm:$0xff] }
 0x3fb   :  { %v899_v30 = vpop.xlane.xlu1 %898  ;;  %v913_v24 = vmul.f32 0.0015625, %v905_v26 }
 0x3fc   :  { %v912_v46 = vmul.f32 0.0015625, %v899_v30  ;;  %v935_v2 = vadd.f32 1e-05, %v927_v40  ;;  %4307 = vrsqrt.f32 %v934_v37 }
 0x3fd   :  { %v929_v6 = vsub.f32 %v913_v24, %v921_v61 }
 0x3fe   :  { %v928_v41 = vsub.f32 %v912_v46, %v920_v9  ;;  %4309 = vrsqrt.f32 %v935_v2 }
 0x3ff   :  { %v4300_v11 = vpop.eup %4299  ;;  %v937_v26 = vadd.f32 1e-05, %v929_v6 }
 0x400   :  { %v4302_v31 = vpop.eup %4301  ;;  %v947_v23 = vmul.f32 %v6991_v7, %v4300_v11  ;;  %v7006_v11 = vld [vmem:[%s8347_s4 + $0x10] sm:$0xff]  ;;  %v936_v33 = vadd.f32 1e-05, %v928_v41 }
 0x401   :  { %v946_v54 = vmul.f32 %v6997_v13, %v4302_v31  ;;  %4311 = vrsqrt.f32 %v937_v26 }
 0x402   :  { %4313 = vrsqrt.f32 %v936_v33 }
 0x403   :  { %v4304_v25 = vpop.eup %4303  ;;  %v954_v48 = vmul.f32 %v946_v54, %v6928_v62  ;;  %v955_v62 = vmul.f32 %v947_v23, %v6910_v22 }
 0x404   :  { %v4306_v51 = vpop.eup %4305  ;;  %v948_v17 = vmul.f32 %v7006_v11, %v4304_v25  ;;  %v7038_v25 = vld [vmem:[%s8347_s4 + $0x38] sm:$0xff] }
 0x405   :  { %v949_v31 = vmul.f32 %v7013_v39, %v4306_v51  ;;  %v7044_v51 = vld [vmem:[%s8347_s4 + $0x30] sm:$0xff] }
 0x406   :  { %v4308_v24 = vpop.eup %4307  ;;  %v956_v40 = vmul.f32 %v948_v17, %v6970_v3 }
 0x407   :  { %v957_v30 = vmul.f32 %v949_v31, %v6976_v18 }
 0x408   :  { %v4310_v37 = vpop.eup %4309 }
 0x40a   :  { %1009 = vperm.xlu1 %4277, %v947_v23   ;;  %v7031_v23 = vld [vmem:[%s8347_s4 + $0x28] sm:$0xff] }
 0x40b   :  { %v4312_v18 = vpop.eup %4311  ;;  %v951_v46 = vmul.f32 %v7031_v23, %v4310_v37 }
 0x40c   :  { %v4314_v61 = vpop.eup %4313  ;;  %v953_v9 = vmul.f32 %v7038_v25, %v4312_v18 }
 0x40d   :  { %v959_v6 = vmul.f32 %v951_v46, %v815_v45  ;;  %v952_v2 = vmul.f32 %v7044_v51, %v4314_v61 }
 0x40e   :  { %970 = vrot.lane.b32.xlu1 %v954_v48, %s4346_s9  ;;  %v961_v41 = vmul.f32 %v953_v9, %v6986_v53  ;;  %v8842_v48 = vmov 2  }
 0x40f   :  { %1004 = vperm.xlu0 %4278, %v946_v54   ;;  %v7024_v54 = vld [vmem:[%s8347_s4 + $0x20] sm:$0xff] }
 0x410   :  { %v950_v22 = vmul.f32 %v7024_v54, %v4308_v24 }
 0x412   :  { %1014 = vperm.xlu1 %4277, %v948_v17   ;;  %v958_v3 = vmul.f32 %v950_v22, %v814_v43  ;;  %v960_v43 = vmul.f32 %v952_v2, %v816_v44 }
 0x413   :  { %972 = vrot.lane.b32.xlu0 %v955_v62, %s4346_s9 }
 0x416   :  { %976 = vrot.lane.b32.xlu1 %v957_v30, %s4346_s9 }
 0x417   :  { %1019 = vperm.xlu0 %4278, %v949_v31  }
 0x41a   :  { %974 = vrot.lane.b32.xlu1 %v956_v40, %s4346_s9 }
 0x41b   :  { %1024 = vperm.xlu0 %4278, %v950_v22  }
 0x41e   :  { %1029 = vperm.xlu1 %4277, %v951_v46  }
 0x41f   :  { %978 = vrot.lane.b32.xlu0 %v958_v3, %s4346_s9 }
 0x422   :  { %980 = vrot.lane.b32.xlu1 %v959_v6, %s4346_s9 }
 0x423   :  { %1039 = vperm.xlu0 %4278, %v953_v9  }
 0x426   :  { %1034 = vperm.xlu1 %4277, %v952_v2  }
 0x427   :  { %982 = vrot.lane.b32.xlu0 %v960_v43, %s4346_s9 }
 0x42a   :  { %984 = vrot.lane.b32.xlu1 %v961_v41, %s4346_s9 }
 0x42b   :  { %4279 = vset.pattern.permute.xlu1 %v8842_v48 }
 0x466   :  { %v2825_v45 = vpop.xlane.xlu1 %2824 }
 0x467   :  { %v2938_v17 = vmul.f32 0.00052083336, %v2825_v45 }
 0x469   :  { %v3202_v30 = vmul.f32 %v2938_v17, %v2938_v17 }
 0x46a   :  { %v2841_v26 = vpop.xlane.xlu0 %2840 }
 0x46b   :  { %v2939_v31 = vmul.f32 0.00052083336, %v2841_v26 }
 0x46c   :  { %v3097_v62 = vpop.xlane.xlu1 %3096 }
 0x46d   :  { %v3203_v33 = vmul.f32 %v2939_v31, %v2939_v31  ;;  %v3195_v24 = vmul.f32 0.00052083336, %v3097_v62 }
 0x46e   :  { %v3081_v40 = vpop.xlane.xlu0 %3080 }
 0x46f   :  { %v3194_v37 = vmul.f32 0.00052083336, %v3081_v40  ;;  %v3211_v44 = vsub.f32 %v3195_v24, %v3203_v33 }
 0x471   :  { %v3210_v22 = vsub.f32 %v3194_v37, %v3202_v30  ;;  %v3219_v18 = vadd.f32 1e-05, %v3211_v44 }
 0x472   :  { %v2857_v46 = vpop.xlane.xlu0 %2856  ;;  %v2873_v3 = vpop.xlane.xlu1 %2872 }
 0x473   :  { %v3218_v53 = vadd.f32 1e-05, %v3210_v22  ;;  %4315 = vrsqrt.f32 %v3219_v18  ;;  %v2940_v61 = vmul.f32 0.00052083336, %v2857_v46  ;;  %v2941_v9 = vmul.f32 0.00052083336, %v2873_v3 }
 0x475   :  { %4317 = vrsqrt.f32 %v3218_v53  ;;  %v3204_v43 = vmul.f32 %v2940_v61, %v2940_v61  ;;  %v3205_v41 = vmul.f32 %v2941_v9, %v2941_v9 }
 0x476   :  { %v3113_v6 = vpop.xlane.xlu0 %3112  ;;  %v3129_v2 = vpop.xlane.xlu1 %3128 }
 0x477   :  { %v3196_v45 = vmul.f32 0.00052083336, %v3113_v6  ;;  %v3197_v26 = vmul.f32 0.00052083336, %v3129_v2 }
 0x479   :  { %v3212_v50 = vsub.f32 %v3196_v45, %v3204_v43  ;;  %v3213_v62 = vsub.f32 %v3197_v26, %v3205_v41 }
 0x47a   :  { %v2889_v42 = vpop.xlane.xlu0 %2888  ;;  %v2905_v40 = vpop.xlane.xlu1 %2904 }
 0x47b   :  { %v3220_v33 = vadd.f32 1e-05, %v3212_v50  ;;  %v3221_v30 = vadd.f32 1e-05, %v3213_v62  ;;  %v2942_v24 = vmul.f32 0.00052083336, %v2889_v42 }
 0x47c   :  { %v2943_v37 = vmul.f32 0.00052083336, %v2905_v40 }
 0x47d   :  { %v4316_v44 = vpop.eup %4315  ;;  %4319 = vrsqrt.f32 %v3220_v33  ;;  %v3206_v53 = vmul.f32 %v2942_v24, %v2942_v24 }
 0x47e   :  { %4321 = vrsqrt.f32 %v3221_v30  ;;  %v3145_v22 = vpop.xlane.xlu0 %3144  ;;  %v3161_v18 = vpop.xlane.xlu1 %3160  ;;  %v7053_v46 = vmul.f32 %v6991_v7, %v4316_v44  ;;  %v3207_v6 = vmul.f32 %v2943_v37, %v2943_v37 }
 0x47f   :  { %v4318_v3 = vpop.eup %4317  ;;  %v3198_v2 = vmul.f32 0.00052083336, %v3145_v22  ;;  %v3199_v43 = vmul.f32 0.00052083336, %v3161_v18 }
 0x480   :  { %v7056_v41 = vmul.f32 %v6997_v13, %v4318_v3  ;;  %v3243_v50 = vmul.f32 %v7053_v46, %v2939_v31 }
 0x481   :  { %v3214_v42 = vsub.f32 %v3198_v2, %v3206_v53  ;;  %v3215_v45 = vsub.f32 %v3199_v43, %v3207_v6 }
 0x482   :  { %v2921_v26 = vpop.xlane.xlu0 %2920  ;;  %v2937_v62 = vpop.xlane.xlu1 %2936  ;;  %v3242_v40 = vmul.f32 %v7056_v41, %v2938_v17  ;;  %3260 = vrot.lane.b32.xlu1 %v3243_v50, %s4346_s9 }
 0x483   :  { %v3222_v33 = vadd.f32 1e-05, %v3214_v42  ;;  %v3223_v30 = vadd.f32 1e-05, %v3215_v45  ;;  %v2944_v44 = vmul.f32 0.00052083336, %v2921_v26 }
 0x484   :  { %v2945_v59 = vmul.f32 0.00052083336, %v2937_v62  ;;  %3258 = vrot.lane.b32.xlu0 %v3242_v40, %s4346_s9 }
 0x485   :  { %4323 = vrsqrt.f32 %v3222_v33  ;;  %v3208_v31 = vmul.f32 %v2944_v44, %v2944_v44 }
 0x486   :  { %4325 = vrsqrt.f32 %v3223_v30  ;;  %v3177_v22 = vpop.xlane.xlu0 %3176  ;;  %v3193_v18 = vpop.xlane.xlu1 %3192  ;;  %v3209_v53 = vmul.f32 %v2945_v59, %v2945_v59 }
 0x487   :  { %v4320_v3 = vpop.eup %4319  ;;  %v3200_v6 = vmul.f32 0.00052083336, %v3177_v22  ;;  %v3201_v2 = vmul.f32 0.00052083336, %v3193_v18 }
 0x488   :  { %v4322_v43 = vpop.eup %4321  ;;  %v3236_v17 = vmul.f32 %v7006_v11, %v4320_v3 }
 0x489   :  { %v3216_v21 = vsub.f32 %v3200_v6, %v3208_v31  ;;  %v3217_v50 = vsub.f32 %v3201_v2, %v3209_v53  ;;  %v3237_v42 = vmul.f32 %v7013_v39, %v4322_v43 }
 0x48a   :  { %v3244_v45 = vmul.f32 %v3236_v17, %v2940_v61  ;;  %v7064_v26 = vpop.permute.xlu1 %1009 }
 0x48b   :  { %v3224_v62 = vadd.f32 1e-05, %v3216_v21  ;;  %v3225_v40 = vadd.f32 1e-05, %v3217_v50  ;;  %v3245_v33 = vmul.f32 %v3237_v42, %v2941_v9 }
 0x48c   :  { %3262 = vrot.lane.b32.xlu0 %v3244_v45, %s4346_s9 }
 0x48d   :  { %4327 = vrsqrt.f32 %v3224_v62  ;;  %3264 = vrot.lane.b32.xlu1 %v3245_v33, %s4346_s9 }
 0x48e   :  { %v971_v30 = vpop.permute.xlu1 %970  ;;  %4329 = vrsqrt.f32 %v3225_v40  ;;  %v7073_v9 = vpop.permute.xlu0 %1004 }
 0x48f   :  { %v4324_v22 = vpop.eup %4323  ;;  %v994_v31 = vsub.f32 %v6997_v13, %v971_v30 }
 0x490   :  { %v4326_v18 = vpop.eup %4325  ;;  %v3238_v3 = vmul.f32 %v7024_v54, %v4324_v22 }
 0x491   :  { %v3239_v61 = vmul.f32 %v7031_v23, %v4326_v18  ;;  %1052 = vperm.xlu1 %4279, %v994_v31  }
 0x492   :  { %v3246_v53 = vmul.f32 %v3238_v3, %v2942_v24  ;;  %v7071_v21 = vpop.permute.xlu1 %1014  ;;  %v973_v40 = vpop.permute.xlu0 %972 }
 0x493   :  { %v3247_v6 = vmul.f32 %v3239_v61, %v2943_v37 }
 0x494   :  { %3266 = vrot.lane.b32.xlu0 %v3246_v53, %s4346_s9 }
 0x495   :  { %3268 = vrot.lane.b32.xlu1 %v3247_v6, %s4346_s9 }
 0x496   :  { %v977_v2 = vpop.permute.xlu1 %976  ;;  %v7082_v37 = vpop.permute.xlu0 %1019 }
 0x497   :  { %v4328_v43 = vpop.eup %4327  ;;  %v997_v45 = vsub.f32 %v7013_v39, %v977_v2 }
 0x498   :  { %v3240_v50 = vmul.f32 %v7044_v51, %v4328_v43  ;;  %v4330_v62 = vpop.eup %4329 }
 0x499   :  { %1067 = vperm.xlu1 %4279, %v997_v45   ;;  %v3241_v22 = vmul.f32 %v7038_v25, %v4330_v62 }
 0x49a   :  { %v3248_v33 = vmul.f32 %v3240_v50, %v2944_v44  ;;  %v975_v24 = vpop.permute.xlu1 %974  ;;  %v7089_v6 = vpop.permute.xlu0 %1024 }
 0x49b   :  { %v996_v30 = vsub.f32 %v7006_v11, %v975_v24  ;;  %v3249_v31 = vmul.f32 %v3241_v22, %v2945_v59  ;;  %v995_v59 = vsub.f32 %v6991_v7, %v973_v40 }
 0x49c   :  { %3270 = vrot.lane.b32.xlu0 %v3248_v33, %s4346_s9 }
 0x49d   :  { %1062 = vperm.xlu1 %4279, %v996_v30  }
 0x49e   :  { %v7084_v18 = vpop.permute.xlu1 %1029  ;;  %v979_v2 = vpop.permute.xlu0 %978 }
 0x4a0   :  { %3292 = vperm.xlu0 %4278, %v7056_v41  }
 0x4a1   :  { %3272 = vrot.lane.b32.xlu1 %v3249_v31, %s4346_s9 }
 0x4a2   :  { %v981_v53 = vpop.permute.xlu1 %980  ;;  %v7093_v43 = vpop.permute.xlu0 %1039 }
 0x4a3   :  { %v999_v44 = vsub.f32 %v7031_v23, %v981_v53  ;;  %v1114_v53 = vmul.f32 %v7073_v9, %v5802_v16 }
 0x4a4   :  { %3307 = vperm.xlu0 %4278, %v3237_v42   ;;  %v998_v42 = vsub.f32 %v7024_v54, %v979_v2 }
 0x4a5   :  { %1077 = vperm.xlu1 %4279, %v999_v44   ;;  %v1213_v44 = vmul.f32 %v7073_v9, %v5925_v32  ;;  %v1117_v32 = vmul.f32 %v7082_v37, %v5887_v52 }
 0x4a6   :  { %v7097_v41 = vpop.permute.xlu1 %1034 }
 0x4a8   :  { %3317 = vperm.xlu0 %4278, %v3239_v61   ;;  %v983_v61 = vpop.permute.xlu0 %982 }
 0x4a9   :  { %4280 = vset.pattern.permute.xlu1 %v8667_v49  ;;  %v1000_v49 = vsub.f32 %v7044_v51, %v983_v61 }
 0x4aa   :  { %3297 = vperm.xlu1 %4280, %v7053_v46   ;;  %v985_v45 = vpop.permute.xlu1 %984 }
 0x4ab   :  { %v1001_v46 = vsub.f32 %v7038_v25, %v985_v45 }
 0x4ac   :  { %3327 = vperm.xlu0 %4278, %v3241_v22  }
 0x4ae   :  { %3302 = vperm.xlu1 %4280, %v3236_v17  }
 0x4b0   :  { %4281 = vset.pattern.permute.xlu0 %v8842_v48 }
 0x4b1   :  { %1057 = vperm.xlu0 %4281, %v995_v59  }
 0x4b2   :  { %3312 = vperm.xlu1 %4280, %v3238_v3  }
 0x4b5   :  { %1072 = vperm.xlu0 %4281, %v998_v42  }
 0x4b6   :  { %3322 = vperm.xlu1 %4280, %v3240_v50  }
 0x4b9   :  { %1082 = vperm.xlu0 %4281, %v1000_v49  }
 0x4ba   :  { %4282 = vset.pattern.permute.xlu1 %v8842_v48 }
 0x4bb   :  { %1087 = vperm.xlu1 %4282, %v1001_v46  }
 0x4f4   :  { %v3261_v17 = vpop.permute.xlu1 %3260 }
 0x4f5   :  { %v3283_v62 = vsub.f32 %v6991_v7, %v3261_v17 }
 0x4f6   :  { %v3259_v40 = vpop.permute.xlu0 %3258 }
 0x4f7   :  { %v3282_v33 = vsub.f32 %v6997_v13, %v3259_v40  ;;  %3345 = vperm.xlu0 %4281, %v3283_v62   ;;  %v1042_v13 = vmul.f32 %v7073_v9, %v5799_v1  ;;  %v8844_v40 = vld [vmem:[#allocation11_spill] sm:$0xff] }
 0x4f9   :  { %3340 = vperm.xlu1 %4282, %v3282_v33   ;;  %v1183_v33 = vmul.f32 %v7082_v37, %v8844_v40 }
 0x4fe   :  { %v3263_v30 = vpop.permute.xlu0 %3262 }
 0x4ff   :  { %v3265_v3 = vpop.permute.xlu1 %3264  ;;  %v3284_v50 = vsub.f32 %v7006_v11, %v3263_v30  ;;  %v1180_v11 = vmul.f32 %v7073_v9, %v5838_v15  ;;  %v1045_v15 = vmul.f32 %v7082_v37, %v5884_v5 }
 0x500   :  { %v3285_v24 = vsub.f32 %v7013_v39, %v3265_v3  ;;  %v1147_v39 = vmul.f32 %v7073_v9, %v5807_v10  ;;  %v8843_v9 = vld [vmem:[#allocation15_spill] sm:$0xff]  ;;  %v8845_v3 = vld [vmem:[#allocation18_spill] sm:$0xff] }
 0x501   :  { %v1150_v62 = vmul.f32 %v7082_v37, %v8843_v9 }
 0x502   :  { %3355 = vperm.xlu1 %4282, %v3285_v24  }
 0x506   :  { %v3267_v22 = vpop.permute.xlu0 %3266  ;;  %3350 = vperm.xlu1 %4282, %v3284_v50  }
 0x507   :  { %v3286_v48 = vsub.f32 %v7024_v54, %v3267_v22 }
 0x509   :  { %3360 = vperm.xlu0 %4281, %v3286_v48  }
 0x50e   :  { %v3271_v31 = vpop.permute.xlu0 %3270 }
 0x50f   :  { %v3288_v7 = vsub.f32 %v7044_v51, %v3271_v31 }
 0x510   :  { %v1053_v54 = vpop.permute.xlu1 %1052 }
 0x511   :  { %3370 = vperm.xlu0 %4281, %v3288_v7   ;;  %v1090_v2 = vadd.f32 %v1053_v54, %v1042_v13  ;;  %v1122_v59 = vadd.f32 %v1114_v53, %v1053_v54  ;;  %v1155_v51 = vadd.f32 %v1147_v39, %v1053_v54  ;;  %v1188_v42 = vadd.f32 %v1180_v11, %v1053_v54  ;;  %v8846_v53 = vld [vmem:[#allocation4_spill] sm:$0xff] }
 0x512   :  { %v1221_v61 = vadd.f32 %v1213_v44, %v1053_v54  ;;  %v1044_v39 = vmul.f32 %v7071_v21, %v8846_v53 }
 0x513   :  { %v1098_v1 = vmax.f32 %v1090_v2, 0.0  ;;  %v1130_v49 = vmax.f32 %v1122_v59, 0.0  ;;  %v1163_v45 = vmax.f32 %v1155_v51, 0.0  ;;  %v1196_v16 = vmax.f32 %v1188_v42, 0.0  ;;  %v8847_v2 = vld [vmem:[#allocation6_spill] sm:$0xff]  ;;  %v8848_v42 = vld [vmem:[#allocation5_spill] sm:$0xff] }
 0x514   :  { %v1229_v46 = vmax.f32 %v1221_v61, 0.0  ;;  %v3269_v17 = vpop.permute.xlu1 %3268  ;;  %v1116_v59 = vmul.f32 %v7071_v21, %v8847_v2  ;;  %v1149_v61 = vmul.f32 %v7071_v21, %v8848_v42 }
 0x515   :  { %1106 = vst [vmem:[%s8348_s5] sm:$0xff] %v1098_v1  ;;  %3896 = vst [vmem:[%s8348_s5 + $0x40] sm:$0xff] %v1130_v49  ;;  %v3287_v10 = vsub.f32 %v7031_v23, %v3269_v17  ;;  %v1216_v23 = vmul.f32 %v7082_v37, %v8845_v3  ;;  %v8849_v1 = vld [vmem:[#allocation21_spill] sm:$0xff] }
 0x516   :  { %3904 = vst [vmem:[%s8348_s5 + $0x80] sm:$0xff] %v1163_v45  ;;  %3912 = vst [vmem:[%s8348_s5 + $0xc0] sm:$0xff] %v1196_v16  ;;  %v1182_v49 = vmul.f32 %v7071_v21, %v8849_v1  ;;  %v8850_v45 = vld [vmem:[#allocation10_spill] sm:$0xff] }
 0x517   :  { %3920 = vst [vmem:[%s8348_s5 + $0x100] sm:$0xff] %v1229_v46  ;;  %3365 = vperm.xlu1 %4282, %v3287_v10   ;;  %v1215_v16 = vmul.f32 %v7071_v21, %v8850_v45  ;;  %v8851_v21 = vld [vmem:[#allocation12_spill] sm:$0xff] }
 0x518   :  { %v1068_v24 = vpop.permute.xlu1 %1067 }
 0x519   :  { %v1093_v30 = vadd.f32 %v1068_v24, %v1045_v15  ;;  %v1125_v50 = vadd.f32 %v1117_v32, %v1068_v24  ;;  %v1158_v22 = vadd.f32 %v1150_v62, %v1068_v24  ;;  %v1191_v48 = vadd.f32 %v1183_v33, %v1068_v24 }
 0x51a   :  { %v1224_v31 = vadd.f32 %v1216_v23, %v1068_v24 }
 0x51b   :  { %v1101_v5 = vmax.f32 %v1093_v30, 0.0  ;;  %v1133_v7 = vmax.f32 %v1125_v50, 0.0  ;;  %v1166_v13 = vmax.f32 %v1158_v22, 0.0  ;;  %v1199_v52 = vmax.f32 %v1191_v48, 0.0  ;;  %v8852_v22 = vld [vmem:[#allocation14_spill] sm:$0xff] }
 0x51c   :  { %v1232_v11 = vmax.f32 %v1224_v31, 0.0  ;;  %v1063_v44 = vpop.permute.xlu1 %1062  ;;  %v1047_v30 = vmul.f32 %v7084_v18, %v8851_v21  ;;  %v1119_v48 = vmul.f32 %v7084_v18, %v8852_v22  ;;  %v8853_v31 = vld [vmem:[#allocation20_spill] sm:$0xff]  ;;  %v8862_v22 = vld [vmem:[#allocation9_spill] sm:$0xff] }
 0x51d   :  { %1109 = vst [vmem:[%s8348_s5 + $0x18] sm:$0xff] %v1101_v5  ;;  %3899 = vst [vmem:[%s8348_s5 + $0x58] sm:$0xff] %v1133_v7  ;;  %v1092_v54 = vadd.f32 %v1063_v44, %v1044_v39  ;;  %v1124_v10 = vadd.f32 %v1116_v59, %v1063_v44  ;;  %v1157_v15 = vadd.f32 %v1149_v61, %v1063_v44  ;;  %v8854_v7 = vld [vmem:[#allocation26_spill] sm:$0xff] }
 0x51e   :  { %3907 = vst [vmem:[%s8348_s5 + $0x98] sm:$0xff] %v1166_v13  ;;  %3915 = vst [vmem:[%s8348_s5 + $0xd8] sm:$0xff] %v1199_v52  ;;  %v1190_v32 = vadd.f32 %v1182_v49, %v1063_v44  ;;  %v1223_v9 = vadd.f32 %v1215_v16, %v1063_v44  ;;  %v1152_v5 = vmul.f32 %v7084_v18, %v8853_v31  ;;  %v8855_v52 = vld [vmem:[#allocation37_spill] sm:$0xff]  ;;  %v8858_v49 = vld [vmem:[#allocation2_spill] sm:$0xff] }
 0x51f   :  { %v7159_v37 = vpop.permute.xlu0 %3292  ;;  %3923 = vst [vmem:[%s8348_s5 + $0x118] sm:$0xff] %v1232_v11  ;;  %v1100_v17 = vmax.f32 %v1092_v54, 0.0  ;;  %v1132_v40 = vmax.f32 %v1124_v10, 0.0  ;;  %v1165_v3 = vmax.f32 %v1157_v15, 0.0  ;;  %v1185_v13 = vmul.f32 %v7084_v18, %v8854_v7  ;;  %v8857_v11 = vld [vmem:[#allocation47_spill] sm:$0xff]  ;;  %v8860_v10 = vld [vmem:[#allocation16_spill] sm:$0xff] }
 0x520   :  { %v3273_v51 = vpop.permute.xlu1 %3272  ;;  %v1198_v23 = vmax.f32 %v1190_v32, 0.0  ;;  %v1231_v24 = vmax.f32 %v1223_v9, 0.0  ;;  %v1218_v53 = vmul.f32 %v7084_v18, %v8855_v52  ;;  %v1043_v44 = vmul.f32 %v7064_v26, %v8857_v11  ;;  %v8859_v16 = vld [vmem:[#allocation3_spill] sm:$0xff]  ;;  %v8863_v31 = vld [vmem:[#allocation8_spill] sm:$0xff] }
 0x521   :  { %1108 = vst [vmem:[%s8348_s5 + $0x10] sm:$0xff] %v1100_v17  ;;  %3898 = vst [vmem:[%s8348_s5 + $0x50] sm:$0xff] %v1132_v40  ;;  %v3289_v54 = vsub.f32 %v7038_v25, %v3273_v51  ;;  %v1115_v45 = vmul.f32 %v7064_v26, %v8858_v49  ;;  %v1148_v17 = vmul.f32 %v7064_v26, %v8859_v16 }
 0x522   :  { %3906 = vst [vmem:[%s8348_s5 + $0x90] sm:$0xff] %v1165_v3  ;;  %3914 = vst [vmem:[%s8348_s5 + $0xd0] sm:$0xff] %v1198_v23  ;;  %v1181_v18 = vmul.f32 %v7064_v26, %v8860_v10  ;;  %v8861_v3 = vld [vmem:[#allocation19_spill] sm:$0xff] }
 0x523   :  { %v7172_v46 = vpop.permute.xlu0 %3307  ;;  %3922 = vst [vmem:[%s8348_s5 + $0x110] sm:$0xff] %v1231_v24  ;;  %3375 = vperm.xlu1 %4282, %v3289_v54  }
 0x524   :  { %v1078_v62 = vpop.permute.xlu1 %1077 }
 0x525   :  { %v1095_v2 = vadd.f32 %v1078_v62, %v1047_v30  ;;  %v1127_v59 = vadd.f32 %v1119_v48, %v1078_v62  ;;  %v1160_v42 = vadd.f32 %v1152_v5, %v1078_v62  ;;  %v1193_v61 = vadd.f32 %v1185_v13, %v1078_v62 }
 0x526   :  { %v1226_v1 = vadd.f32 %v1218_v53, %v1078_v62  ;;  %v1214_v62 = vmul.f32 %v7064_v26, %v8861_v3  ;;  %v1046_v48 = vmul.f32 %v7089_v6, %v8862_v22  ;;  %v1118_v5 = vmul.f32 %v7089_v6, %v8863_v31 }
 0x527   :  { %v7177_v33 = vpop.permute.xlu0 %3317  ;;  %v1103_v15 = vmax.f32 %v1095_v2, 0.0  ;;  %v1135_v9 = vmax.f32 %v1127_v59, 0.0  ;;  %v1168_v25 = vmax.f32 %v1160_v42, 0.0  ;;  %v1201_v51 = vmax.f32 %v1193_v61, 0.0  ;;  %v8864_v2 = vld [vmem:[#allocation22_spill] sm:$0xff]  ;;  %v8866_v61 = vld [vmem:[#allocation24_spill] sm:$0xff] }
 0x528   :  { %v1234_v40 = vmax.f32 %v1226_v1, 0.0  ;;  %v1151_v59 = vmul.f32 %v7089_v6, %v8864_v2  ;;  %v1217_v1 = vmul.f32 %v7089_v6, %v8866_v61 }
 0x529   :  { %v7193_v50 = vpop.permute.xlu1 %3297  ;;  %1111 = vst [vmem:[%s8348_s5 + $0x28] sm:$0xff] %v1103_v15  ;;  %3901 = vst [vmem:[%s8348_s5 + $0x68] sm:$0xff] %v1135_v9 }
 0x52a   :  { %3909 = vst [vmem:[%s8348_s5 + $0xa8] sm:$0xff] %v1168_v25  ;;  %3917 = vst [vmem:[%s8348_s5 + $0xe8] sm:$0xff] %v1201_v51 }
 0x52b   :  { %v7203_v39 = vpop.permute.xlu0 %3327  ;;  %3925 = vst [vmem:[%s8348_s5 + $0x128] sm:$0xff] %v1234_v40 }
 0x52c   :  { %8856 = vst [vmem:[#allocation15_spill] sm:$0xff] %v7203_v39 }
 0x52d   :  { %v7214_v32 = vpop.permute.xlu1 %3302 }
 0x530   :  { %v1058_v23 = vpop.permute.xlu0 %1057 }
 0x531   :  { %v1091_v26 = vadd.f32 %v1058_v23, %v1043_v44  ;;  %v1123_v24 = vadd.f32 %v1115_v45, %v1058_v23  ;;  %v1156_v21 = vadd.f32 %v1148_v17, %v1058_v23  ;;  %v1189_v30 = vadd.f32 %v1181_v18, %v1058_v23  ;;  %v7237_v54 = vpop.permute.xlu1 %3312  ;;  %v8865_v44 = vld [vmem:[#allocation7_spill] sm:$0xff] }
 0x532   :  { %v1222_v7 = vadd.f32 %v1214_v62, %v1058_v23  ;;  %v1184_v42 = vmul.f32 %v7089_v6, %v8865_v44  ;;  %v8867_v62 = vld [vmem:[#allocation13_spill] sm:$0xff] }
 0x533   :  { %v1099_v13 = vmax.f32 %v1091_v26, 0.0  ;;  %v1131_v52 = vmax.f32 %v1123_v24, 0.0  ;;  %v1164_v53 = vmax.f32 %v1156_v21, 0.0  ;;  %v1197_v11 = vmax.f32 %v1189_v30, 0.0  ;;  %v8868_v24 = vld [vmem:[#allocation17_spill] sm:$0xff]  ;;  %v8869_v30 = vld [vmem:[#allocation23_spill] sm:$0xff] }
 0x534   :  { %v1230_v49 = vmax.f32 %v1222_v7, 0.0  ;;  %v1073_v45 = vpop.permute.xlu0 %1072  ;;  %v1048_v23 = vmul.f32 %v7097_v41, %v8867_v62  ;;  %v1120_v21 = vmul.f32 %v7097_v41, %v8868_v24  ;;  %v1153_v22 = vmul.f32 %v7097_v41, %v8869_v30 }
 0x535   :  { %1107 = vst [vmem:[%s8348_s5 + $0x8] sm:$0xff] %v1099_v13  ;;  %3897 = vst [vmem:[%s8348_s5 + $0x48] sm:$0xff] %v1131_v52  ;;  %v1094_v16 = vadd.f32 %v1073_v45, %v1046_v48  ;;  %v1126_v6 = vadd.f32 %v1118_v5, %v1073_v45  ;;  %v1159_v17 = vadd.f32 %v1151_v59, %v1073_v45  ;;  %v7268_v26 = vpop.permute.xlu1 %3322  ;;  %v8870_v48 = vld [vmem:[#allocation25_spill] sm:$0xff]  ;;  %v8871_v5 = vld [vmem:[#allocation28_spill] sm:$0xff] }
 0x536   :  { %3905 = vst [vmem:[%s8348_s5 + $0x88] sm:$0xff] %v1164_v53  ;;  %3913 = vst [vmem:[%s8348_s5 + $0xc8] sm:$0xff] %v1197_v11  ;;  %v1192_v10 = vadd.f32 %v1184_v42, %v1073_v45  ;;  %v1225_v18 = vadd.f32 %v1217_v1, %v1073_v45  ;;  %v1186_v31 = vmul.f32 %v7097_v41, %v8870_v48 }
 0x537   :  { %3921 = vst [vmem:[%s8348_s5 + $0x108] sm:$0xff] %v1230_v49  ;;  %v1102_v15 = vmax.f32 %v1094_v16, 0.0  ;;  %v1134_v9 = vmax.f32 %v1126_v6, 0.0  ;;  %v1167_v25 = vmax.f32 %v1159_v17, 0.0  ;;  %v1219_v7 = vmul.f32 %v7097_v41, %v8871_v5  ;;  %v8872_v49 = vld [vmem:[#allocation41_spill] sm:$0xff]  ;;  %v8873_v16 = vld [vmem:[#allocation46_spill] sm:$0xff] }
 0x538   :  { %v1200_v51 = vmax.f32 %v1192_v10, 0.0  ;;  %v1233_v40 = vmax.f32 %v1225_v18, 0.0  ;;  %v1083_v3 = vpop.permute.xlu0 %1082  ;;  %v1049_v45 = vmul.f32 %v7093_v43, %v8872_v49  ;;  %v1121_v6 = vmul.f32 %v7093_v43, %v8873_v16  ;;  %v8874_v17 = vld [vmem:[#allocation30_spill] sm:$0xff]  ;;  %v8875_v18 = vld [vmem:[#allocation39_spill] sm:$0xff] }
 0x539   :  { %1110 = vst [vmem:[%s8348_s5 + $0x20] sm:$0xff] %v1102_v15  ;;  %3900 = vst [vmem:[%s8348_s5 + $0x60] sm:$0xff] %v1134_v9  ;;  %v1096_v13 = vadd.f32 %v1083_v3, %v1048_v23  ;;  %v1128_v52 = vadd.f32 %v1120_v21, %v1083_v3  ;;  %v1161_v53 = vadd.f32 %v1153_v22, %v1083_v3  ;;  %v8876_v9 = vld [vmem:[#allocation27_spill] sm:$0xff] }
 0x53a   :  { %3908 = vst [vmem:[%s8348_s5 + $0xa0] sm:$0xff] %v1167_v25  ;;  %3916 = vst [vmem:[%s8348_s5 + $0xe0] sm:$0xff] %v1200_v51  ;;  %v1194_v11 = vadd.f32 %v1186_v31, %v1083_v3  ;;  %v1227_v2 = vadd.f32 %v1219_v7, %v1083_v3  ;;  %v1088_v1 = vpop.permute.xlu1 %1087  ;;  %v1154_v10 = vmul.f32 %v7093_v43, %v8874_v17  ;;  %v8878_v5 = vld [vmem:[#allocation55_spill] sm:$0xff] }
 0x53b   :  { %3924 = vst [vmem:[%s8348_s5 + $0x120] sm:$0xff] %v1233_v40  ;;  %v1104_v59 = vmax.f32 %v1096_v13, 0.0  ;;  %v1136_v44 = vmax.f32 %v1128_v52, 0.0  ;;  %v1169_v41 = vmax.f32 %v1161_v53, 0.0  ;;  %v1187_v15 = vmul.f32 %v7093_v43, %v8875_v18  ;;  %v8879_v13 = vld [vmem:[#allocation32_spill] sm:$0xff]  ;;  %v8880_v53 = vld [vmem:[#allocation29_spill] sm:$0xff] }
 0x53c   :  { %v1202_v42 = vmax.f32 %v1194_v11, 0.0  ;;  %v1235_v61 = vmax.f32 %v1227_v2, 0.0  ;;  %v1220_v25 = vmul.f32 %v7093_v43, %v8876_v9  ;;  %v1097_v51 = vadd.f32 %v1088_v1, %v1049_v45  ;;  %v8877_v43 = vld [vmem:[#allocation36_spill] sm:$0xff]  ;;  %v8885_v45 = vld [vmem:[#allocation97_spill] sm:$0xff] }
 0x53d   :  { %1112 = vst [vmem:[%s8348_s5 + $0x30] sm:$0xff] %v1104_v59  ;;  %3902 = vst [vmem:[%s8348_s5 + $0x70] sm:$0xff] %v1136_v44  ;;  %v1129_v40 = vadd.f32 %v1121_v6, %v1088_v1  ;;  %v1162_v3 = vadd.f32 %v1154_v10, %v1088_v1  ;;  %v1195_v62 = vadd.f32 %v1187_v15, %v1088_v1  ;;  %v8881_v2 = vld [vmem:[#allocation64_spill] sm:$0xff]  ;;  %v8882_v44 = vld [vmem:[#allocation66_spill] sm:$0xff] }
 0x53e   :  { %3910 = vst [vmem:[%s8348_s5 + $0xb0] sm:$0xff] %v1169_v41  ;;  %3918 = vst [vmem:[%s8348_s5 + $0xf0] sm:$0xff] %v1202_v42  ;;  %v1228_v23 = vadd.f32 %v1220_v25, %v1088_v1  ;;  %v1105_v24 = vmax.f32 %v1097_v51, 0.0  ;;  %v7329_v31 = vmul.f32 %v7159_v37, %v8877_v43  ;;  %v7333_v7 = vmul.f32 %v7159_v37, %v8878_v5  ;;  %v8883_v42 = vld [vmem:[#allocation70_spill] sm:$0xff]  ;;  %v8884_v1 = vld [vmem:[#allocation72_spill] sm:$0xff] }
 0x53f   :  { %3926 = vst [vmem:[%s8348_s5 + $0x130] sm:$0xff] %v1235_v61  ;;  %v1137_v21 = vmax.f32 %v1129_v40, 0.0  ;;  %v1170_v30 = vmax.f32 %v1162_v3, 0.0  ;;  %v1203_v22 = vmax.f32 %v1195_v62, 0.0  ;;  %v7337_v52 = vmul.f32 %v7159_v37, %v8879_v13  ;;  %v8886_v6 = vld [vmem:[#allocation99_spill] sm:$0xff]  ;;  %v8887_v10 = vld [vmem:[#allocation102_spill] sm:$0xff] }
 0x540   :  { %v1236_v48 = vmax.f32 %v1228_v23, 0.0  ;;  %1113 = vst [vmem:[%s8348_s5 + $0x38] sm:$0xff] %v1105_v24  ;;  %v7341_v11 = vmul.f32 %v7159_v37, %v8880_v53  ;;  %v7345_v59 = vmul.f32 %v7159_v37, %v8881_v2  ;;  %v7349_v41 = vmul.f32 %v7159_v37, %v8882_v44  ;;  %v8888_v15 = vld [vmem:[#allocation103_spill] sm:$0xff]  ;;  %v8889_v25 = vld [vmem:[#allocation125_spill] sm:$0xff]  ;;  %v8891_v62 = vld [vmem:[#allocation128_spill] sm:$0xff] }
 0x541   :  { %3903 = vst [vmem:[%s8348_s5 + $0x78] sm:$0xff] %v1137_v21  ;;  %3911 = vst [vmem:[%s8348_s5 + $0xb8] sm:$0xff] %v1170_v30  ;;  %v7353_v61 = vmul.f32 %v7159_v37, %v8883_v42  ;;  %v7357_v49 = vmul.f32 %v7159_v37, %v8884_v1  ;;  %v7361_v16 = vmul.f32 %v7159_v37, %v8885_v45  ;;  %v8890_v40 = vld [vmem:[#allocation127_spill] sm:$0xff]  ;;  %v8892_v24 = vld [vmem:[#allocation34_spill] sm:$0xff] }
 0x542   :  { %3919 = vst [vmem:[%s8348_s5 + $0xf8] sm:$0xff] %v1203_v22  ;;  %3927 = vst [vmem:[%s8348_s5 + $0x138] sm:$0xff] %v1236_v48  ;;  %v7365_v17 = vmul.f32 %v7159_v37, %v8886_v6  ;;  %v7369_v18 = vmul.f32 %v7159_v37, %v8887_v10  ;;  %v7373_v9 = vmul.f32 %v7159_v37, %v8888_v15  ;;  %v8893_v30 = vld [vmem:[#allocation40_spill] sm:$0xff]  ;;  %v8894_v48 = vld [vmem:[#allocation31_spill] sm:$0xff] }
 0x543   :  { %v7377_v51 = vmul.f32 %v7159_v37, %v8889_v25  ;;  %v7381_v3 = vmul.f32 %v7159_v37, %v8890_v40  ;;  %v7385_v23 = vmul.f32 %v7159_v37, %v8891_v62  ;;  %v7389_v21 = vmul.f32 %v7172_v46, %v8892_v24  ;;  %v8895_v5 = vld [vmem:[#allocation50_spill] sm:$0xff]  ;;  %v8896_v53 = vld [vmem:[#allocation76_spill] sm:$0xff]  ;;  %v8897_v2 = vld [vmem:[#allocation79_spill] sm:$0xff] }
 0x544   :  { %v7393_v22 = vmul.f32 %v7172_v46, %v8893_v30  ;;  %v7397_v43 = vmul.f32 %v7172_v46, %v8894_v48  ;;  %v7401_v13 = vmul.f32 %v7172_v46, %v8895_v5  ;;  %v7405_v37 = vmul.f32 %v7172_v46, %v8896_v53  ;;  %v8898_v42 = vld [vmem:[#allocation82_spill] sm:$0xff]  ;;  %v8899_v45 = vld [vmem:[#allocation85_spill] sm:$0xff]  ;;  %v8900_v10 = vld [vmem:[#allocation108_spill] sm:$0xff] }
 0x545   :  { %v7409_v44 = vmul.f32 %v7172_v46, %v8897_v2  ;;  %v7413_v1 = vmul.f32 %v7172_v46, %v8898_v42  ;;  %v7417_v6 = vmul.f32 %v7172_v46, %v8899_v45  ;;  %v7421_v15 = vmul.f32 %v7172_v46, %v8900_v10  ;;  %v8902_v25 = vld [vmem:[#allocation112_spill] sm:$0xff]  ;;  %v8904_v62 = vld [vmem:[#allocation115_spill] sm:$0xff]  ;;  %v8906_v30 = vld [vmem:[#allocation118_spill] sm:$0xff] }
 0x546   :  { %v7425_v40 = vmul.f32 %v7172_v46, %v8902_v25  ;;  %v7429_v24 = vmul.f32 %v7172_v46, %v8904_v62  ;;  %v7433_v48 = vmul.f32 %v7172_v46, %v8906_v30  ;;  %v7437_v5 = vmul.f32 %v7172_v46, %v6844_v58  ;;  %v8911_v42 = vld [vmem:[#allocation35_spill] sm:$0xff]  ;;  %v8913_v10 = vld [vmem:[#allocation45_spill] sm:$0xff]  ;;  %v8917_v30 = vld [vmem:[#allocation62_spill] sm:$0xff] }
 0x547   :  { %8901 = vst [vmem:[#allocation11_spill] sm:$0xff] %v7421_v15  ;;  %v7441_v53 = vmul.f32 %v7172_v46, %v6850_v34  ;;  %v7445_v2 = vmul.f32 %v7172_v46, %v6857_v47  ;;  %v7449_v45 = vmul.f32 %v7177_v33, %v8911_v42  ;;  %v7453_v25 = vmul.f32 %v7177_v33, %v8913_v10  ;;  %v8915_v62 = vld [vmem:[#allocation33_spill] sm:$0xff]  ;;  %v8921_v46 = vld [vmem:[#allocation87_spill] sm:$0xff] }
 0x548   :  { %8903 = vst [vmem:[#allocation18_spill] sm:$0xff] %v7425_v40  ;;  %8905 = vst [vmem:[#allocation4_spill] sm:$0xff] %v7429_v24  ;;  %v7457_v58 = vmul.f32 %v7177_v33, %v8915_v62  ;;  %v7461_v34 = vmul.f32 %v7177_v33, %v8917_v30  ;;  %v7465_v47 = vmul.f32 %v7177_v33, %v8919_v57  ;;  %v8956_v24 = vld [vmem:[#allocation48_spill] sm:$0xff]  ;;  %v8960_v15 = vld [vmem:[#allocation73_spill] sm:$0xff] }
 0x549   :  { %8907 = vst [vmem:[#allocation6_spill] sm:$0xff] %v7433_v48  ;;  %8908 = vst [vmem:[#allocation5_spill] sm:$0xff] %v7437_v5  ;;  %v7469_v42 = vmul.f32 %v7177_v33, %v8921_v46  ;;  %v7473_v10 = vmul.f32 %v7177_v33, %v8923_v29  ;;  %v7477_v62 = vmul.f32 %v7177_v33, %v8925_v56  ;;  %v8952_v5 = vld [vmem:[#allocation38_spill] sm:$0xff]  ;;  %v8954_v48 = vld [vmem:[#allocation49_spill] sm:$0xff] }
 0x54a   :  { %8909 = vst [vmem:[#allocation21_spill] sm:$0xff] %v7441_v53  ;;  %8910 = vst [vmem:[#allocation10_spill] sm:$0xff] %v7445_v2  ;;  %v7497_v56 = vmul.f32 %v7177_v33, %v6897_v12  ;;  %v8950_v2 = vld [vmem:[#allocation130_spill] sm:$0xff]  ;;  %v8951_v53 = vld [vmem:[#allocation131_spill] sm:$0xff] }
 0x54b   :  { %8912 = vst [vmem:[#allocation12_spill] sm:$0xff] %v7449_v45  ;;  %8914 = vst [vmem:[#allocation14_spill] sm:$0xff] %v7453_v25  ;;  %v8948_v25 = vld [vmem:[#allocation105_spill] sm:$0xff]  ;;  %v8949_v45 = vld [vmem:[#allocation106_spill] sm:$0xff] }
 0x54c   :  { %8916 = vst [vmem:[#allocation20_spill] sm:$0xff] %v7457_v58  ;;  %8918 = vst [vmem:[#allocation26_spill] sm:$0xff] %v7461_v34  ;;  %v8927_v58 = vld [vmem:[#allocation116_spill] sm:$0xff] }
 0x54d   :  { %8920 = vst [vmem:[#allocation37_spill] sm:$0xff] %v7465_v47  ;;  %8922 = vst [vmem:[#allocation47_spill] sm:$0xff] %v7469_v42  ;;  %v7481_v30 = vmul.f32 %v7177_v33, %v8927_v58  ;;  %v8929_v34 = vld [vmem:[#allocation120_spill] sm:$0xff]  ;;  %v8931_v47 = vld [vmem:[#allocation121_spill] sm:$0xff]  ;;  %v7501_v58 = vmul.f32 %v7177_v33, %v6900_v0 }
 0x54e   :  { %8924 = vst [vmem:[#allocation2_spill] sm:$0xff] %v7473_v10  ;;  %8926 = vst [vmem:[#allocation3_spill] sm:$0xff] %v7477_v62  ;;  %v7485_v57 = vmul.f32 %v7177_v33, %v8929_v34  ;;  %v7489_v46 = vmul.f32 %v7177_v33, %v8931_v47  ;;  %v8933_v42 = vld [vmem:[#allocation122_spill] sm:$0xff]  ;;  %v7505_v34 = vmul.f32 %v7177_v33, %v6904_v28  ;;  %v8946_v62 = vld [vmem:[#allocation101_spill] sm:$0xff] }
 0x54f   :  { %8928 = vst [vmem:[#allocation16_spill] sm:$0xff] %v7481_v30  ;;  %v7493_v29 = vmul.f32 %v7177_v33, %v8933_v42  ;;  %8935 = vst [vmem:[#allocation22_spill] sm:$0xff] %v7497_v56  ;;  %v8941_v56 = vld [vmem:[#allocation56_spill] sm:$0xff]  ;;  %v8943_v33 = vld [vmem:[#allocation71_spill] sm:$0xff] }
 0x550   :  { %8930 = vst [vmem:[#allocation19_spill] sm:$0xff] %v7485_v57  ;;  %8932 = vst [vmem:[#allocation9_spill] sm:$0xff] %v7489_v46  ;;  %v8938_v57 = vld [vmem:[#allocation42_spill] sm:$0xff]  ;;  %v8939_v46 = vld [vmem:[#allocation43_spill] sm:$0xff]  ;;  %v7521_v0 = vmul.f32 %v7193_v50, %v8941_v56  ;;  %v7541_v56 = vmul.f32 %v7193_v50, %v8946_v62  ;;  %v7561_v62 = vmul.f32 %v7193_v50, %v8951_v53 }
 0x551   :  { %8934 = vst [vmem:[#allocation8_spill] sm:$0xff] %v7493_v29  ;;  %8936 = vst [vmem:[#allocation7_spill] sm:$0xff] %v7501_v58  ;;  %v7509_v47 = vmul.f32 %v7193_v50, %v8938_v57  ;;  %v7513_v42 = vmul.f32 %v7193_v50, %v8939_v46  ;;  %v8940_v29 = vld [vmem:[#allocation57_spill] sm:$0xff]  ;;  %v8942_v58 = vld [vmem:[#allocation67_spill] sm:$0xff]  ;;  %v7529_v57 = vmul.f32 %v7193_v50, %v8943_v33 }
 0x552   :  { %8937 = vst [vmem:[#allocation24_spill] sm:$0xff] %v7505_v34  ;;  %v7517_v12 = vmul.f32 %v7193_v50, %v8940_v29  ;;  %v7525_v28 = vmul.f32 %v7193_v50, %v8942_v58  ;;  %v8944_v34 = vld [vmem:[#allocation74_spill] sm:$0xff]  ;;  %v8945_v30 = vld [vmem:[#allocation75_spill] sm:$0xff]  ;;  %v8947_v10 = vld [vmem:[#allocation104_spill] sm:$0xff]  ;;  %v7549_v33 = vmul.f32 %v7193_v50, %v8948_v25  ;;  %v7569_v25 = vmul.f32 %v7214_v32, %v8952_v5 }
 0x553   :  { %v7533_v46 = vmul.f32 %v7193_v50, %v8944_v34  ;;  %v7537_v29 = vmul.f32 %v7193_v50, %v8945_v30  ;;  %v7545_v58 = vmul.f32 %v7193_v50, %v8947_v10  ;;  %v7553_v34 = vmul.f32 %v7193_v50, %v8949_v45  ;;  %v8958_v40 = vld [vmem:[#allocation44_spill] sm:$0xff] }
 0x554   :  { %v7557_v30 = vmul.f32 %v7193_v50, %v8950_v2  ;;  %v7565_v10 = vmul.f32 %v7193_v50, %v6779_v36  ;;  %8953 = vst [vmem:[#allocation13_spill] sm:$0xff] %v7569_v25  ;;  %v7573_v45 = vmul.f32 %v7214_v32, %v8954_v48  ;;  %v7577_v2 = vmul.f32 %v7214_v32, %v8956_v24  ;;  %v8962_v50 = vld [vmem:[#allocation77_spill] sm:$0xff]  ;;  %v8964_v25 = vld [vmem:[#allocation78_spill] sm:$0xff] }
 0x555   :  { %v7581_v53 = vmul.f32 %v7214_v32, %v8958_v40  ;;  %v7585_v36 = vmul.f32 %v7214_v32, %v8960_v15  ;;  %v7589_v5 = vmul.f32 %v7214_v32, %v8962_v50  ;;  %v7593_v48 = vmul.f32 %v7214_v32, %v8964_v25 }
 0x556   :  { %8955 = vst [vmem:[#allocation17_spill] sm:$0xff] %v7573_v45  ;;  %8957 = vst [vmem:[#allocation23_spill] sm:$0xff] %v7577_v2  ;;  %v8965_v45 = vld [vmem:[#allocation81_spill] sm:$0xff]  ;;  %v8966_v2 = vld [vmem:[#allocation107_spill] sm:$0xff] }
 0x557   :  { %8959 = vst [vmem:[#allocation25_spill] sm:$0xff] %v7581_v53  ;;  %8961 = vst [vmem:[#allocation28_spill] sm:$0xff] %v7585_v36  ;;  %v7597_v24 = vmul.f32 %v7214_v32, %v8965_v45  ;;  %v7601_v40 = vmul.f32 %v7214_v32, %v8966_v2  ;;  %v8967_v53 = vld [vmem:[#allocation109_spill] sm:$0xff]  ;;  %v8969_v36 = vld [vmem:[#allocation110_spill] sm:$0xff]  ;;  %v7617_v45 = vmul.f32 %v7214_v32, %v6813_v4 }
 0x558   :  { %8963 = vst [vmem:[#allocation41_spill] sm:$0xff] %v7589_v5  ;;  %v7605_v15 = vmul.f32 %v7214_v32, %v8967_v53  ;;  %v7609_v50 = vmul.f32 %v7214_v32, %v8969_v36  ;;  %v8971_v5 = vld [vmem:[#allocation111_spill] sm:$0xff]  ;;  %v7621_v2 = vmul.f32 %v7214_v32, %v6837_v14  ;;  %v7625_v53 = vmul.f32 %v7214_v32, %v6860_v55 }
 0x559   :  { %v7613_v25 = vmul.f32 %v7214_v32, %v8971_v5  ;;  %8973 = vst [vmem:[#allocation27_spill] sm:$0xff] %v7617_v45  ;;  %v8981_v45 = vld [vmem:[#allocation61_spill] sm:$0xff]  ;;  %v8985_v32 = vld [vmem:[#allocation83_spill] sm:$0xff] }
 0x55a   :  { %8968 = vst [vmem:[#allocation46_spill] sm:$0xff] %v7605_v15  ;;  %8970 = vst [vmem:[#allocation30_spill] sm:$0xff] %v7609_v50  ;;  %v8975_v15 = vld [vmem:[#allocation59_spill] sm:$0xff]  ;;  %v7641_v14 = vmul.f32 %v7237_v54, %v8981_v45 }
 0x55b   :  { %8972 = vst [vmem:[#allocation39_spill] sm:$0xff] %v7613_v25  ;;  %8974 = vst [vmem:[#allocation36_spill] sm:$0xff] %v7621_v2  ;;  %v7629_v36 = vmul.f32 %v7237_v54, %v8975_v15  ;;  %v8977_v50 = vld [vmem:[#allocation51_spill] sm:$0xff]  ;;  %v8979_v25 = vld [vmem:[#allocation58_spill] sm:$0xff]  ;;  %v7649_v15 = vmul.f32 %v7237_v54, %v8985_v32 }
 0x55c   :  { %v7633_v5 = vmul.f32 %v7237_v54, %v8977_v50  ;;  %v7637_v4 = vmul.f32 %v7237_v54, %v8979_v25  ;;  %8982 = vst [vmem:[#allocation64_spill] sm:$0xff] %v7641_v14  ;;  %v8983_v2 = vld [vmem:[#allocation80_spill] sm:$0xff]  ;;  %v8990_v14 = vld [vmem:[#allocation114_spill] sm:$0xff] }
 0x55d   :  { %8976 = vst [vmem:[#allocation55_spill] sm:$0xff] %v7629_v36  ;;  %v7645_v55 = vmul.f32 %v7237_v54, %v8983_v2  ;;  %8986 = vst [vmem:[#allocation70_spill] sm:$0xff] %v7649_v15  ;;  %v8987_v36 = vld [vmem:[#allocation86_spill] sm:$0xff]  ;;  %v7665_v2 = vmul.f32 %v7237_v54, %v8990_v14  ;;  %v8994_v15 = vld [vmem:[#allocation119_spill] sm:$0xff]  ;;  %v7685_v14 = vmul.f32 %v7237_v54, %v6908_v27 }
 0x55e   :  { %8978 = vst [vmem:[#allocation32_spill] sm:$0xff] %v7633_v5  ;;  %8980 = vst [vmem:[#allocation29_spill] sm:$0xff] %v7637_v4  ;;  %v7653_v50 = vmul.f32 %v7237_v54, %v8987_v36  ;;  %v8988_v5 = vld [vmem:[#allocation88_spill] sm:$0xff]  ;;  %v8989_v4 = vld [vmem:[#allocation113_spill] sm:$0xff]  ;;  %v7673_v36 = vmul.f32 %v7237_v54, %v8994_v15 }
 0x55f   :  { %8984 = vst [vmem:[#allocation66_spill] sm:$0xff] %v7645_v55  ;;  %v7657_v25 = vmul.f32 %v7237_v54, %v8988_v5  ;;  %v7661_v45 = vmul.f32 %v7237_v54, %v8989_v4  ;;  %8991 = vst [vmem:[#allocation72_spill] sm:$0xff] %v7665_v2  ;;  %v8992_v55 = vld [vmem:[#allocation117_spill] sm:$0xff]  ;;  %v7677_v5 = vmul.f32 %v7237_v54, %v6872_v60 }
 0x560   :  { %v7669_v32 = vmul.f32 %v7237_v54, %v8992_v55  ;;  %8995 = vst [vmem:[#allocation99_spill] sm:$0xff] %v7673_v36  ;;  %v7681_v4 = vmul.f32 %v7237_v54, %v6894_v8  ;;  %v8998_v2 = vld [vmem:[#allocation53_spill] sm:$0xff]  ;;  %v9002_v36 = vld [vmem:[#allocation63_spill] sm:$0xff] }
 0x561   :  { %8996 = vst [vmem:[#allocation102_spill] sm:$0xff] %v7677_v5  ;;  %v7689_v55 = vmul.f32 %v7268_v26, %v8998_v2  ;;  %v7697_v60 = vmul.f32 %v7268_v26, %v9002_v36  ;;  %v9004_v5 = vld [vmem:[#allocation68_spill] sm:$0xff]  ;;  %v9007_v54 = vld [vmem:[#allocation93_spill] sm:$0xff] }
 0x562   :  { %8993 = vst [vmem:[#allocation97_spill] sm:$0xff] %v7669_v32  ;;  %8997 = vst [vmem:[#allocation103_spill] sm:$0xff] %v7681_v4  ;;  %v9000_v32 = vld [vmem:[#allocation60_spill] sm:$0xff]  ;;  %v7701_v8 = vmul.f32 %v7268_v26, %v9004_v5  ;;  %v9006_v4 = vld [vmem:[#allocation89_spill] sm:$0xff]  ;;  %v7709_v2 = vmul.f32 %v7268_v26, %v9007_v54  ;;  %v7729_v54 = vmul.f32 %v7268_v26, %v6730_v35 }
 0x563   :  { %8999 = vst [vmem:[#allocation125_spill] sm:$0xff] %v7689_v55  ;;  %v7693_v15 = vmul.f32 %v7268_v26, %v9000_v32  ;;  %9003 = vst [vmem:[#allocation128_spill] sm:$0xff] %v7697_v60  ;;  %v7705_v27 = vmul.f32 %v7268_v26, %v9006_v4  ;;  %v9008_v55 = vld [vmem:[#allocation94_spill] sm:$0xff]  ;;  %v9012_v60 = vld [vmem:[#allocation123_spill] sm:$0xff] }
 0x564   :  { %9005 = vst [vmem:[#allocation34_spill] sm:$0xff] %v7701_v8  ;;  %v7713_v32 = vmul.f32 %v7268_v26, %v9008_v55  ;;  %v7721_v5 = vmul.f32 %v7268_v26, %v9012_v60  ;;  %v9014_v8 = vld [vmem:[#allocation124_spill] sm:$0xff]  ;;  %9016 = vst [vmem:[#allocation79_spill] sm:$0xff] %v7729_v54  ;;  %v7733_v55 = vmul.f32 %v7268_v26, %v6738_v38 }
 0x565   :  { %9001 = vst [vmem:[#allocation127_spill] sm:$0xff] %v7693_v15  ;;  %v9010_v15 = vld [vmem:[#allocation95_spill] sm:$0xff]  ;;  %v7725_v4 = vmul.f32 %v7268_v26, %v9014_v8  ;;  %v7741_v60 = vmul.f32 %v7268_v26, %v6931_v20  ;;  %v7745_v8 = vmul.f32 %v7268_v26, %v6944_v63  ;;  %v9023_v38 = vld [vmem:[#allocation52_spill] sm:$0xff]  ;;  %v9027_v20 = vld [vmem:[#allocation69_spill] sm:$0xff] }
 0x566   :  { %9009 = vst [vmem:[#allocation40_spill] sm:$0xff] %v7713_v32  ;;  %v7717_v36 = vmul.f32 %v7268_v26, %v9010_v15  ;;  %9013 = vst [vmem:[#allocation50_spill] sm:$0xff] %v7721_v5  ;;  %v7737_v15 = vmul.f32 %v7268_v26, %v6923_v19  ;;  %v9025_v19 = vld [vmem:[#allocation65_spill] sm:$0xff]  ;;  %v9029_v63 = vld [vmem:[#allocation92_spill] sm:$0xff] }
 0x567   :  { %9015 = vst [vmem:[#allocation76_spill] sm:$0xff] %v7725_v4  ;;  %9017 = vst [vmem:[#allocation82_spill] sm:$0xff] %v7733_v55  ;;  %v9021_v4 = vld [vmem:[#allocation54_spill] sm:$0xff]  ;;  %v7755_v55 = vmul.f32 %v7203_v39, %v9023_v38  ;;  %v7767_v26 = vmul.f32 %v7203_v39, %v9029_v63 }
 0x568   :  { %9011 = vst [vmem:[#allocation31_spill] sm:$0xff] %v7717_v36  ;;  %9018 = vst [vmem:[#allocation85_spill] sm:$0xff] %v7737_v15  ;;  %v7749_v35 = vmul.f32 %v7203_v39, %v9021_v4  ;;  %v7759_v15 = vmul.f32 %v7203_v39, %v9025_v19 }
 0x569   :  { %9019 = vst [vmem:[#allocation108_spill] sm:$0xff] %v7741_v60  ;;  %9020 = vst [vmem:[#allocation112_spill] sm:$0xff] %v7745_v8  ;;  %v7763_v60 = vmul.f32 %v7203_v39, %v9027_v20 }
 0x56a   :  { %9022 = vst [vmem:[#allocation115_spill] sm:$0xff] %v7749_v35  ;;  %9024 = vst [vmem:[#allocation118_spill] sm:$0xff] %v7755_v55 }
 0x56b   :  { %9026 = vst [vmem:[#allocation35_spill] sm:$0xff] %v7759_v15  ;;  %9028 = vst [vmem:[#allocation45_spill] sm:$0xff] %v7763_v60 }
 0x56c   :  { %9030 = vst [vmem:[#allocation33_spill] sm:$0xff] %v7767_v26 }
 0x576   :  { %v7751_v54 = vpop.permute.xlu0 %3345 }
 0x577   :  { %v3379_v4 = vadd.f32 %v7751_v54, %v7509_v47  ;;  %v3411_v35 = vadd.f32 %v7513_v42, %v7751_v54  ;;  %v7775_v38 = vadd.f32 %v7517_v12, %v7751_v54  ;;  %v7779_v19 = vadd.f32 %v7521_v0, %v7751_v54 }
 0x578   :  { %v3341_v20 = vpop.permute.xlu1 %3340  ;;  %v7783_v60 = vadd.f32 %v7525_v28, %v7751_v54  ;;  %v7787_v63 = vadd.f32 %v7529_v57, %v7751_v54  ;;  %v7791_v47 = vadd.f32 %v7533_v46, %v7751_v54  ;;  %v7795_v42 = vadd.f32 %v7537_v29, %v7751_v54 }
 0x579   :  { %v3378_v12 = vadd.f32 %v3341_v20, %v7329_v31  ;;  %v3410_v0 = vadd.f32 %v7333_v7, %v3341_v20  ;;  %v3443_v26 = vadd.f32 %v7337_v52, %v3341_v20  ;;  %v3476_v28 = vadd.f32 %v7341_v11, %v3341_v20 }
 0x57a   :  { %v3509_v15 = vadd.f32 %v7345_v59, %v3341_v20  ;;  %v3542_v57 = vadd.f32 %v7349_v41, %v3341_v20  ;;  %v3575_v55 = vadd.f32 %v7353_v61, %v3341_v20  ;;  %v3608_v46 = vadd.f32 %v7357_v49, %v3341_v20 }
 0x57b   :  { %v3386_v39 = vmax.f32 %v3378_v12, 0.0  ;;  %v3418_v8 = vmax.f32 %v3410_v0, 0.0  ;;  %v3451_v29 = vmax.f32 %v3443_v26, 0.0  ;;  %v3484_v5 = vmax.f32 %v3476_v28, 0.0 }
 0x57c   :  { %v3517_v36 = vmax.f32 %v3509_v15, 0.0  ;;  %v3550_v31 = vmax.f32 %v3542_v57, 0.0  ;;  %v3583_v32 = vmax.f32 %v3575_v55, 0.0  ;;  %v3616_v7 = vmax.f32 %v3608_v46, 0.0 }
 0x57d   :  { %3394 = vst [vmem:[%s8349_s6] sm:$0xff] %v3386_v39  ;;  %3992 = vst [vmem:[%s8349_s6 + $0x40] sm:$0xff] %v3418_v8  ;;  %v3641_v52 = vadd.f32 %v7361_v16, %v3341_v20  ;;  %v3674_v11 = vadd.f32 %v7365_v17, %v3341_v20  ;;  %v3707_v59 = vadd.f32 %v7369_v18, %v3341_v20  ;;  %v3387_v16 = vmax.f32 %v3379_v4, 0.0 }
 0x57e   :  { %4000 = vst [vmem:[%s8349_s6 + $0x80] sm:$0xff] %v3451_v29  ;;  %4008 = vst [vmem:[%s8349_s6 + $0xc0] sm:$0xff] %v3484_v5  ;;  %v3740_v39 = vadd.f32 %v7373_v9, %v3341_v20  ;;  %v3773_v41 = vadd.f32 %v7377_v51, %v3341_v20  ;;  %v3806_v61 = vadd.f32 %v7381_v3, %v3341_v20  ;;  %v3452_v51 = vmax.f32 %v7775_v38, 0.0 }
 0x57f   :  { %4016 = vst [vmem:[%s8349_s6 + $0x100] sm:$0xff] %v3517_v36  ;;  %4024 = vst [vmem:[%s8349_s6 + $0x140] sm:$0xff] %v3550_v31  ;;  %v3839_v49 = vadd.f32 %v7385_v23, %v3341_v20  ;;  %v3649_v17 = vmax.f32 %v3641_v52, 0.0  ;;  %v3682_v18 = vmax.f32 %v3674_v11, 0.0  ;;  %v3715_v9 = vmax.f32 %v3707_v59, 0.0 }
 0x580   :  { %4032 = vst [vmem:[%s8349_s6 + $0x180] sm:$0xff] %v3583_v32  ;;  %4040 = vst [vmem:[%s8349_s6 + $0x1c0] sm:$0xff] %v3616_v7  ;;  %v3748_v36 = vmax.f32 %v3740_v39, 0.0  ;;  %v3781_v5 = vmax.f32 %v3773_v41, 0.0  ;;  %v3814_v55 = vmax.f32 %v3806_v61, 0.0  ;;  %v3419_v32 = vmax.f32 %v3411_v35, 0.0 }
 0x581   :  { %v3847_v15 = vmax.f32 %v3839_v49, 0.0  ;;  %3395 = vst [vmem:[%s8349_s6 + $0x8] sm:$0xff] %v3387_v16  ;;  %4048 = vst [vmem:[%s8349_s6 + $0x200] sm:$0xff] %v3649_v17  ;;  %v3485_v3 = vmax.f32 %v7779_v19, 0.0  ;;  %v3518_v23 = vmax.f32 %v7783_v60, 0.0  ;;  %v3551_v8 = vmax.f32 %v7787_v63, 0.0  ;;  %v7855_v35 = vpop.permute.xlu1 %3355 }
 0x582   :  { %4056 = vst [vmem:[%s8349_s6 + $0x240] sm:$0xff] %v3682_v18  ;;  %4064 = vst [vmem:[%s8349_s6 + $0x280] sm:$0xff] %v3715_v9  ;;  %v3584_v60 = vmax.f32 %v7791_v47, 0.0  ;;  %v3617_v26 = vmax.f32 %v7795_v42, 0.0  ;;  %v3642_v4 = vadd.f32 %v7541_v56, %v7751_v54  ;;  %v3675_v38 = vadd.f32 %v7545_v58, %v7751_v54  ;;  %v9033_v61 = vld [vmem:[#allocation4_spill] sm:$0xff]  ;;  %v9034_v16 = vld [vmem:[#allocation6_spill] sm:$0xff] }
 0x583   :  { %4072 = vst [vmem:[%s8349_s6 + $0x2c0] sm:$0xff] %v3748_v36  ;;  %4080 = vst [vmem:[%s8349_s6 + $0x300] sm:$0xff] %v3781_v5  ;;  %v3708_v56 = vadd.f32 %v7549_v33, %v7751_v54  ;;  %v3741_v58 = vadd.f32 %v7553_v34, %v7751_v54  ;;  %v3774_v19 = vadd.f32 %v7557_v30, %v7751_v54  ;;  %v9035_v18 = vld [vmem:[#allocation5_spill] sm:$0xff] }
 0x584   :  { %4088 = vst [vmem:[%s8349_s6 + $0x340] sm:$0xff] %v3814_v55  ;;  %4096 = vst [vmem:[%s8349_s6 + $0x380] sm:$0xff] %v3847_v15  ;;  %v3807_v20 = vadd.f32 %v7561_v62, %v7751_v54  ;;  %v3650_v63 = vmax.f32 %v3642_v4, 0.0  ;;  %v3683_v47 = vmax.f32 %v3675_v38, 0.0  ;;  %v3840_v33 = vadd.f32 %v7565_v10, %v7751_v54  ;;  %v9036_v36 = vld [vmem:[#allocation21_spill] sm:$0xff]  ;;  %v9037_v55 = vld [vmem:[#allocation10_spill] sm:$0xff] }
 0x585   :  { %3993 = vst [vmem:[%s8349_s6 + $0x48] sm:$0xff] %v3419_v32  ;;  %4001 = vst [vmem:[%s8349_s6 + $0x88] sm:$0xff] %v3452_v51  ;;  %v3381_v34 = vadd.f32 %v7855_v35, %v7389_v21  ;;  %v3716_v30 = vmax.f32 %v3708_v56, 0.0  ;;  %v3749_v42 = vmax.f32 %v3741_v58, 0.0  ;;  %v3782_v12 = vmax.f32 %v3774_v19, 0.0  ;;  %v3351_v11 = vpop.permute.xlu1 %3350  ;;  %v9040_v19 = vld [vmem:[#allocation23_spill] sm:$0xff] }
 0x586   :  { %4009 = vst [vmem:[%s8349_s6 + $0xc8] sm:$0xff] %v3485_v3  ;;  %4017 = vst [vmem:[%s8349_s6 + $0x108] sm:$0xff] %v3518_v23  ;;  %v3815_v62 = vmax.f32 %v3807_v20, 0.0  ;;  %v3848_v0 = vmax.f32 %v3840_v33, 0.0  ;;  %v3413_v10 = vadd.f32 %v7393_v22, %v7855_v35  ;;  %v3446_v21 = vadd.f32 %v7397_v43, %v7855_v35  ;;  %v9038_v3 = vld [vmem:[#allocation13_spill] sm:$0xff]  ;;  %v9042_v33 = vld [vmem:[#allocation28_spill] sm:$0xff] }
 0x587   :  { %4025 = vst [vmem:[%s8349_s6 + $0x148] sm:$0xff] %v3551_v8  ;;  %4033 = vst [vmem:[%s8349_s6 + $0x188] sm:$0xff] %v3584_v60  ;;  %v3389_v28 = vmax.f32 %v3381_v34, 0.0  ;;  %v3479_v22 = vadd.f32 %v7401_v13, %v7855_v35  ;;  %v3512_v43 = vadd.f32 %v7405_v37, %v7855_v35  ;;  %v3545_v54 = vadd.f32 %v7409_v44, %v7855_v35  ;;  %v9031_v37 = vld [vmem:[#allocation11_spill] sm:$0xff]  ;;  %v9039_v8 = vld [vmem:[#allocation17_spill] sm:$0xff] }
 0x588   :  { %4041 = vst [vmem:[%s8349_s6 + $0x1c8] sm:$0xff] %v3617_v26  ;;  %4049 = vst [vmem:[%s8349_s6 + $0x208] sm:$0xff] %v3650_v63  ;;  %v3578_v57 = vadd.f32 %v7413_v1, %v7855_v35  ;;  %v3421_v46 = vmax.f32 %v3413_v10, 0.0  ;;  %v3454_v29 = vmax.f32 %v3446_v21, 0.0  ;;  %v3611_v13 = vadd.f32 %v7417_v6, %v7855_v35  ;;  %v9032_v6 = vld [vmem:[#allocation18_spill] sm:$0xff]  ;;  %v9041_v63 = vld [vmem:[#allocation25_spill] sm:$0xff] }
 0x589   :  { %4057 = vst [vmem:[%s8349_s6 + $0x248] sm:$0xff] %v3683_v47  ;;  %4065 = vst [vmem:[%s8349_s6 + $0x288] sm:$0xff] %v3716_v30  ;;  %v3644_v31 = vadd.f32 %v9031_v37, %v7855_v35  ;;  %v3487_v44 = vmax.f32 %v3479_v22, 0.0  ;;  %v3520_v7 = vmax.f32 %v3512_v43, 0.0  ;;  %v3553_v52 = vmax.f32 %v3545_v54, 0.0  ;;  %v9043_v30 = vld [vmem:[#allocation41_spill] sm:$0xff]  ;;  %v8015_v43 = vpop.permute.xlu0 %3360 }
 0x58a   :  { %4073 = vst [vmem:[%s8349_s6 + $0x2c8] sm:$0xff] %v3749_v42  ;;  %4081 = vst [vmem:[%s8349_s6 + $0x308] sm:$0xff] %v3782_v12  ;;  %v3586_v1 = vmax.f32 %v3578_v57, 0.0  ;;  %v3619_v59 = vmax.f32 %v3611_v13, 0.0  ;;  %v3677_v41 = vadd.f32 %v9032_v6, %v7855_v35  ;;  %v3710_v49 = vadd.f32 %v9033_v61, %v7855_v35  ;;  %v9044_v21 = vld [vmem:[#allocation46_spill] sm:$0xff]  ;;  %v9046_v37 = vld [vmem:[#allocation39_spill] sm:$0xff] }
 0x58b   :  { %4089 = vst [vmem:[%s8349_s6 + $0x348] sm:$0xff] %v3815_v62  ;;  %4097 = vst [vmem:[%s8349_s6 + $0x388] sm:$0xff] %v3848_v0  ;;  %v3652_v39 = vmax.f32 %v3644_v31, 0.0  ;;  %v3743_v17 = vadd.f32 %v9034_v16, %v7855_v35  ;;  %v3776_v9 = vadd.f32 %v9035_v18, %v7855_v35  ;;  %v3809_v5 = vadd.f32 %v9036_v36, %v7855_v35  ;;  %v9045_v13 = vld [vmem:[#allocation30_spill] sm:$0xff] }
 0x58c   :  { %3397 = vst [vmem:[%s8349_s6 + $0x18] sm:$0xff] %v3389_v28  ;;  %3995 = vst [vmem:[%s8349_s6 + $0x58] sm:$0xff] %v3421_v46  ;;  %v3842_v15 = vadd.f32 %v9037_v55, %v7855_v35  ;;  %v3685_v32 = vmax.f32 %v3677_v41, 0.0  ;;  %v3718_v51 = vmax.f32 %v3710_v49, 0.0  ;;  %v3380_v23 = vadd.f32 %v3351_v11, %v9038_v3  ;;  %v9050_v49 = vld [vmem:[#allocation32_spill] sm:$0xff] }
 0x58d   :  { %4003 = vst [vmem:[%s8349_s6 + $0x98] sm:$0xff] %v3454_v29  ;;  %4011 = vst [vmem:[%s8349_s6 + $0xd8] sm:$0xff] %v3487_v44  ;;  %v3412_v60 = vadd.f32 %v9039_v8, %v3351_v11  ;;  %v3751_v26 = vmax.f32 %v3743_v17, 0.0  ;;  %v3784_v4 = vmax.f32 %v3776_v9, 0.0  ;;  %v3817_v38 = vmax.f32 %v3809_v5, 0.0  ;;  %v9047_v44 = vld [vmem:[#allocation27_spill] sm:$0xff] }
 0x58e   :  { %4019 = vst [vmem:[%s8349_s6 + $0x118] sm:$0xff] %v3520_v7  ;;  %4027 = vst [vmem:[%s8349_s6 + $0x158] sm:$0xff] %v3553_v52  ;;  %v3850_v56 = vmax.f32 %v3842_v15, 0.0  ;;  %v3388_v35 = vmax.f32 %v3380_v23, 0.0  ;;  %v3445_v20 = vadd.f32 %v9040_v19, %v3351_v11  ;;  %v3478_v47 = vadd.f32 %v9041_v63, %v3351_v11  ;;  %v9048_v52 = vld [vmem:[#allocation36_spill] sm:$0xff]  ;;  %v9051_v17 = vld [vmem:[#allocation29_spill] sm:$0xff] }
 0x58f   :  { %4035 = vst [vmem:[%s8349_s6 + $0x198] sm:$0xff] %v3586_v1  ;;  %4043 = vst [vmem:[%s8349_s6 + $0x1d8] sm:$0xff] %v3619_v59  ;;  %v3420_v58 = vmax.f32 %v3412_v60, 0.0  ;;  %v3511_v34 = vadd.f32 %v9042_v33, %v3351_v11  ;;  %v3544_v42 = vadd.f32 %v9043_v30, %v3351_v11  ;;  %v3577_v12 = vadd.f32 %v7593_v48, %v3351_v11  ;;  %v9052_v15 = vld [vmem:[#allocation64_spill] sm:$0xff]  ;;  %v9054_v23 = vld [vmem:[#allocation70_spill] sm:$0xff] }
 0x590   :  { %4051 = vst [vmem:[%s8349_s6 + $0x218] sm:$0xff] %v3652_v39  ;;  %4059 = vst [vmem:[%s8349_s6 + $0x258] sm:$0xff] %v3685_v32  ;;  %v3610_v62 = vadd.f32 %v7597_v24, %v3351_v11  ;;  %v3453_v0 = vmax.f32 %v3445_v20, 0.0  ;;  %v3486_v28 = vmax.f32 %v3478_v47, 0.0  ;;  %v3643_v10 = vadd.f32 %v7601_v40, %v3351_v11  ;;  %v9049_v39 = vld [vmem:[#allocation55_spill] sm:$0xff] }
 0x591   :  { %4067 = vst [vmem:[%s8349_s6 + $0x298] sm:$0xff] %v3718_v51  ;;  %4075 = vst [vmem:[%s8349_s6 + $0x2d8] sm:$0xff] %v3751_v26  ;;  %v3676_v22 = vadd.f32 %v9044_v21, %v3351_v11  ;;  %v3519_v54 = vmax.f32 %v3511_v34, 0.0  ;;  %v3552_v48 = vmax.f32 %v3544_v42, 0.0  ;;  %v3585_v57 = vmax.f32 %v3577_v12, 0.0  ;;  %v9053_v51 = vld [vmem:[#allocation66_spill] sm:$0xff] }
 0x592   :  { %4083 = vst [vmem:[%s8349_s6 + $0x318] sm:$0xff] %v3784_v4  ;;  %4091 = vst [vmem:[%s8349_s6 + $0x358] sm:$0xff] %v3817_v38  ;;  %v3618_v24 = vmax.f32 %v3610_v62, 0.0  ;;  %v3651_v46 = vmax.f32 %v3643_v10, 0.0  ;;  %v3709_v40 = vadd.f32 %v9045_v13, %v3351_v11  ;;  %v3742_v31 = vadd.f32 %v9046_v37, %v3351_v11  ;;  %v9057_v30 = vld [vmem:[#allocation99_spill] sm:$0xff]  ;;  %v9058_v12 = vld [vmem:[#allocation102_spill] sm:$0xff] }
 0x593   :  { %4099 = vst [vmem:[%s8349_s6 + $0x398] sm:$0xff] %v3850_v56  ;;  %3396 = vst [vmem:[%s8349_s6 + $0x10] sm:$0xff] %v3388_v35  ;;  %v3684_v29 = vmax.f32 %v3676_v22, 0.0  ;;  %v3775_v7 = vadd.f32 %v9047_v44, %v3351_v11  ;;  %v3808_v1 = vadd.f32 %v9048_v52, %v3351_v11  ;;  %v3841_v59 = vadd.f32 %v7625_v53, %v3351_v11  ;;  %v9055_v35 = vld [vmem:[#allocation72_spill] sm:$0xff]  ;;  %v9060_v21 = vld [vmem:[#allocation125_spill] sm:$0xff] }
 0x594   :  { %3994 = vst [vmem:[%s8349_s6 + $0x50] sm:$0xff] %v3420_v58  ;;  %4002 = vst [vmem:[%s8349_s6 + $0x90] sm:$0xff] %v3453_v0  ;;  %v3382_v6 = vadd.f32 %v8015_v43, %v9049_v39  ;;  %v3717_v41 = vmax.f32 %v3709_v40, 0.0  ;;  %v3750_v61 = vmax.f32 %v3742_v31, 0.0  ;;  %v3414_v16 = vadd.f32 %v9050_v49, %v8015_v43  ;;  %v9059_v0 = vld [vmem:[#allocation103_spill] sm:$0xff] }
 0x595   :  { %4010 = vst [vmem:[%s8349_s6 + $0xd0] sm:$0xff] %v3486_v28  ;;  %4018 = vst [vmem:[%s8349_s6 + $0x110] sm:$0xff] %v3519_v54  ;;  %v3447_v18 = vadd.f32 %v9051_v17, %v8015_v43  ;;  %v3783_v53 = vmax.f32 %v3775_v7, 0.0  ;;  %v3816_v11 = vmax.f32 %v3808_v1, 0.0  ;;  %v3849_v9 = vmax.f32 %v3841_v59, 0.0  ;;  %v9061_v54 = vld [vmem:[#allocation127_spill] sm:$0xff] }
 0x596   :  { %4026 = vst [vmem:[%s8349_s6 + $0x150] sm:$0xff] %v3552_v48  ;;  %4034 = vst [vmem:[%s8349_s6 + $0x190] sm:$0xff] %v3585_v57  ;;  %v3390_v36 = vmax.f32 %v3382_v6, 0.0  ;;  %v3422_v5 = vmax.f32 %v3414_v16, 0.0  ;;  %v3480_v32 = vadd.f32 %v9052_v15, %v8015_v43  ;;  %v3513_v3 = vadd.f32 %v9053_v51, %v8015_v43  ;;  %v9066_v6 = vld [vmem:[#allocation50_spill] sm:$0xff] }
 0x597   :  { %4042 = vst [vmem:[%s8349_s6 + $0x1d0] sm:$0xff] %v3618_v24  ;;  %4050 = vst [vmem:[%s8349_s6 + $0x210] sm:$0xff] %v3651_v46  ;;  %v3455_v55 = vmax.f32 %v3447_v18, 0.0  ;;  %v3546_v8 = vadd.f32 %v9054_v23, %v8015_v43  ;;  %v3579_v60 = vadd.f32 %v7653_v50, %v8015_v43  ;;  %v3612_v26 = vadd.f32 %v7657_v25, %v8015_v43  ;;  %v9056_v50 = vld [vmem:[#allocation97_spill] sm:$0xff]  ;;  %v8092_v25 = vpop.permute.xlu0 %3370  ;;  %v9062_v46 = vld [vmem:[#allocation128_spill] sm:$0xff] }
 0x598   :  { %4058 = vst [vmem:[%s8349_s6 + $0x250] sm:$0xff] %v3684_v29  ;;  %4066 = vst [vmem:[%s8349_s6 + $0x290] sm:$0xff] %v3717_v41  ;;  %v3645_v4 = vadd.f32 %v7661_v45, %v8015_v43  ;;  %v3488_v38 = vmax.f32 %v3480_v32, 0.0  ;;  %v3521_v56 = vmax.f32 %v3513_v3, 0.0  ;;  %v3678_v58 = vadd.f32 %v9055_v35, %v8015_v43  ;;  %v9068_v18 = vld [vmem:[#allocation79_spill] sm:$0xff]  ;;  %v9070_v23 = vld [vmem:[#allocation85_spill] sm:$0xff] }
 0x599   :  { %4074 = vst [vmem:[%s8349_s6 + $0x2d0] sm:$0xff] %v3750_v61  ;;  %4082 = vst [vmem:[%s8349_s6 + $0x310] sm:$0xff] %v3783_v53  ;;  %v3711_v19 = vadd.f32 %v9056_v50, %v8015_v43  ;;  %v3554_v20 = vmax.f32 %v3546_v8, 0.0  ;;  %v3587_v45 = vmax.f32 %v3579_v60, 0.0  ;;  %v3620_v63 = vmax.f32 %v3612_v26, 0.0  ;;  %v9067_v61 = vld [vmem:[#allocation76_spill] sm:$0xff] }
 0x59a   :  { %4090 = vst [vmem:[%s8349_s6 + $0x350] sm:$0xff] %v3816_v11  ;;  %4098 = vst [vmem:[%s8349_s6 + $0x390] sm:$0xff] %v3849_v9  ;;  %v3653_v47 = vmax.f32 %v3645_v4, 0.0  ;;  %v3686_v33 = vmax.f32 %v3678_v58, 0.0  ;;  %v3744_v42 = vadd.f32 %v9057_v30, %v8015_v43  ;;  %v3777_v62 = vadd.f32 %v9058_v12, %v8015_v43  ;;  %v9069_v11 = vld [vmem:[#allocation82_spill] sm:$0xff]  ;;  %v9071_v60 = vld [vmem:[#allocation108_spill] sm:$0xff] }
 0x59b   :  { %3398 = vst [vmem:[%s8349_s6 + $0x20] sm:$0xff] %v3390_v36  ;;  %3996 = vst [vmem:[%s8349_s6 + $0x60] sm:$0xff] %v3422_v5  ;;  %v3719_v34 = vmax.f32 %v3711_v19, 0.0  ;;  %v3810_v28 = vadd.f32 %v9059_v0, %v8015_v43  ;;  %v3843_v10 = vadd.f32 %v7685_v14, %v8015_v43  ;;  %v3384_v22 = vadd.f32 %v8092_v25, %v9060_v21  ;;  %v9063_v14 = vld [vmem:[#allocation34_spill] sm:$0xff]  ;;  %v3366_v36 = vpop.permute.xlu1 %3365  ;;  %v9072_v4 = vld [vmem:[#allocation112_spill] sm:$0xff] }
 0x59c   :  { %4004 = vst [vmem:[%s8349_s6 + $0xa0] sm:$0xff] %v3455_v55  ;;  %4012 = vst [vmem:[%s8349_s6 + $0xe0] sm:$0xff] %v3488_v38  ;;  %v3416_v48 = vadd.f32 %v9061_v54, %v8092_v25  ;;  %v3752_v57 = vmax.f32 %v3744_v42, 0.0  ;;  %v3785_v24 = vmax.f32 %v3777_v62, 0.0  ;;  %v3449_v29 = vadd.f32 %v9062_v46, %v8092_v25  ;;  %v9074_v58 = vld [vmem:[#allocation14_spill] sm:$0xff]  ;;  %v9075_v19 = vld [vmem:[#allocation20_spill] sm:$0xff] }
 0x59d   :  { %4020 = vst [vmem:[%s8349_s6 + $0x120] sm:$0xff] %v3521_v56  ;;  %4028 = vst [vmem:[%s8349_s6 + $0x160] sm:$0xff] %v3554_v20  ;;  %v3482_v43 = vadd.f32 %v9063_v14, %v8092_v25  ;;  %v3818_v13 = vmax.f32 %v3810_v28, 0.0  ;;  %v3851_v40 = vmax.f32 %v3843_v10, 0.0  ;;  %v3392_v37 = vmax.f32 %v3384_v22, 0.0  ;;  %v9073_v56 = vld [vmem:[#allocation12_spill] sm:$0xff] }
 0x59e   :  { %4036 = vst [vmem:[%s8349_s6 + $0x1a0] sm:$0xff] %v3587_v45  ;;  %4044 = vst [vmem:[%s8349_s6 + $0x1e0] sm:$0xff] %v3620_v63  ;;  %v3424_v31 = vmax.f32 %v3416_v48, 0.0  ;;  %v3457_v44 = vmax.f32 %v3449_v29, 0.0  ;;  %v3515_v52 = vadd.f32 %v7705_v27, %v8092_v25  ;;  %v3548_v1 = vadd.f32 %v7709_v2, %v8092_v25  ;;  %v9064_v27 = vld [vmem:[#allocation40_spill] sm:$0xff]  ;;  %v9065_v2 = vld [vmem:[#allocation31_spill] sm:$0xff] }
 0x59f   :  { %4052 = vst [vmem:[%s8349_s6 + $0x220] sm:$0xff] %v3653_v47  ;;  %4060 = vst [vmem:[%s8349_s6 + $0x260] sm:$0xff] %v3686_v33  ;;  %v3490_v7 = vmax.f32 %v3482_v43, 0.0  ;;  %v3581_v59 = vadd.f32 %v9064_v27, %v8092_v25  ;;  %v3614_v39 = vadd.f32 %v9065_v2, %v8092_v25  ;;  %v3647_v41 = vadd.f32 %v9066_v6, %v8092_v25  ;;  %v9076_v47 = vld [vmem:[#allocation26_spill] sm:$0xff]  ;;  %v9078_v10 = vld [vmem:[#allocation47_spill] sm:$0xff] }
 0x5a0   :  { %4068 = vst [vmem:[%s8349_s6 + $0x2a0] sm:$0xff] %v3719_v34  ;;  %4076 = vst [vmem:[%s8349_s6 + $0x2e0] sm:$0xff] %v3752_v57  ;;  %v3680_v49 = vadd.f32 %v9067_v61, %v8092_v25  ;;  %v3523_v16 = vmax.f32 %v3515_v52, 0.0  ;;  %v3556_v17 = vmax.f32 %v3548_v1, 0.0  ;;  %v3713_v53 = vadd.f32 %v9068_v18, %v8092_v25  ;;  %v9077_v34 = vld [vmem:[#allocation37_spill] sm:$0xff]  ;;  %v9079_v22 = vld [vmem:[#allocation2_spill] sm:$0xff] }
 0x5a1   :  { %4084 = vst [vmem:[%s8349_s6 + $0x320] sm:$0xff] %v3785_v24  ;;  %4092 = vst [vmem:[%s8349_s6 + $0x360] sm:$0xff] %v3818_v13  ;;  %v3746_v9 = vadd.f32 %v9069_v11, %v8092_v25  ;;  %v3589_v5 = vmax.f32 %v3581_v59, 0.0  ;;  %v3622_v55 = vmax.f32 %v3614_v39, 0.0  ;;  %v3655_v15 = vmax.f32 %v3647_v41, 0.0  ;;  %v9080_v48 = vld [vmem:[#allocation3_spill] sm:$0xff] }
 0x5a2   :  { %4100 = vst [vmem:[%s8349_s6 + $0x3a0] sm:$0xff] %v3851_v40  ;;  %3400 = vst [vmem:[%s8349_s6 + $0x30] sm:$0xff] %v3392_v37  ;;  %v3688_v32 = vmax.f32 %v3680_v49, 0.0  ;;  %v3721_v51 = vmax.f32 %v3713_v53, 0.0  ;;  %v3779_v8 = vadd.f32 %v9070_v23, %v8092_v25  ;;  %v3812_v26 = vadd.f32 %v9071_v60, %v8092_v25  ;;  %v9081_v24 = vld [vmem:[#allocation16_spill] sm:$0xff]  ;;  %v9082_v29 = vld [vmem:[#allocation19_spill] sm:$0xff] }
 0x5a3   :  { %3998 = vst [vmem:[%s8349_s6 + $0x70] sm:$0xff] %v3424_v31  ;;  %4006 = vst [vmem:[%s8349_s6 + $0xb0] sm:$0xff] %v3457_v44  ;;  %v3754_v3 = vmax.f32 %v3746_v9, 0.0  ;;  %v3845_v38 = vadd.f32 %v9072_v4, %v8092_v25  ;;  %v3383_v35 = vadd.f32 %v3366_v36, %v9073_v56  ;;  %v3415_v50 = vadd.f32 %v9074_v58, %v3366_v36  ;;  %v9083_v43 = vld [vmem:[#allocation9_spill] sm:$0xff]  ;;  %v9084_v31 = vld [vmem:[#allocation8_spill] sm:$0xff] }
 0x5a4   :  { %4014 = vst [vmem:[%s8349_s6 + $0xf0] sm:$0xff] %v3490_v7  ;;  %4022 = vst [vmem:[%s8349_s6 + $0x130] sm:$0xff] %v3523_v16  ;;  %v3448_v20 = vadd.f32 %v9075_v19, %v3366_v36  ;;  %v3787_v45 = vmax.f32 %v3779_v8, 0.0  ;;  %v3820_v63 = vmax.f32 %v3812_v26, 0.0  ;;  %v3481_v33 = vadd.f32 %v9076_v47, %v3366_v36  ;;  %v9085_v7 = vld [vmem:[#allocation22_spill] sm:$0xff]  ;;  %v9086_v41 = vld [vmem:[#allocation7_spill] sm:$0xff] }
 0x5a5   :  { %4030 = vst [vmem:[%s8349_s6 + $0x170] sm:$0xff] %v3556_v17  ;;  %4038 = vst [vmem:[%s8349_s6 + $0x1b0] sm:$0xff] %v3589_v5  ;;  %v3514_v25 = vadd.f32 %v9077_v34, %v3366_v36  ;;  %v3853_v30 = vmax.f32 %v3845_v38, 0.0  ;;  %v3391_v42 = vmax.f32 %v3383_v35, 0.0  ;;  %v3423_v12 = vmax.f32 %v3415_v50, 0.0  ;;  %v9087_v49 = vld [vmem:[#allocation24_spill] sm:$0xff] }
 0x5a6   :  { %4046 = vst [vmem:[%s8349_s6 + $0x1f0] sm:$0xff] %v3622_v55  ;;  %4054 = vst [vmem:[%s8349_s6 + $0x230] sm:$0xff] %v3655_v15  ;;  %v3456_v62 = vmax.f32 %v3448_v20, 0.0  ;;  %v3489_v0 = vmax.f32 %v3481_v33, 0.0  ;;  %v3547_v21 = vadd.f32 %v9078_v10, %v3366_v36  ;;  %v3580_v54 = vadd.f32 %v9079_v22, %v3366_v36  ;;  %v9088_v17 = vld [vmem:[#allocation96_spill] sm:$0xff]  ;;  %v9089_v18 = vld [vmem:[#allocation15_spill] sm:$0xff]  ;;  %v3376_v20 = vpop.permute.xlu1 %3375 }
 0x5a7   :  { %4062 = vst [vmem:[%s8349_s6 + $0x270] sm:$0xff] %v3688_v32  ;;  %4070 = vst [vmem:[%s8349_s6 + $0x2b0] sm:$0xff] %v3721_v51  ;;  %v3522_v28 = vmax.f32 %v3514_v25, 0.0  ;;  %v3613_v57 = vadd.f32 %v9080_v48, %v3366_v36  ;;  %v3646_v46 = vadd.f32 %v9081_v24, %v3366_v36  ;;  %v3679_v14 = vadd.f32 %v9082_v29, %v3366_v36  ;;  %v9090_v11 = vld [vmem:[#allocation98_spill] sm:$0xff]  ;;  %v9094_v8 = vld [vmem:[#allocation132_spill] sm:$0xff] }
 0x5a8   :  { %4078 = vst [vmem:[%s8349_s6 + $0x2f0] sm:$0xff] %v3754_v3  ;;  %4086 = vst [vmem:[%s8349_s6 + $0x330] sm:$0xff] %v3787_v45  ;;  %v3712_v13 = vadd.f32 %v9083_v43, %v3366_v36  ;;  %v3555_v40 = vmax.f32 %v3547_v21, 0.0  ;;  %v3588_v37 = vmax.f32 %v3580_v54, 0.0  ;;  %v3745_v44 = vadd.f32 %v9084_v31, %v3366_v36  ;;  %v9092_v55 = vld [vmem:[#allocation126_spill] sm:$0xff]  ;;  %v9093_v3 = vld [vmem:[#allocation129_spill] sm:$0xff] }
 0x5a9   :  { %4094 = vst [vmem:[%s8349_s6 + $0x370] sm:$0xff] %v3820_v63  ;;  %4102 = vst [vmem:[%s8349_s6 + $0x3b0] sm:$0xff] %v3853_v30  ;;  %v3778_v52 = vadd.f32 %v9085_v7, %v3366_v36  ;;  %v3621_v1 = vmax.f32 %v3613_v57, 0.0  ;;  %v3654_v27 = vmax.f32 %v3646_v46, 0.0  ;;  %v3687_v59 = vmax.f32 %v3679_v14, 0.0  ;;  %v9095_v26 = vld [vmem:[#allocation133_spill] sm:$0xff] }
 0x5aa   :  { %3399 = vst [vmem:[%s8349_s6 + $0x28] sm:$0xff] %v3391_v42  ;;  %3997 = vst [vmem:[%s8349_s6 + $0x68] sm:$0xff] %v3423_v12  ;;  %v3720_v2 = vmax.f32 %v3712_v13, 0.0  ;;  %v3753_v39 = vmax.f32 %v3745_v44, 0.0  ;;  %v3811_v61 = vadd.f32 %v9086_v41, %v3366_v36  ;;  %v3844_v16 = vadd.f32 %v9087_v49, %v3366_v36  ;;  %v9091_v36 = vld [vmem:[#allocation100_spill] sm:$0xff]  ;;  %v9096_v38 = vld [vmem:[#allocation134_spill] sm:$0xff] }
 0x5ab   :  { %4005 = vst [vmem:[%s8349_s6 + $0xa8] sm:$0xff] %v3456_v62  ;;  %4013 = vst [vmem:[%s8349_s6 + $0xe8] sm:$0xff] %v3489_v0  ;;  %v3786_v6 = vmax.f32 %v3778_v52, 0.0  ;;  %v3541_v53 = vmul.f32 %v9089_v18, %v9088_v17  ;;  %v3574_v9 = vmul.f32 %v9089_v18, %v9090_v11  ;;  %v3607_v5 = vmul.f32 %v9089_v18, %v9091_v36  ;;  %v9097_v35 = vld [vmem:[#allocation135_spill] sm:$0xff]  ;;  %v9098_v50 = vld [vmem:[#allocation136_spill] sm:$0xff] }
 0x5ac   :  { %4021 = vst [vmem:[%s8349_s6 + $0x128] sm:$0xff] %v3522_v28  ;;  %4029 = vst [vmem:[%s8349_s6 + $0x168] sm:$0xff] %v3555_v40  ;;  %v3640_v15 = vmul.f32 %v9089_v18, %v9092_v55  ;;  %v3819_v32 = vmax.f32 %v3811_v61, 0.0  ;;  %v3852_v51 = vmax.f32 %v3844_v16, 0.0  ;;  %v3673_v23 = vmul.f32 %v9089_v18, %v9093_v3  ;;  %v9099_v45 = vld [vmem:[#allocation115_spill] sm:$0xff]  ;;  %v9100_v47 = vld [vmem:[#allocation118_spill] sm:$0xff] }
 0x5ad   :  { %4037 = vst [vmem:[%s8349_s6 + $0x1a8] sm:$0xff] %v3588_v37  ;;  %4045 = vst [vmem:[%s8349_s6 + $0x1e8] sm:$0xff] %v3621_v1  ;;  %v3706_v60 = vmul.f32 %v9089_v18, %v9094_v8  ;;  %v3739_v4 = vmul.f32 %v9089_v18, %v9095_v26  ;;  %v3772_v56 = vmul.f32 %v9089_v18, %v9096_v38  ;;  %v9101_v34 = vld [vmem:[#allocation35_spill] sm:$0xff]  ;;  %v9102_v30 = vld [vmem:[#allocation45_spill] sm:$0xff] }
 0x5ae   :  { %4053 = vst [vmem:[%s8349_s6 + $0x228] sm:$0xff] %v3654_v27  ;;  %4061 = vst [vmem:[%s8349_s6 + $0x268] sm:$0xff] %v3687_v59  ;;  %v3805_v58 = vmul.f32 %v9089_v18, %v9097_v35  ;;  %v3838_v19 = vmul.f32 %v9089_v18, %v9098_v50  ;;  %v3385_v63 = vadd.f32 %v3376_v20, %v9099_v45  ;;  %v9103_v12 = vld [vmem:[#allocation33_spill] sm:$0xff] }
 0x5af   :  { %4069 = vst [vmem:[%s8349_s6 + $0x2a8] sm:$0xff] %v3720_v2  ;;  %4077 = vst [vmem:[%s8349_s6 + $0x2e8] sm:$0xff] %v3753_v39  ;;  %v3417_v33 = vadd.f32 %v9100_v47, %v3376_v20  ;;  %v3450_v25 = vadd.f32 %v9101_v34, %v3376_v20  ;;  %v3483_v42 = vadd.f32 %v9102_v30, %v3376_v20 }
 0x5b0   :  { %4085 = vst [vmem:[%s8349_s6 + $0x328] sm:$0xff] %v3786_v6  ;;  %4093 = vst [vmem:[%s8349_s6 + $0x368] sm:$0xff] %v3819_v32  ;;  %v3516_v62 = vadd.f32 %v9103_v12, %v3376_v20  ;;  %v3549_v0 = vadd.f32 %v3541_v53, %v3376_v20  ;;  %v3582_v28 = vadd.f32 %v3574_v9, %v3376_v20  ;;  %v3393_v21 = vmax.f32 %v3385_v63, 0.0 }
 0x5b1   :  { %4101 = vst [vmem:[%s8349_s6 + $0x3a8] sm:$0xff] %v3852_v51  ;;  %v3615_v10 = vadd.f32 %v3607_v5, %v3376_v20  ;;  %v3425_v22 = vmax.f32 %v3417_v33, 0.0  ;;  %v3458_v54 = vmax.f32 %v3450_v25, 0.0  ;;  %v3491_v48 = vmax.f32 %v3483_v42, 0.0 }
 0x5b2   :  { %v3524_v57 = vmax.f32 %v3516_v62, 0.0  ;;  %v3557_v24 = vmax.f32 %v3549_v0, 0.0  ;;  %v3590_v46 = vmax.f32 %v3582_v28, 0.0  ;;  %3401 = vst [vmem:[%s8349_s6 + $0x38] sm:$0xff] %v3393_v21  ;;  %v3648_v14 = vadd.f32 %v3640_v15, %v3376_v20 }
 0x5b3   :  { %v3623_v29 = vmax.f32 %v3615_v10, 0.0  ;;  %3999 = vst [vmem:[%s8349_s6 + $0x78] sm:$0xff] %v3425_v22  ;;  %4007 = vst [vmem:[%s8349_s6 + $0xb8] sm:$0xff] %v3458_v54  ;;  %v3681_v43 = vadd.f32 %v3673_v23, %v3376_v20  ;;  %v3714_v13 = vadd.f32 %v3706_v60, %v3376_v20  ;;  %v3747_v40 = vadd.f32 %v3739_v4, %v3376_v20 }
 0x5b4   :  { %4015 = vst [vmem:[%s8349_s6 + $0xf8] sm:$0xff] %v3491_v48  ;;  %4023 = vst [vmem:[%s8349_s6 + $0x138] sm:$0xff] %v3524_v57  ;;  %v3780_v37 = vadd.f32 %v3772_v56, %v3376_v20  ;;  %v3813_v31 = vadd.f32 %v3805_v58, %v3376_v20  ;;  %v3846_v44 = vadd.f32 %v3838_v19, %v3376_v20  ;;  %v3656_v7 = vmax.f32 %v3648_v14, 0.0 }
 0x5b5   :  { %4031 = vst [vmem:[%s8349_s6 + $0x178] sm:$0xff] %v3557_v24  ;;  %4039 = vst [vmem:[%s8349_s6 + $0x1b8] sm:$0xff] %v3590_v46  ;;  %v3689_v52 = vmax.f32 %v3681_v43, 0.0  ;;  %v3722_v1 = vmax.f32 %v3714_v13, 0.0  ;;  %v3755_v27 = vmax.f32 %v3747_v40, 0.0 }
 0x5b6   :  { %4047 = vst [vmem:[%s8349_s6 + $0x1f8] sm:$0xff] %v3623_v29  ;;  %v3788_v59 = vmax.f32 %v3780_v37, 0.0  ;;  %v3821_v2 = vmax.f32 %v3813_v31, 0.0  ;;  %v3854_v39 = vmax.f32 %v3846_v44, 0.0  ;;  %4055 = vst [vmem:[%s8349_s6 + $0x238] sm:$0xff] %v3656_v7 }
 0x5b7   :  { %4063 = vst [vmem:[%s8349_s6 + $0x278] sm:$0xff] %v3689_v52  ;;  %4071 = vst [vmem:[%s8349_s6 + $0x2b8] sm:$0xff] %v3722_v1 }
 0x5b8   :  { %4079 = vst [vmem:[%s8349_s6 + $0x2f8] sm:$0xff] %v3755_v27  ;;  %4087 = vst [vmem:[%s8349_s6 + $0x338] sm:$0xff] %v3788_v59 }
 0x5b9   :  { %4095 = vst [vmem:[%s8349_s6 + $0x378] sm:$0xff] %v3821_v2  ;;  %4103 = vst [vmem:[%s8349_s6 + $0x3b8] sm:$0xff] %v3854_v39 }

</bundles_post_ra>
